<compile_context>
chip_gen: v5e
topology: v5e:2x2
jax: 0.10.0
libtpu: 0.0.40
codegen_flags: <defaults>
</compile_context>

<pallas_src>
import functools

import jax
import jax.numpy as jnp
from jax.experimental import pallas as pl
from jax.experimental.pallas import tpu as pltpu


def _round_up(n, m):
    return ((n + m - 1) // m) * m


def _chunking(seq_len, max_chunk):
    """Pick timesteps-per-grid-step.

    Prefer the largest divisor of seq_len in [max_chunk//2, max_chunk] (no
    ragged tail); otherwise fall back to tc=max_chunk with a masked tail chunk
    instead of degrading to tc=1.
    Returns (tc, num_chunks, tail) where tail = valid steps in the last chunk.
    """
    tc = min(seq_len, max_chunk)
    for cand in range(tc, max(tc // 2, 1) - 1, -1):
        if seq_len % cand == 0:
            tc = cand
            break
    nc = -(-seq_len // tc)
    tail = seq_len - (nc - 1) * tc
    return tc, nc, tail


# ------------------------------ fused kernel ------------------------------- #

def fused_gru_kernel(*refs, num_layers, tc, bp, hp, tail):
    """One T-chunk of the whole GRU stack (+ fc/softmax head on the last chunk).

    refs = [x_chunk,
            (w_ih, w_hh, b_ih_comb, b_hn) * num_layers,
            w_fc, b_fc,                      # inputs
            out,                             # output (bp, ncp) probs
            h_0..h_{L-1},                    # scratch: per-layer hidden carry
            seq_scratch, gi_scratch]         # scratch: inter-layer chunk, input proj
    Gate order along the last axis is r | z | n (PyTorch), each gate block
    padded to hp (multiple of 128) so all slices are lane aligned.
    """
    x_ref = refs[0]
    idx = 1
    layer_refs = []
    for _ in range(num_layers):
        layer_refs.append(refs[idx:idx + 4])
        idx += 4
    w_fc_ref, b_fc_ref = refs[idx], refs[idx + 1]
    idx += 2
    out_ref = refs[idx]
    idx += 1
    h_refs = refs[idx:idx + num_layers]
    seq_ref = refs[idx + num_layers]
    gi_ref = refs[idx + num_layers + 1]

    c = pl.program_id(0)
    is_last_chunk = c == pl.num_programs(0) - 1

    @pl.when(c == 0)
    def _init():
        for h_ref in h_refs:
            h_ref[...] = jnp.zeros_like(h_ref)

    h_top = None
    for l, (w_ih_ref, w_hh_ref, b_ih_ref, b_hn_ref) in enumerate(layer_refs):
        # Hoisted input projection for the whole chunk: one big MXU matmul
        # (bf16 operands, f32 accumulate), materialized into a VMEM scratch.
        inp = x_ref[...] if l == 0 else seq_ref[...].astype(jnp.bfloat16)
        gi_ref[...] = (jnp.dot(inp, w_ih_ref[...],
                               preferred_element_type=jnp.float32)
                       + b_ih_ref[...])

        w_hh = w_hh_ref[...]                                   # resident bf16
        b_hn = jnp.broadcast_to(b_hn_ref[...], (bp, hp))       # hoisted bcast
        h = h_refs[l][...]                                     # f32 carry
        emit_seq = l < num_layers - 1

        for t in range(tc):                                    # static unroll
            gi_t = gi_ref[t * bp:(t + 1) * bp, :]              # aligned slice
            gh = jnp.dot(h.astype(jnp.bfloat16), w_hh,
                         preferred_element_type=jnp.float32)
            r = jax.nn.sigmoid(gi_t[:, 0 * hp:1 * hp] + gh[:, 0 * hp:1 * hp])
            z = jax.nn.sigmoid(gi_t[:, 1 * hp:2 * hp] + gh[:, 1 * hp:2 * hp])
            n = jnp.tanh(gi_t[:, 2 * hp:3 * hp]
                         + r * (gh[:, 2 * hp:3 * hp] + b_hn))
            h_new = (1.0 - z) * n + z * h
            if t >= tail:
                # Ragged tail: freeze h for padded timesteps of the last chunk.
                upd = jnp.where(is_last_chunk,
                                jnp.float32(0.0), jnp.float32(1.0))
                h_new = h + upd * (h_new - h)
            h = h_new
            if emit_seq:
                seq_ref[t * bp:(t + 1) * bp, :] = h            # stays in VMEM
        h_refs[l][...] = h                                     # carry to next chunk
        h_top = h

    @pl.when(is_last_chunk)
    def _head():
        # fc + softmax fused; padded class columns carry a -1e30 bias so they
        # contribute exp(..)=0 to the (exact) softmax.
        logits = (jnp.dot(h_top.astype(jnp.bfloat16), w_fc_ref[...],
                          preferred_element_type=jnp.float32)
                  + b_fc_ref[...])
        m = jnp.max(logits, axis=1, keepdims=True)
        e = jnp.exp(logits - m)
        out_ref[...] = e / jnp.sum(e, axis=1, keepdims=True)


# ------------------------------- JAX wrapper -------------------------------- #

def init_params(key, input_size, hidden_size, num_layers, num_classes):
    """PyTorch-style init: U(-1/sqrt(H), 1/sqrt(H)), PyTorch weight shapes."""
    bound = 1.0 / float(hidden_size) ** 0.5
    layers = []
    for layer in range(num_layers):
        d_in = input_size if layer == 0 else hidden_size
        key, k1, k2, k3, k4 = jax.random.split(key, 5)
        w_ih = jax.random.uniform(k1, (3 * hidden_size, d_in), minval=-bound,
                                  maxval=bound, dtype=jnp.float32)
        w_hh = jax.random.uniform(k2, (3 * hidden_size, hidden_size),
                                  minval=-bound, maxval=bound, dtype=jnp.float32)
        b_ih = jax.random.uniform(k3, (3 * hidden_size,), minval=-bound,
                                  maxval=bound, dtype=jnp.float32)
        b_hh = jax.random.uniform(k4, (3 * hidden_size,), minval=-bound,
                                  maxval=bound, dtype=jnp.float32)
        layers.append((w_ih, w_hh, b_ih, b_hh))
    key, k1, k2 = jax.random.split(key, 3)
    w_fc = jax.random.uniform(k1, (num_classes, hidden_size), minval=-bound,
                              maxval=bound, dtype=jnp.float32)
    b_fc = jax.random.uniform(k2, (num_classes,), minval=-bound,
                              maxval=bound, dtype=jnp.float32)
    return {"layers": layers, "fc": (w_fc, b_fc)}


def prepare_params(raw, hidden_size, num_classes):
    """Pre-transpose, lane-pad and bf16-cast the PyTorch-layout weights once.

    * hidden / gate dims padded to multiples of 128 with zeros: padded hidden
      columns stay exactly 0 through the recurrence (sigmoid(0)=0.5, tanh(0)=0
      => h_pad_new = 0.5*0 + 0.5*0 = 0), so numerics match the unpadded model.
    * b_hr / b_hz are folded into the input-side bias; only b_hn stays separate
      (it must sit inside the r*(...) term per PyTorch GRU semantics).
    * matmul operands (weights) stored bf16; biases stay f32.
    * fc padded to 128 output classes; padded classes get bias -1e30.
    """
    h = hidden_size
    hp = _round_up(max(h, 128), 128)
    ncp = _round_up(max(num_classes, 128), 128)

    def pad_gate_cols(w_t, dtype):       # (d, 3h) -> (d, 3hp)
        parts = [jnp.pad(w_t[:, g * h:(g + 1) * h], ((0, 0), (0, hp - h)))
                 for g in range(3)]
        return jnp.concatenate(parts, axis=1).astype(dtype)

    def pad_gate_bias(b):                # (3h,) -> (1, 3hp), f32
        parts = [jnp.pad(b[g * h:(g + 1) * h], (0, hp - h)) for g in range(3)]
        return jnp.concatenate(parts).reshape(1, 3 * hp).astype(jnp.float32)

    layers = []
    for li, (w_ih, w_hh, b_ih, b_hh) in enumerate(raw["layers"]):
        w_ih_t = pad_gate_cols(w_ih.T, jnp.bfloat16)            # (d_in, 3hp)
        if li > 0:                                              # upstream emits hp
            w_ih_t = jnp.pad(w_ih_t, ((0, hp - h), (0, 0)))
        w_hh_t = jnp.pad(pad_gate_cols(w_hh.T, jnp.bfloat16),
                         ((0, hp - h), (0, 0)))                 # (hp, 3hp)
        b_comb = jnp.concatenate([b_ih[:2 * h] + b_hh[:2 * h], b_ih[2 * h:]])
        b_ih_p = pad_gate_bias(b_comb)                          # (1, 3hp)
        b_hn_p = jnp.pad(b_hh[2 * h:], (0, hp - h)).reshape(1, hp) \
                    .astype(jnp.float32)                        # (1, hp)
        layers.append((w_ih_t, w_hh_t, b_ih_p, b_hn_p))

    w_fc, b_fc = raw["fc"]
    w_fc_t = jnp.pad(w_fc.T, ((0, hp - h), (0, ncp - num_classes))) \
                .astype(jnp.bfloat16)                           # (hp, ncp)
    b_fc_p = jnp.pad(b_fc, (0, ncp - num_classes),
                     constant_values=-1e30).reshape(1, ncp) \
                .astype(jnp.float32)                            # (1, ncp)
    return tuple(layers), (w_fc_t, b_fc_p)


@functools.partial(jax.jit, static_argnames=("num_classes", "max_chunk"))
def gru_forward(x, layer_params, fc_params, num_classes, max_chunk=32):
    """Forward pass equivalent to the PyTorch GRU module: (B,T,D) -> (B,C) probs."""
    B, T, d_in = x.shape
    bp = _round_up(B, 8)                       # sublane-pad the batch
    tc, nc, tail = _chunking(T, max_chunk)     # timesteps per pipelined grid step
    num_layers = len(layer_params)
    hp = layer_params[0][1].shape[0]           # w_hh is (hp, 3*hp)
    w_fc, b_fc = fc_params
    ncp = w_fc.shape[1]

    # time-major rows, batch padded to bp, T padded to nc*tc, bf16 MXU operand
    xt = jnp.transpose(x, (1, 0, 2)).astype(jnp.bfloat16)       # (T, B, D)
    xt = jnp.pad(xt, ((0, nc * tc - T), (0, bp - B), (0, 0)))
    x2d = xt.reshape(nc * tc * bp, d_in)

    flat_w = []
    in_specs = [pl.BlockSpec((tc * bp, d_in), lambda c: (c, 0))]   # pipelined x
    for lw in layer_params:
        for w in lw:
            flat_w.append(w)
            # Grid-invariant blocks: loaded once, stay resident in VMEM.
            in_specs.append(pl.BlockSpec(w.shape, lambda c: (0, 0)))
    for w in (w_fc, b_fc):
        flat_w.append(w)
        in_specs.append(pl.BlockSpec(w.shape, lambda c: (0, 0)))

    scratch_shapes = (
        [pltpu.VMEM((bp, hp), jnp.float32) for _ in range(num_layers)]  # h carry
        + [pltpu.VMEM((tc * bp, hp), jnp.float32),       # inter-layer chunk seq
           pltpu.VMEM((tc * bp, 3 * hp), jnp.float32)])  # hoisted input proj

    # Derive VMEM budget from the actual buffers (x / out / weights double
    # buffered by default, plus scratch), with 2x headroom.
    def nbytes(a):
        return a.size * a.dtype.itemsize
    est = (2 * tc * bp * d_in * 2
           + 2 * sum(nbytes(w) for w in flat_w)
           + 2 * bp * ncp * 4
           + (num_layers * bp * hp + tc * bp * hp + tc * bp * 3 * hp) * 4)
    vmem_limit = int(min(96 * 2 ** 20, max(8 * 2 ** 20, 2 * est)))

    out = pl.pallas_call(
        functools.partial(fused_gru_kernel, num_layers=num_layers,
                          tc=tc, bp=bp, hp=hp, tail=tail),
        out_shape=jax.ShapeDtypeStruct((bp, ncp), jnp.float32),
        grid_spec=pltpu.PrefetchScalarGridSpec(
            num_scalar_prefetch=0,
            grid=(nc,),
            in_specs=in_specs,
            out_specs=pl.BlockSpec((bp, ncp), lambda c: (0, 0)),
            scratch_shapes=scratch_shapes),
        compiler_params=pltpu.CompilerParams(
            dimension_semantics=("arbitrary",),        # serial carry over T chunks
            vmem_limit_bytes=vmem_limit),
    )(x2d, *flat_w)
    return out[:B, :num_classes]


def gru_reference(x, raw):
    """Pure-JAX reference with exact PyTorch GRU + Linear + softmax semantics."""
    hi = jax.lax.Precision.HIGHEST
    B, T, _ = x.shape
    seq = x.astype(jnp.float32)
    for (w_ih, w_hh, b_ih, b_hh) in raw["layers"]:
        H = w_hh.shape[1]
        h = jnp.zeros((B, H), jnp.float32)
        outs = []
        for t in range(T):
            gi = jnp.dot(seq[:, t, :], w_ih.T, precision=hi) + b_ih
            gh = jnp.dot(h, w_hh.T, precision=hi) + b_hh
            r = jax.nn.sigmoid(gi[:, :H] + gh[:, :H])
            z = jax.nn.sigmoid(gi[:, H:2 * H] + gh[:, H:2 * H])
            n = jnp.tanh(gi[:, 2 * H:] + r * gh[:, 2 * H:])
            h = (1.0 - z) * n + z * h
            outs.append(h)
        seq = jnp.stack(outs, axis=1)
    w_fc, b_fc = raw["fc"]
    logits = jnp.dot(seq[:, -1, :], w_fc.T, precision=hi) + b_fc
    return jax.nn.softmax(logits, axis=1)


# ---------------------------------- main ------------------------------------ #

if __name__ == "__main__":
    input_size = 16
    hidden_size = 32
    num_layers = 2
    num_classes = 10
    batch = 2
    seq_len = 8

    key = jax.random.PRNGKey(0)
    key, pkey, xkey, xkey2 = jax.random.split(key, 4)

    raw = init_params(pkey, input_size, hidden_size, num_layers, num_classes)
    layer_params, fc_params = prepare_params(raw, hidden_size, num_classes)

    # -- main test: B=2, T=8 (single chunk) ---------------------------------
    x = jax.random.normal(xkey, (batch, seq_len, input_size), dtype=jnp.float32)
    out = gru_forward(x, layer_params, fc_params, num_classes=num_classes)
    out = jax.block_until_ready(out)

    assert out.shape == (batch, num_classes)
    # exact softmax normalization
    assert bool(jnp.all(jnp.abs(jnp.sum(out, axis=1) - 1.0) < 1e-4))
    # bf16 matmul operands (fp32 accumulate / gate math) vs fp32 reference
    ref = gru_reference(x, raw)
    assert bool(jnp.max(jnp.abs(out - ref)) < 2e-2)

    # -- second test: ragged T (T=11, tc=4 -> 3 chunks, masked tail) --------
    x2 = jax.random.normal(xkey2, (batch, 11, input_size), dtype=jnp.float32)
    out2 = gru_forward(x2, layer_params, fc_params, num_classes=num_classes,
                       max_chunk=4)
    out2 = jax.block_until_ready(out2)
    ref2 = gru_reference(x2, raw)
    assert out2.shape == (batch, num_classes)
    assert bool(jnp.all(jnp.abs(jnp.sum(out2, axis=1) - 1.0) < 1e-4))
    assert bool(jnp.max(jnp.abs(out2 - ref2)) < 2e-2)

    print("KERNEL_OK")
</pallas_src>

<mosaic_0001>
module attributes {stable_mosaic.version = 11 : i64} {
  func.func @fused_gru_kernel(%arg0: i32, %arg1: memref<64x16xbf16, #tpu.memory_space<vmem>>, %arg2: memref<16x384xbf16, #tpu.memory_space<vmem>>, %arg3: memref<128x384xbf16, #tpu.memory_space<vmem>>, %arg4: memref<1x384xf32, #tpu.memory_space<vmem>>, %arg5: memref<1x128xf32, #tpu.memory_space<vmem>>, %arg6: memref<128x384xbf16, #tpu.memory_space<vmem>>, %arg7: memref<128x384xbf16, #tpu.memory_space<vmem>>, %arg8: memref<1x384xf32, #tpu.memory_space<vmem>>, %arg9: memref<1x128xf32, #tpu.memory_space<vmem>>, %arg10: memref<128x128xbf16, #tpu.memory_space<vmem>>, %arg11: memref<1x128xf32, #tpu.memory_space<vmem>>, %arg12: memref<8x128xf32, #tpu.memory_space<vmem>>, %arg13: memref<8x128xf32, #tpu.memory_space<vmem>>, %arg14: memref<8x128xf32, #tpu.memory_space<vmem>>, %arg15: memref<64x128xf32, #tpu.memory_space<vmem>>, %arg16: memref<64x384xf32, #tpu.memory_space<vmem>>) attributes {dimension_semantics = [#tpu.dimension_semantics<arbitrary>], iteration_bounds = array<i64: 1>, scalar_prefetch = 0 : i64, scratch_operands = 4 : i64, tpu.core_type = #tpu.core_type<tc>, window_params = [{transform_indices = @transform_0, window_bounds = array<i64: 64, 16>}, {pipeline_mode = #tpu.pipeline_mode<synchronous>, transform_indices = @transform_1, window_bounds = array<i64: 16, 384>}, {pipeline_mode = #tpu.pipeline_mode<synchronous>, transform_indices = @transform_2, window_bounds = array<i64: 128, 384>}, {pipeline_mode = #tpu.pipeline_mode<synchronous>, transform_indices = @transform_3, window_bounds = array<i64: 1, 384>}, {pipeline_mode = #tpu.pipeline_mode<synchronous>, transform_indices = @transform_4, window_bounds = array<i64: 1, 128>}, {pipeline_mode = #tpu.pipeline_mode<synchronous>, transform_indices = @transform_5, window_bounds = array<i64: 128, 384>}, {pipeline_mode = #tpu.pipeline_mode<synchronous>, transform_indices = @transform_6, window_bounds = array<i64: 128, 384>}, {pipeline_mode = #tpu.pipeline_mode<synchronous>, transform_indices = @transform_7, window_bounds = array<i64: 1, 384>}, {pipeline_mode = #tpu.pipeline_mode<synchronous>, transform_indices = @transform_8, window_bounds = array<i64: 1, 128>}, {pipeline_mode = #tpu.pipeline_mode<synchronous>, transform_indices = @transform_9, window_bounds = array<i64: 128, 128>}, {pipeline_mode = #tpu.pipeline_mode<synchronous>, transform_indices = @transform_10, window_bounds = array<i64: 1, 128>}, {pipeline_mode = #tpu.pipeline_mode<synchronous>, transform_indices = @transform_11, window_bounds = array<i64: 8, 128>}]} {
    %c0_i32 = arith.constant 0 : i32
    %0 = arith.cmpi eq, %arg0, %c0_i32 : i32
    %c0_i32_0 = arith.constant 0 : i32
    %1 = arith.cmpi eq, %arg0, %c0_i32_0 : i32
    %2 = arith.extui %1 : i1 to i32
    %c0_i32_1 = arith.constant 0 : i32
    %3 = arith.cmpi ne, %2, %c0_i32_1 : i32
    scf.if %3 {
      %cst_140 = arith.constant 0.000000e+00 : f32
      %521 = vector.broadcast %cst_140 : f32 to vector<8x128xf32>
      %c0_141 = arith.constant 0 : index
      %c0_142 = arith.constant 0 : index
      %522 = vector.load %arg13[%c0_141, %c0_142] : memref<8x128xf32, #tpu.memory_space<vmem>>, vector<8x128xf32>
      tpu.vector_store %arg13[%c0_141, %c0_142], %521 {strides = array<i32>} : memref<8x128xf32, #tpu.memory_space<vmem>>, vector<8x128xf32>,
      %cst_143 = arith.constant 0.000000e+00 : f32
      %523 = vector.broadcast %cst_143 : f32 to vector<8x128xf32>
      %c0_144 = arith.constant 0 : index
      %c0_145 = arith.constant 0 : index
      %524 = vector.load %arg14[%c0_144, %c0_145] : memref<8x128xf32, #tpu.memory_space<vmem>>, vector<8x128xf32>
      tpu.vector_store %arg14[%c0_144, %c0_145], %523 {strides = array<i32>} : memref<8x128xf32, #tpu.memory_space<vmem>>, vector<8x128xf32>,
    } else {
    }
    %c0 = arith.constant 0 : index
    %c0_2 = arith.constant 0 : index
    %4 = vector.load %arg1[%c0, %c0_2] : memref<64x16xbf16, #tpu.memory_space<vmem>>, vector<64x16xbf16>
    %c0_3 = arith.constant 0 : index
    %c0_4 = arith.constant 0 : index
    %5 = vector.load %arg2[%c0_3, %c0_4] : memref<16x384xbf16, #tpu.memory_space<vmem>>, vector<16x384xbf16>
    %cst = arith.constant dense<0.000000e+00> : vector<64x384xf32>
    %6 = tpu.matmul %4, %5, %cst {dimension_numbers = #tpu.dot_dimension_numbers<[1], [0], [0], [1], [0, 0, 1, 1], [], []>} : vector<64x16xbf16>, vector<16x384xbf16>, vector<64x384xf32> -> vector<64x384xf32>
    %c0_5 = arith.constant 0 : index
    %c0_6 = arith.constant 0 : index
    %7 = vector.load %arg4[%c0_5, %c0_6] : memref<1x384xf32, #tpu.memory_space<vmem>>, vector<1x384xf32>
    %8 = vector.broadcast %7 : vector<1x384xf32> to vector<64x384xf32>
    %9 = arith.addf %6, %8 : vector<64x384xf32>
    %c0_7 = arith.constant 0 : index
    %c0_8 = arith.constant 0 : index
    %10 = vector.load %arg16[%c0_7, %c0_8] : memref<64x384xf32, #tpu.memory_space<vmem>>, vector<64x384xf32>
    tpu.vector_store %arg16[%c0_7, %c0_8], %9 {strides = array<i32>} : memref<64x384xf32, #tpu.memory_space<vmem>>, vector<64x384xf32>,
    %c0_9 = arith.constant 0 : index
    %c0_10 = arith.constant 0 : index
    %11 = vector.load %arg3[%c0_9, %c0_10] : memref<128x384xbf16, #tpu.memory_space<vmem>>, vector<128x384xbf16>
    %c0_11 = arith.constant 0 : index
    %c0_12 = arith.constant 0 : index
    %12 = vector.load %arg5[%c0_11, %c0_12] : memref<1x128xf32, #tpu.memory_space<vmem>>, vector<1x128xf32>
    %13 = vector.shape_cast %12 : vector<1x128xf32> to vector<1x128xf32>
    %14 = vector.broadcast %13 : vector<1x128xf32> to vector<8x128xf32>
    %c0_13 = arith.constant 0 : index
    %c0_14 = arith.constant 0 : index
    %15 = vector.load %arg13[%c0_13, %c0_14] : memref<8x128xf32, #tpu.memory_space<vmem>>, vector<8x128xf32>
    %c0_15 = arith.constant 0 : index
    %c0_16 = arith.constant 0 : index
    %16 = vector.load %arg16[%c0_15, %c0_16] : memref<64x384xf32, #tpu.memory_space<vmem>>, vector<8x384xf32>
    %17 = arith.truncf %15 : vector<8x128xf32> to vector<8x128xbf16>
    %cst_17 = arith.constant dense<0.000000e+00> : vector<8x384xf32>
    %18 = tpu.matmul %17, %11, %cst_17 {dimension_numbers = #tpu.dot_dimension_numbers<[1], [0], [0], [1], [0, 0, 1, 1], [], []>} : vector<8x128xbf16>, vector<128x384xbf16>, vector<8x384xf32> -> vector<8x384xf32>
    %19 = vector.extract_strided_slice %16 {offsets = [0, 0], sizes = [8, 128], strides = [1, 1]} : vector<8x384xf32> to vector<8x128xf32>
    %20 = vector.extract_strided_slice %18 {offsets = [0, 0], sizes = [8, 128], strides = [1, 1]} : vector<8x384xf32> to vector<8x128xf32>
    %21 = arith.addf %19, %20 : vector<8x128xf32>
    %22 = arith.negf %21 : vector<8x128xf32>
    %23 = math.exp %22 : vector<8x128xf32>
    %cst_18 = arith.constant 1.000000e+00 : f32
    %24 = vector.broadcast %cst_18 : f32 to vector<8x128xf32>
    %25 = arith.addf %24, %23 : vector<8x128xf32>
    %26 = arith.divf %24, %25 : vector<8x128xf32>
    %27 = vector.extract_strided_slice %16 {offsets = [0, 128], sizes = [8, 128], strides = [1, 1]} : vector<8x384xf32> to vector<8x128xf32>
    %28 = vector.extract_strided_slice %18 {offsets = [0, 128], sizes = [8, 128], strides = [1, 1]} : vector<8x384xf32> to vector<8x128xf32>
    %29 = arith.addf %27, %28 : vector<8x128xf32>
    %30 = arith.negf %29 : vector<8x128xf32>
    %31 = math.exp %30 : vector<8x128xf32>
    %cst_19 = arith.constant 1.000000e+00 : f32
    %32 = vector.broadcast %cst_19 : f32 to vector<8x128xf32>
    %33 = arith.addf %32, %31 : vector<8x128xf32>
    %34 = arith.divf %32, %33 : vector<8x128xf32>
    %35 = vector.extract_strided_slice %16 {offsets = [0, 256], sizes = [8, 128], strides = [1, 1]} : vector<8x384xf32> to vector<8x128xf32>
    %36 = vector.extract_strided_slice %18 {offsets = [0, 256], sizes = [8, 128], strides = [1, 1]} : vector<8x384xf32> to vector<8x128xf32>
    %37 = arith.addf %36, %14 : vector<8x128xf32>
    %38 = arith.mulf %26, %37 : vector<8x128xf32>
    %39 = arith.addf %35, %38 : vector<8x128xf32>
    %40 = math.tanh %39 : vector<8x128xf32>
    %cst_20 = arith.constant 1.000000e+00 : f32
    %41 = vector.broadcast %cst_20 : f32 to vector<8x128xf32>
    %42 = arith.subf %41, %34 : vector<8x128xf32>
    %43 = arith.mulf %42, %40 : vector<8x128xf32>
    %44 = arith.mulf %34, %15 : vector<8x128xf32>
    %45 = arith.addf %43, %44 : vector<8x128xf32>
    %c0_21 = arith.constant 0 : index
    %c0_22 = arith.constant 0 : index
    %46 = vector.load %arg15[%c0_21, %c0_22] : memref<64x128xf32, #tpu.memory_space<vmem>>, vector<8x128xf32>
    tpu.vector_store %arg15[%c0_21, %c0_22], %45 {strides = array<i32>} : memref<64x128xf32, #tpu.memory_space<vmem>>, vector<8x128xf32>,
    %c8 = arith.constant 8 : index
    %c0_23 = arith.constant 0 : index
    %47 = vector.load %arg16[%c8, %c0_23] : memref<64x384xf32, #tpu.memory_space<vmem>>, vector<8x384xf32>
    %48 = arith.truncf %45 : vector<8x128xf32> to vector<8x128xbf16>
    %cst_24 = arith.constant dense<0.000000e+00> : vector<8x384xf32>
    %49 = tpu.matmul %48, %11, %cst_24 {dimension_numbers = #tpu.dot_dimension_numbers<[1], [0], [0], [1], [0, 0, 1, 1], [], []>} : vector<8x128xbf16>, vector<128x384xbf16>, vector<8x384xf32> -> vector<8x384xf32>
    %50 = vector.extract_strided_slice %47 {offsets = [0, 0], sizes = [8, 128], strides = [1, 1]} : vector<8x384xf32> to vector<8x128xf32>
    %51 = vector.extract_strided_slice %49 {offsets = [0, 0], sizes = [8, 128], strides = [1, 1]} : vector<8x384xf32> to vector<8x128xf32>
    %52 = arith.addf %50, %51 : vector<8x128xf32>
    %53 = arith.negf %52 : vector<8x128xf32>
    %54 = math.exp %53 : vector<8x128xf32>
    %cst_25 = arith.constant 1.000000e+00 : f32
    %55 = vector.broadcast %cst_25 : f32 to vector<8x128xf32>
    %56 = arith.addf %55, %54 : vector<8x128xf32>
    %57 = arith.divf %55, %56 : vector<8x128xf32>
    %58 = vector.extract_strided_slice %47 {offsets = [0, 128], sizes = [8, 128], strides = [1, 1]} : vector<8x384xf32> to vector<8x128xf32>
    %59 = vector.extract_strided_slice %49 {offsets = [0, 128], sizes = [8, 128], strides = [1, 1]} : vector<8x384xf32> to vector<8x128xf32>
    %60 = arith.addf %58, %59 : vector<8x128xf32>
    %61 = arith.negf %60 : vector<8x128xf32>
    %62 = math.exp %61 : vector<8x128xf32>
    %cst_26 = arith.constant 1.000000e+00 : f32
    %63 = vector.broadcast %cst_26 : f32 to vector<8x128xf32>
    %64 = arith.addf %63, %62 : vector<8x128xf32>
    %65 = arith.divf %63, %64 : vector<8x128xf32>
    %66 = vector.extract_strided_slice %47 {offsets = [0, 256], sizes = [8, 128], strides = [1, 1]} : vector<8x384xf32> to vector<8x128xf32>
    %67 = vector.extract_strided_slice %49 {offsets = [0, 256], sizes = [8, 128], strides = [1, 1]} : vector<8x384xf32> to vector<8x128xf32>
    %68 = arith.addf %67, %14 : vector<8x128xf32>
    %69 = arith.mulf %57, %68 : vector<8x128xf32>
    %70 = arith.addf %66, %69 : vector<8x128xf32>
    %71 = math.tanh %70 : vector<8x128xf32>
    %cst_27 = arith.constant 1.000000e+00 : f32
    %72 = vector.broadcast %cst_27 : f32 to vector<8x128xf32>
    %73 = arith.subf %72, %65 : vector<8x128xf32>
    %74 = arith.mulf %73, %71 : vector<8x128xf32>
    %75 = arith.mulf %65, %45 : vector<8x128xf32>
    %76 = arith.addf %74, %75 : vector<8x128xf32>
    %c8_28 = arith.constant 8 : index
    %c0_29 = arith.constant 0 : index
    %77 = vector.load %arg15[%c8_28, %c0_29] : memref<64x128xf32, #tpu.memory_space<vmem>>, vector<8x128xf32>
    tpu.vector_store %arg15[%c8_28, %c0_29], %76 {strides = array<i32>} : memref<64x128xf32, #tpu.memory_space<vmem>>, vector<8x128xf32>,
    %c16 = arith.constant 16 : index
    %c0_30 = arith.constant 0 : index
    %78 = vector.load %arg16[%c16, %c0_30] : memref<64x384xf32, #tpu.memory_space<vmem>>, vector<8x384xf32>
    %79 = arith.truncf %76 : vector<8x128xf32> to vector<8x128xbf16>
    %cst_31 = arith.constant dense<0.000000e+00> : vector<8x384xf32>
    %80 = tpu.matmul %79, %11, %cst_31 {dimension_numbers = #tpu.dot_dimension_numbers<[1], [0], [0], [1], [0, 0, 1, 1], [], []>} : vector<8x128xbf16>, vector<128x384xbf16>, vector<8x384xf32> -> vector<8x384xf32>
    %81 = vector.extract_strided_slice %78 {offsets = [0, 0], sizes = [8, 128], strides = [1, 1]} : vector<8x384xf32> to vector<8x128xf32>
    %82 = vector.extract_strided_slice %80 {offsets = [0, 0], sizes = [8, 128], strides = [1, 1]} : vector<8x384xf32> to vector<8x128xf32>
    %83 = arith.addf %81, %82 : vector<8x128xf32>
    %84 = arith.negf %83 : vector<8x128xf32>
    %85 = math.exp %84 : vector<8x128xf32>
    %cst_32 = arith.constant 1.000000e+00 : f32
    %86 = vector.broadcast %cst_32 : f32 to vector<8x128xf32>
    %87 = arith.addf %86, %85 : vector<8x128xf32>
    %88 = arith.divf %86, %87 : vector<8x128xf32>
    %89 = vector.extract_strided_slice %78 {offsets = [0, 128], sizes = [8, 128], strides = [1, 1]} : vector<8x384xf32> to vector<8x128xf32>
    %90 = vector.extract_strided_slice %80 {offsets = [0, 128], sizes = [8, 128], strides = [1, 1]} : vector<8x384xf32> to vector<8x128xf32>
    %91 = arith.addf %89, %90 : vector<8x128xf32>
    %92 = arith.negf %91 : vector<8x128xf32>
    %93 = math.exp %92 : vector<8x128xf32>
    %cst_33 = arith.constant 1.000000e+00 : f32
    %94 = vector.broadcast %cst_33 : f32 to vector<8x128xf32>
    %95 = arith.addf %94, %93 : vector<8x128xf32>
    %96 = arith.divf %94, %95 : vector<8x128xf32>
    %97 = vector.extract_strided_slice %78 {offsets = [0, 256], sizes = [8, 128], strides = [1, 1]} : vector<8x384xf32> to vector<8x128xf32>
    %98 = vector.extract_strided_slice %80 {offsets = [0, 256], sizes = [8, 128], strides = [1, 1]} : vector<8x384xf32> to vector<8x128xf32>
    %99 = arith.addf %98, %14 : vector<8x128xf32>
    %100 = arith.mulf %88, %99 : vector<8x128xf32>
    %101 = arith.addf %97, %100 : vector<8x128xf32>
    %102 = math.tanh %101 : vector<8x128xf32>
    %cst_34 = arith.constant 1.000000e+00 : f32
    %103 = vector.broadcast %cst_34 : f32 to vector<8x128xf32>
    %104 = arith.subf %103, %96 : vector<8x128xf32>
    %105 = arith.mulf %104, %102 : vector<8x128xf32>
    %106 = arith.mulf %96, %76 : vector<8x128xf32>
    %107 = arith.addf %105, %106 : vector<8x128xf32>
    %c16_35 = arith.constant 16 : index
    %c0_36 = arith.constant 0 : index
    %108 = vector.load %arg15[%c16_35, %c0_36] : memref<64x128xf32, #tpu.memory_space<vmem>>, vector<8x128xf32>
    tpu.vector_store %arg15[%c16_35, %c0_36], %107 {strides = array<i32>} : memref<64x128xf32, #tpu.memory_space<vmem>>, vector<8x128xf32>,
    %c24 = arith.constant 24 : index
    %c0_37 = arith.constant 0 : index
    %109 = vector.load %arg16[%c24, %c0_37] : memref<64x384xf32, #tpu.memory_space<vmem>>, vector<8x384xf32>
    %110 = arith.truncf %107 : vector<8x128xf32> to vector<8x128xbf16>
    %cst_38 = arith.constant dense<0.000000e+00> : vector<8x384xf32>
    %111 = tpu.matmul %110, %11, %cst_38 {dimension_numbers = #tpu.dot_dimension_numbers<[1], [0], [0], [1], [0, 0, 1, 1], [], []>} : vector<8x128xbf16>, vector<128x384xbf16>, vector<8x384xf32> -> vector<8x384xf32>
    %112 = vector.extract_strided_slice %109 {offsets = [0, 0], sizes = [8, 128], strides = [1, 1]} : vector<8x384xf32> to vector<8x128xf32>
    %113 = vector.extract_strided_slice %111 {offsets = [0, 0], sizes = [8, 128], strides = [1, 1]} : vector<8x384xf32> to vector<8x128xf32>
    %114 = arith.addf %112, %113 : vector<8x128xf32>
    %115 = arith.negf %114 : vector<8x128xf32>
    %116 = math.exp %115 : vector<8x128xf32>
    %cst_39 = arith.constant 1.000000e+00 : f32
    %117 = vector.broadcast %cst_39 : f32 to vector<8x128xf32>
    %118 = arith.addf %117, %116 : vector<8x128xf32>
    %119 = arith.divf %117, %118 : vector<8x128xf32>
    %120 = vector.extract_strided_slice %109 {offsets = [0, 128], sizes = [8, 128], strides = [1, 1]} : vector<8x384xf32> to vector<8x128xf32>
    %121 = vector.extract_strided_slice %111 {offsets = [0, 128], sizes = [8, 128], strides = [1, 1]} : vector<8x384xf32> to vector<8x128xf32>
    %122 = arith.addf %120, %121 : vector<8x128xf32>
    %123 = arith.negf %122 : vector<8x128xf32>
    %124 = math.exp %123 : vector<8x128xf32>
    %cst_40 = arith.constant 1.000000e+00 : f32
    %125 = vector.broadcast %cst_40 : f32 to vector<8x128xf32>
    %126 = arith.addf %125, %124 : vector<8x128xf32>
    %127 = arith.divf %125, %126 : vector<8x128xf32>
    %128 = vector.extract_strided_slice %109 {offsets = [0, 256], sizes = [8, 128], strides = [1, 1]} : vector<8x384xf32> to vector<8x128xf32>
    %129 = vector.extract_strided_slice %111 {offsets = [0, 256], sizes = [8, 128], strides = [1, 1]} : vector<8x384xf32> to vector<8x128xf32>
    %130 = arith.addf %129, %14 : vector<8x128xf32>
    %131 = arith.mulf %119, %130 : vector<8x128xf32>
    %132 = arith.addf %128, %131 : vector<8x128xf32>
    %133 = math.tanh %132 : vector<8x128xf32>
    %cst_41 = arith.constant 1.000000e+00 : f32
    %134 = vector.broadcast %cst_41 : f32 to vector<8x128xf32>
    %135 = arith.subf %134, %127 : vector<8x128xf32>
    %136 = arith.mulf %135, %133 : vector<8x128xf32>
    %137 = arith.mulf %127, %107 : vector<8x128xf32>
    %138 = arith.addf %136, %137 : vector<8x128xf32>
    %c24_42 = arith.constant 24 : index
    %c0_43 = arith.constant 0 : index
    %139 = vector.load %arg15[%c24_42, %c0_43] : memref<64x128xf32, #tpu.memory_space<vmem>>, vector<8x128xf32>
    tpu.vector_store %arg15[%c24_42, %c0_43], %138 {strides = array<i32>} : memref<64x128xf32, #tpu.memory_space<vmem>>, vector<8x128xf32>,
    %c32 = arith.constant 32 : index
    %c0_44 = arith.constant 0 : index
    %140 = vector.load %arg16[%c32, %c0_44] : memref<64x384xf32, #tpu.memory_space<vmem>>, vector<8x384xf32>
    %141 = arith.truncf %138 : vector<8x128xf32> to vector<8x128xbf16>
    %cst_45 = arith.constant dense<0.000000e+00> : vector<8x384xf32>
    %142 = tpu.matmul %141, %11, %cst_45 {dimension_numbers = #tpu.dot_dimension_numbers<[1], [0], [0], [1], [0, 0, 1, 1], [], []>} : vector<8x128xbf16>, vector<128x384xbf16>, vector<8x384xf32> -> vector<8x384xf32>
    %143 = vector.extract_strided_slice %140 {offsets = [0, 0], sizes = [8, 128], strides = [1, 1]} : vector<8x384xf32> to vector<8x128xf32>
    %144 = vector.extract_strided_slice %142 {offsets = [0, 0], sizes = [8, 128], strides = [1, 1]} : vector<8x384xf32> to vector<8x128xf32>
    %145 = arith.addf %143, %144 : vector<8x128xf32>
    %146 = arith.negf %145 : vector<8x128xf32>
    %147 = math.exp %146 : vector<8x128xf32>
    %cst_46 = arith.constant 1.000000e+00 : f32
    %148 = vector.broadcast %cst_46 : f32 to vector<8x128xf32>
    %149 = arith.addf %148, %147 : vector<8x128xf32>
    %150 = arith.divf %148, %149 : vector<8x128xf32>
    %151 = vector.extract_strided_slice %140 {offsets = [0, 128], sizes = [8, 128], strides = [1, 1]} : vector<8x384xf32> to vector<8x128xf32>
    %152 = vector.extract_strided_slice %142 {offsets = [0, 128], sizes = [8, 128], strides = [1, 1]} : vector<8x384xf32> to vector<8x128xf32>
    %153 = arith.addf %151, %152 : vector<8x128xf32>
    %154 = arith.negf %153 : vector<8x128xf32>
    %155 = math.exp %154 : vector<8x128xf32>
    %cst_47 = arith.constant 1.000000e+00 : f32
    %156 = vector.broadcast %cst_47 : f32 to vector<8x128xf32>
    %157 = arith.addf %156, %155 : vector<8x128xf32>
    %158 = arith.divf %156, %157 : vector<8x128xf32>
    %159 = vector.extract_strided_slice %140 {offsets = [0, 256], sizes = [8, 128], strides = [1, 1]} : vector<8x384xf32> to vector<8x128xf32>
    %160 = vector.extract_strided_slice %142 {offsets = [0, 256], sizes = [8, 128], strides = [1, 1]} : vector<8x384xf32> to vector<8x128xf32>
    %161 = arith.addf %160, %14 : vector<8x128xf32>
    %162 = arith.mulf %150, %161 : vector<8x128xf32>
    %163 = arith.addf %159, %162 : vector<8x128xf32>
    %164 = math.tanh %163 : vector<8x128xf32>
    %cst_48 = arith.constant 1.000000e+00 : f32
    %165 = vector.broadcast %cst_48 : f32 to vector<8x128xf32>
    %166 = arith.subf %165, %158 : vector<8x128xf32>
    %167 = arith.mulf %166, %164 : vector<8x128xf32>
    %168 = arith.mulf %158, %138 : vector<8x128xf32>
    %169 = arith.addf %167, %168 : vector<8x128xf32>
    %c32_49 = arith.constant 32 : index
    %c0_50 = arith.constant 0 : index
    %170 = vector.load %arg15[%c32_49, %c0_50] : memref<64x128xf32, #tpu.memory_space<vmem>>, vector<8x128xf32>
    tpu.vector_store %arg15[%c32_49, %c0_50], %169 {strides = array<i32>} : memref<64x128xf32, #tpu.memory_space<vmem>>, vector<8x128xf32>,
    %c40 = arith.constant 40 : index
    %c0_51 = arith.constant 0 : index
    %171 = vector.load %arg16[%c40, %c0_51] : memref<64x384xf32, #tpu.memory_space<vmem>>, vector<8x384xf32>
    %172 = arith.truncf %169 : vector<8x128xf32> to vector<8x128xbf16>
    %cst_52 = arith.constant dense<0.000000e+00> : vector<8x384xf32>
    %173 = tpu.matmul %172, %11, %cst_52 {dimension_numbers = #tpu.dot_dimension_numbers<[1], [0], [0], [1], [0, 0, 1, 1], [], []>} : vector<8x128xbf16>, vector<128x384xbf16>, vector<8x384xf32> -> vector<8x384xf32>
    %174 = vector.extract_strided_slice %171 {offsets = [0, 0], sizes = [8, 128], strides = [1, 1]} : vector<8x384xf32> to vector<8x128xf32>
    %175 = vector.extract_strided_slice %173 {offsets = [0, 0], sizes = [8, 128], strides = [1, 1]} : vector<8x384xf32> to vector<8x128xf32>
    %176 = arith.addf %174, %175 : vector<8x128xf32>
    %177 = arith.negf %176 : vector<8x128xf32>
    %178 = math.exp %177 : vector<8x128xf32>
    %cst_53 = arith.constant 1.000000e+00 : f32
    %179 = vector.broadcast %cst_53 : f32 to vector<8x128xf32>
    %180 = arith.addf %179, %178 : vector<8x128xf32>
    %181 = arith.divf %179, %180 : vector<8x128xf32>
    %182 = vector.extract_strided_slice %171 {offsets = [0, 128], sizes = [8, 128], strides = [1, 1]} : vector<8x384xf32> to vector<8x128xf32>
    %183 = vector.extract_strided_slice %173 {offsets = [0, 128], sizes = [8, 128], strides = [1, 1]} : vector<8x384xf32> to vector<8x128xf32>
    %184 = arith.addf %182, %183 : vector<8x128xf32>
    %185 = arith.negf %184 : vector<8x128xf32>
    %186 = math.exp %185 : vector<8x128xf32>
    %cst_54 = arith.constant 1.000000e+00 : f32
    %187 = vector.broadcast %cst_54 : f32 to vector<8x128xf32>
    %188 = arith.addf %187, %186 : vector<8x128xf32>
    %189 = arith.divf %187, %188 : vector<8x128xf32>
    %190 = vector.extract_strided_slice %171 {offsets = [0, 256], sizes = [8, 128], strides = [1, 1]} : vector<8x384xf32> to vector<8x128xf32>
    %191 = vector.extract_strided_slice %173 {offsets = [0, 256], sizes = [8, 128], strides = [1, 1]} : vector<8x384xf32> to vector<8x128xf32>
    %192 = arith.addf %191, %14 : vector<8x128xf32>
    %193 = arith.mulf %181, %192 : vector<8x128xf32>
    %194 = arith.addf %190, %193 : vector<8x128xf32>
    %195 = math.tanh %194 : vector<8x128xf32>
    %cst_55 = arith.constant 1.000000e+00 : f32
    %196 = vector.broadcast %cst_55 : f32 to vector<8x128xf32>
    %197 = arith.subf %196, %189 : vector<8x128xf32>
    %198 = arith.mulf %197, %195 : vector<8x128xf32>
    %199 = arith.mulf %189, %169 : vector<8x128xf32>
    %200 = arith.addf %198, %199 : vector<8x128xf32>
    %c40_56 = arith.constant 40 : index
    %c0_57 = arith.constant 0 : index
    %201 = vector.load %arg15[%c40_56, %c0_57] : memref<64x128xf32, #tpu.memory_space<vmem>>, vector<8x128xf32>
    tpu.vector_store %arg15[%c40_56, %c0_57], %200 {strides = array<i32>} : memref<64x128xf32, #tpu.memory_space<vmem>>, vector<8x128xf32>,
    %c48 = arith.constant 48 : index
    %c0_58 = arith.constant 0 : index
    %202 = vector.load %arg16[%c48, %c0_58] : memref<64x384xf32, #tpu.memory_space<vmem>>, vector<8x384xf32>
    %203 = arith.truncf %200 : vector<8x128xf32> to vector<8x128xbf16>
    %cst_59 = arith.constant dense<0.000000e+00> : vector<8x384xf32>
    %204 = tpu.matmul %203, %11, %cst_59 {dimension_numbers = #tpu.dot_dimension_numbers<[1], [0], [0], [1], [0, 0, 1, 1], [], []>} : vector<8x128xbf16>, vector<128x384xbf16>, vector<8x384xf32> -> vector<8x384xf32>
    %205 = vector.extract_strided_slice %202 {offsets = [0, 0], sizes = [8, 128], strides = [1, 1]} : vector<8x384xf32> to vector<8x128xf32>
    %206 = vector.extract_strided_slice %204 {offsets = [0, 0], sizes = [8, 128], strides = [1, 1]} : vector<8x384xf32> to vector<8x128xf32>
    %207 = arith.addf %205, %206 : vector<8x128xf32>
    %208 = arith.negf %207 : vector<8x128xf32>
    %209 = math.exp %208 : vector<8x128xf32>
    %cst_60 = arith.constant 1.000000e+00 : f32
    %210 = vector.broadcast %cst_60 : f32 to vector<8x128xf32>
    %211 = arith.addf %210, %209 : vector<8x128xf32>
    %212 = arith.divf %210, %211 : vector<8x128xf32>
    %213 = vector.extract_strided_slice %202 {offsets = [0, 128], sizes = [8, 128], strides = [1, 1]} : vector<8x384xf32> to vector<8x128xf32>
    %214 = vector.extract_strided_slice %204 {offsets = [0, 128], sizes = [8, 128], strides = [1, 1]} : vector<8x384xf32> to vector<8x128xf32>
    %215 = arith.addf %213, %214 : vector<8x128xf32>
    %216 = arith.negf %215 : vector<8x128xf32>
    %217 = math.exp %216 : vector<8x128xf32>
    %cst_61 = arith.constant 1.000000e+00 : f32
    %218 = vector.broadcast %cst_61 : f32 to vector<8x128xf32>
    %219 = arith.addf %218, %217 : vector<8x128xf32>
    %220 = arith.divf %218, %219 : vector<8x128xf32>
    %221 = vector.extract_strided_slice %202 {offsets = [0, 256], sizes = [8, 128], strides = [1, 1]} : vector<8x384xf32> to vector<8x128xf32>
    %222 = vector.extract_strided_slice %204 {offsets = [0, 256], sizes = [8, 128], strides = [1, 1]} : vector<8x384xf32> to vector<8x128xf32>
    %223 = arith.addf %222, %14 : vector<8x128xf32>
    %224 = arith.mulf %212, %223 : vector<8x128xf32>
    %225 = arith.addf %221, %224 : vector<8x128xf32>
    %226 = math.tanh %225 : vector<8x128xf32>
    %cst_62 = arith.constant 1.000000e+00 : f32
    %227 = vector.broadcast %cst_62 : f32 to vector<8x128xf32>
    %228 = arith.subf %227, %220 : vector<8x128xf32>
    %229 = arith.mulf %228, %226 : vector<8x128xf32>
    %230 = arith.mulf %220, %200 : vector<8x128xf32>
    %231 = arith.addf %229, %230 : vector<8x128xf32>
    %c48_63 = arith.constant 48 : index
    %c0_64 = arith.constant 0 : index
    %232 = vector.load %arg15[%c48_63, %c0_64] : memref<64x128xf32, #tpu.memory_space<vmem>>, vector<8x128xf32>
    tpu.vector_store %arg15[%c48_63, %c0_64], %231 {strides = array<i32>} : memref<64x128xf32, #tpu.memory_space<vmem>>, vector<8x128xf32>,
    %c56 = arith.constant 56 : index
    %c0_65 = arith.constant 0 : index
    %233 = vector.load %arg16[%c56, %c0_65] : memref<64x384xf32, #tpu.memory_space<vmem>>, vector<8x384xf32>
    %234 = arith.truncf %231 : vector<8x128xf32> to vector<8x128xbf16>
    %cst_66 = arith.constant dense<0.000000e+00> : vector<8x384xf32>
    %235 = tpu.matmul %234, %11, %cst_66 {dimension_numbers = #tpu.dot_dimension_numbers<[1], [0], [0], [1], [0, 0, 1, 1], [], []>} : vector<8x128xbf16>, vector<128x384xbf16>, vector<8x384xf32> -> vector<8x384xf32>
    %236 = vector.extract_strided_slice %233 {offsets = [0, 0], sizes = [8, 128], strides = [1, 1]} : vector<8x384xf32> to vector<8x128xf32>
    %237 = vector.extract_strided_slice %235 {offsets = [0, 0], sizes = [8, 128], strides = [1, 1]} : vector<8x384xf32> to vector<8x128xf32>
    %238 = arith.addf %236, %237 : vector<8x128xf32>
    %239 = arith.negf %238 : vector<8x128xf32>
    %240 = math.exp %239 : vector<8x128xf32>
    %cst_67 = arith.constant 1.000000e+00 : f32
    %241 = vector.broadcast %cst_67 : f32 to vector<8x128xf32>
    %242 = arith.addf %241, %240 : vector<8x128xf32>
    %243 = arith.divf %241, %242 : vector<8x128xf32>
    %244 = vector.extract_strided_slice %233 {offsets = [0, 128], sizes = [8, 128], strides = [1, 1]} : vector<8x384xf32> to vector<8x128xf32>
    %245 = vector.extract_strided_slice %235 {offsets = [0, 128], sizes = [8, 128], strides = [1, 1]} : vector<8x384xf32> to vector<8x128xf32>
    %246 = arith.addf %244, %245 : vector<8x128xf32>
    %247 = arith.negf %246 : vector<8x128xf32>
    %248 = math.exp %247 : vector<8x128xf32>
    %cst_68 = arith.constant 1.000000e+00 : f32
    %249 = vector.broadcast %cst_68 : f32 to vector<8x128xf32>
    %250 = arith.addf %249, %248 : vector<8x128xf32>
    %251 = arith.divf %249, %250 : vector<8x128xf32>
    %252 = vector.extract_strided_slice %233 {offsets = [0, 256], sizes = [8, 128], strides = [1, 1]} : vector<8x384xf32> to vector<8x128xf32>
    %253 = vector.extract_strided_slice %235 {offsets = [0, 256], sizes = [8, 128], strides = [1, 1]} : vector<8x384xf32> to vector<8x128xf32>
    %254 = arith.addf %253, %14 : vector<8x128xf32>
    %255 = arith.mulf %243, %254 : vector<8x128xf32>
    %256 = arith.addf %252, %255 : vector<8x128xf32>
    %257 = math.tanh %256 : vector<8x128xf32>
    %cst_69 = arith.constant 1.000000e+00 : f32
    %258 = vector.broadcast %cst_69 : f32 to vector<8x128xf32>
    %259 = arith.subf %258, %251 : vector<8x128xf32>
    %260 = arith.mulf %259, %257 : vector<8x128xf32>
    %261 = arith.mulf %251, %231 : vector<8x128xf32>
    %262 = arith.addf %260, %261 : vector<8x128xf32>
    %c56_70 = arith.constant 56 : index
    %c0_71 = arith.constant 0 : index
    %263 = vector.load %arg15[%c56_70, %c0_71] : memref<64x128xf32, #tpu.memory_space<vmem>>, vector<8x128xf32>
    tpu.vector_store %arg15[%c56_70, %c0_71], %262 {strides = array<i32>} : memref<64x128xf32, #tpu.memory_space<vmem>>, vector<8x128xf32>,
    %c0_72 = arith.constant 0 : index
    %c0_73 = arith.constant 0 : index
    %264 = vector.load %arg13[%c0_72, %c0_73] : memref<8x128xf32, #tpu.memory_space<vmem>>, vector<8x128xf32>
    tpu.vector_store %arg13[%c0_72, %c0_73], %262 {strides = array<i32>} : memref<8x128xf32, #tpu.memory_space<vmem>>, vector<8x128xf32>,
    %c0_74 = arith.constant 0 : index
    %c0_75 = arith.constant 0 : index
    %265 = vector.load %arg15[%c0_74, %c0_75] : memref<64x128xf32, #tpu.memory_space<vmem>>, vector<64x128xf32>
    %266 = arith.truncf %265 : vector<64x128xf32> to vector<64x128xbf16>
    %c0_76 = arith.constant 0 : index
    %c0_77 = arith.constant 0 : index
    %267 = vector.load %arg6[%c0_76, %c0_77] : memref<128x384xbf16, #tpu.memory_space<vmem>>, vector<128x384xbf16>
    %cst_78 = arith.constant dense<0.000000e+00> : vector<64x384xf32>
    %268 = tpu.matmul %266, %267, %cst_78 {dimension_numbers = #tpu.dot_dimension_numbers<[1], [0], [0], [1], [0, 0, 1, 1], [], []>} : vector<64x128xbf16>, vector<128x384xbf16>, vector<64x384xf32> -> vector<64x384xf32>
    %c0_79 = arith.constant 0 : index
    %c0_80 = arith.constant 0 : index
    %269 = vector.load %arg8[%c0_79, %c0_80] : memref<1x384xf32, #tpu.memory_space<vmem>>, vector<1x384xf32>
    %270 = vector.broadcast %269 : vector<1x384xf32> to vector<64x384xf32>
    %271 = arith.addf %268, %270 : vector<64x384xf32>
    %c0_81 = arith.constant 0 : index
    %c0_82 = arith.constant 0 : index
    %272 = vector.load %arg16[%c0_81, %c0_82] : memref<64x384xf32, #tpu.memory_space<vmem>>, vector<64x384xf32>
    tpu.vector_store %arg16[%c0_81, %c0_82], %271 {strides = array<i32>} : memref<64x384xf32, #tpu.memory_space<vmem>>, vector<64x384xf32>,
    %c0_83 = arith.constant 0 : index
    %c0_84 = arith.constant 0 : index
    %273 = vector.load %arg7[%c0_83, %c0_84] : memref<128x384xbf16, #tpu.memory_space<vmem>>, vector<128x384xbf16>
    %c0_85 = arith.constant 0 : index
    %c0_86 = arith.constant 0 : index
    %274 = vector.load %arg9[%c0_85, %c0_86] : memref<1x128xf32, #tpu.memory_space<vmem>>, vector<1x128xf32>
    %275 = vector.shape_cast %274 : vector<1x128xf32> to vector<1x128xf32>
    %276 = vector.broadcast %275 : vector<1x128xf32> to vector<8x128xf32>
    %c0_87 = arith.constant 0 : index
    %c0_88 = arith.constant 0 : index
    %277 = vector.load %arg14[%c0_87, %c0_88] : memref<8x128xf32, #tpu.memory_space<vmem>>, vector<8x128xf32>
    %c0_89 = arith.constant 0 : index
    %c0_90 = arith.constant 0 : index
    %278 = vector.load %arg16[%c0_89, %c0_90] : memref<64x384xf32, #tpu.memory_space<vmem>>, vector<8x384xf32>
    %279 = arith.truncf %277 : vector<8x128xf32> to vector<8x128xbf16>
    %cst_91 = arith.constant dense<0.000000e+00> : vector<8x384xf32>
    %280 = tpu.matmul %279, %273, %cst_91 {dimension_numbers = #tpu.dot_dimension_numbers<[1], [0], [0], [1], [0, 0, 1, 1], [], []>} : vector<8x128xbf16>, vector<128x384xbf16>, vector<8x384xf32> -> vector<8x384xf32>
    %281 = vector.extract_strided_slice %278 {offsets = [0, 0], sizes = [8, 128], strides = [1, 1]} : vector<8x384xf32> to vector<8x128xf32>
    %282 = vector.extract_strided_slice %280 {offsets = [0, 0], sizes = [8, 128], strides = [1, 1]} : vector<8x384xf32> to vector<8x128xf32>
    %283 = arith.addf %281, %282 : vector<8x128xf32>
    %284 = arith.negf %283 : vector<8x128xf32>
    %285 = math.exp %284 : vector<8x128xf32>
    %cst_92 = arith.constant 1.000000e+00 : f32
    %286 = vector.broadcast %cst_92 : f32 to vector<8x128xf32>
    %287 = arith.addf %286, %285 : vector<8x128xf32>
    %288 = arith.divf %286, %287 : vector<8x128xf32>
    %289 = vector.extract_strided_slice %278 {offsets = [0, 128], sizes = [8, 128], strides = [1, 1]} : vector<8x384xf32> to vector<8x128xf32>
    %290 = vector.extract_strided_slice %280 {offsets = [0, 128], sizes = [8, 128], strides = [1, 1]} : vector<8x384xf32> to vector<8x128xf32>
    %291 = arith.addf %289, %290 : vector<8x128xf32>
    %292 = arith.negf %291 : vector<8x128xf32>
    %293 = math.exp %292 : vector<8x128xf32>
    %cst_93 = arith.constant 1.000000e+00 : f32
    %294 = vector.broadcast %cst_93 : f32 to vector<8x128xf32>
    %295 = arith.addf %294, %293 : vector<8x128xf32>
    %296 = arith.divf %294, %295 : vector<8x128xf32>
    %297 = vector.extract_strided_slice %278 {offsets = [0, 256], sizes = [8, 128], strides = [1, 1]} : vector<8x384xf32> to vector<8x128xf32>
    %298 = vector.extract_strided_slice %280 {offsets = [0, 256], sizes = [8, 128], strides = [1, 1]} : vector<8x384xf32> to vector<8x128xf32>
    %299 = arith.addf %298, %276 : vector<8x128xf32>
    %300 = arith.mulf %288, %299 : vector<8x128xf32>
    %301 = arith.addf %297, %300 : vector<8x128xf32>
    %302 = math.tanh %301 : vector<8x128xf32>
    %cst_94 = arith.constant 1.000000e+00 : f32
    %303 = vector.broadcast %cst_94 : f32 to vector<8x128xf32>
    %304 = arith.subf %303, %296 : vector<8x128xf32>
    %305 = arith.mulf %304, %302 : vector<8x128xf32>
    %306 = arith.mulf %296, %277 : vector<8x128xf32>
    %307 = arith.addf %305, %306 : vector<8x128xf32>
    %c8_95 = arith.constant 8 : index
    %c0_96 = arith.constant 0 : index
    %308 = vector.load %arg16[%c8_95, %c0_96] : memref<64x384xf32, #tpu.memory_space<vmem>>, vector<8x384xf32>
    %309 = arith.truncf %307 : vector<8x128xf32> to vector<8x128xbf16>
    %cst_97 = arith.constant dense<0.000000e+00> : vector<8x384xf32>
    %310 = tpu.matmul %309, %273, %cst_97 {dimension_numbers = #tpu.dot_dimension_numbers<[1], [0], [0], [1], [0, 0, 1, 1], [], []>} : vector<8x128xbf16>, vector<128x384xbf16>, vector<8x384xf32> -> vector<8x384xf32>
    %311 = vector.extract_strided_slice %308 {offsets = [0, 0], sizes = [8, 128], strides = [1, 1]} : vector<8x384xf32> to vector<8x128xf32>
    %312 = vector.extract_strided_slice %310 {offsets = [0, 0], sizes = [8, 128], strides = [1, 1]} : vector<8x384xf32> to vector<8x128xf32>
    %313 = arith.addf %311, %312 : vector<8x128xf32>
    %314 = arith.negf %313 : vector<8x128xf32>
    %315 = math.exp %314 : vector<8x128xf32>
    %cst_98 = arith.constant 1.000000e+00 : f32
    %316 = vector.broadcast %cst_98 : f32 to vector<8x128xf32>
    %317 = arith.addf %316, %315 : vector<8x128xf32>
    %318 = arith.divf %316, %317 : vector<8x128xf32>
    %319 = vector.extract_strided_slice %308 {offsets = [0, 128], sizes = [8, 128], strides = [1, 1]} : vector<8x384xf32> to vector<8x128xf32>
    %320 = vector.extract_strided_slice %310 {offsets = [0, 128], sizes = [8, 128], strides = [1, 1]} : vector<8x384xf32> to vector<8x128xf32>
    %321 = arith.addf %319, %320 : vector<8x128xf32>
    %322 = arith.negf %321 : vector<8x128xf32>
    %323 = math.exp %322 : vector<8x128xf32>
    %cst_99 = arith.constant 1.000000e+00 : f32
    %324 = vector.broadcast %cst_99 : f32 to vector<8x128xf32>
    %325 = arith.addf %324, %323 : vector<8x128xf32>
    %326 = arith.divf %324, %325 : vector<8x128xf32>
    %327 = vector.extract_strided_slice %308 {offsets = [0, 256], sizes = [8, 128], strides = [1, 1]} : vector<8x384xf32> to vector<8x128xf32>
    %328 = vector.extract_strided_slice %310 {offsets = [0, 256], sizes = [8, 128], strides = [1, 1]} : vector<8x384xf32> to vector<8x128xf32>
    %329 = arith.addf %328, %276 : vector<8x128xf32>
    %330 = arith.mulf %318, %329 : vector<8x128xf32>
    %331 = arith.addf %327, %330 : vector<8x128xf32>
    %332 = math.tanh %331 : vector<8x128xf32>
    %cst_100 = arith.constant 1.000000e+00 : f32
    %333 = vector.broadcast %cst_100 : f32 to vector<8x128xf32>
    %334 = arith.subf %333, %326 : vector<8x128xf32>
    %335 = arith.mulf %334, %332 : vector<8x128xf32>
    %336 = arith.mulf %326, %307 : vector<8x128xf32>
    %337 = arith.addf %335, %336 : vector<8x128xf32>
    %c16_101 = arith.constant 16 : index
    %c0_102 = arith.constant 0 : index
    %338 = vector.load %arg16[%c16_101, %c0_102] : memref<64x384xf32, #tpu.memory_space<vmem>>, vector<8x384xf32>
    %339 = arith.truncf %337 : vector<8x128xf32> to vector<8x128xbf16>
    %cst_103 = arith.constant dense<0.000000e+00> : vector<8x384xf32>
    %340 = tpu.matmul %339, %273, %cst_103 {dimension_numbers = #tpu.dot_dimension_numbers<[1], [0], [0], [1], [0, 0, 1, 1], [], []>} : vector<8x128xbf16>, vector<128x384xbf16>, vector<8x384xf32> -> vector<8x384xf32>
    %341 = vector.extract_strided_slice %338 {offsets = [0, 0], sizes = [8, 128], strides = [1, 1]} : vector<8x384xf32> to vector<8x128xf32>
    %342 = vector.extract_strided_slice %340 {offsets = [0, 0], sizes = [8, 128], strides = [1, 1]} : vector<8x384xf32> to vector<8x128xf32>
    %343 = arith.addf %341, %342 : vector<8x128xf32>
    %344 = arith.negf %343 : vector<8x128xf32>
    %345 = math.exp %344 : vector<8x128xf32>
    %cst_104 = arith.constant 1.000000e+00 : f32
    %346 = vector.broadcast %cst_104 : f32 to vector<8x128xf32>
    %347 = arith.addf %346, %345 : vector<8x128xf32>
    %348 = arith.divf %346, %347 : vector<8x128xf32>
    %349 = vector.extract_strided_slice %338 {offsets = [0, 128], sizes = [8, 128], strides = [1, 1]} : vector<8x384xf32> to vector<8x128xf32>
    %350 = vector.extract_strided_slice %340 {offsets = [0, 128], sizes = [8, 128], strides = [1, 1]} : vector<8x384xf32> to vector<8x128xf32>
    %351 = arith.addf %349, %350 : vector<8x128xf32>
    %352 = arith.negf %351 : vector<8x128xf32>
    %353 = math.exp %352 : vector<8x128xf32>
    %cst_105 = arith.constant 1.000000e+00 : f32
    %354 = vector.broadcast %cst_105 : f32 to vector<8x128xf32>
    %355 = arith.addf %354, %353 : vector<8x128xf32>
    %356 = arith.divf %354, %355 : vector<8x128xf32>
    %357 = vector.extract_strided_slice %338 {offsets = [0, 256], sizes = [8, 128], strides = [1, 1]} : vector<8x384xf32> to vector<8x128xf32>
    %358 = vector.extract_strided_slice %340 {offsets = [0, 256], sizes = [8, 128], strides = [1, 1]} : vector<8x384xf32> to vector<8x128xf32>
    %359 = arith.addf %358, %276 : vector<8x128xf32>
    %360 = arith.mulf %348, %359 : vector<8x128xf32>
    %361 = arith.addf %357, %360 : vector<8x128xf32>
    %362 = math.tanh %361 : vector<8x128xf32>
    %cst_106 = arith.constant 1.000000e+00 : f32
    %363 = vector.broadcast %cst_106 : f32 to vector<8x128xf32>
    %364 = arith.subf %363, %356 : vector<8x128xf32>
    %365 = arith.mulf %364, %362 : vector<8x128xf32>
    %366 = arith.mulf %356, %337 : vector<8x128xf32>
    %367 = arith.addf %365, %366 : vector<8x128xf32>
    %c24_107 = arith.constant 24 : index
    %c0_108 = arith.constant 0 : index
    %368 = vector.load %arg16[%c24_107, %c0_108] : memref<64x384xf32, #tpu.memory_space<vmem>>, vector<8x384xf32>
    %369 = arith.truncf %367 : vector<8x128xf32> to vector<8x128xbf16>
    %cst_109 = arith.constant dense<0.000000e+00> : vector<8x384xf32>
    %370 = tpu.matmul %369, %273, %cst_109 {dimension_numbers = #tpu.dot_dimension_numbers<[1], [0], [0], [1], [0, 0, 1, 1], [], []>} : vector<8x128xbf16>, vector<128x384xbf16>, vector<8x384xf32> -> vector<8x384xf32>
    %371 = vector.extract_strided_slice %368 {offsets = [0, 0], sizes = [8, 128], strides = [1, 1]} : vector<8x384xf32> to vector<8x128xf32>
    %372 = vector.extract_strided_slice %370 {offsets = [0, 0], sizes = [8, 128], strides = [1, 1]} : vector<8x384xf32> to vector<8x128xf32>
    %373 = arith.addf %371, %372 : vector<8x128xf32>
    %374 = arith.negf %373 : vector<8x128xf32>
    %375 = math.exp %374 : vector<8x128xf32>
    %cst_110 = arith.constant 1.000000e+00 : f32
    %376 = vector.broadcast %cst_110 : f32 to vector<8x128xf32>
    %377 = arith.addf %376, %375 : vector<8x128xf32>
    %378 = arith.divf %376, %377 : vector<8x128xf32>
    %379 = vector.extract_strided_slice %368 {offsets = [0, 128], sizes = [8, 128], strides = [1, 1]} : vector<8x384xf32> to vector<8x128xf32>
    %380 = vector.extract_strided_slice %370 {offsets = [0, 128], sizes = [8, 128], strides = [1, 1]} : vector<8x384xf32> to vector<8x128xf32>
    %381 = arith.addf %379, %380 : vector<8x128xf32>
    %382 = arith.negf %381 : vector<8x128xf32>
    %383 = math.exp %382 : vector<8x128xf32>
    %cst_111 = arith.constant 1.000000e+00 : f32
    %384 = vector.broadcast %cst_111 : f32 to vector<8x128xf32>
    %385 = arith.addf %384, %383 : vector<8x128xf32>
    %386 = arith.divf %384, %385 : vector<8x128xf32>
    %387 = vector.extract_strided_slice %368 {offsets = [0, 256], sizes = [8, 128], strides = [1, 1]} : vector<8x384xf32> to vector<8x128xf32>
    %388 = vector.extract_strided_slice %370 {offsets = [0, 256], sizes = [8, 128], strides = [1, 1]} : vector<8x384xf32> to vector<8x128xf32>
    %389 = arith.addf %388, %276 : vector<8x128xf32>
    %390 = arith.mulf %378, %389 : vector<8x128xf32>
    %391 = arith.addf %387, %390 : vector<8x128xf32>
    %392 = math.tanh %391 : vector<8x128xf32>
    %cst_112 = arith.constant 1.000000e+00 : f32
    %393 = vector.broadcast %cst_112 : f32 to vector<8x128xf32>
    %394 = arith.subf %393, %386 : vector<8x128xf32>
    %395 = arith.mulf %394, %392 : vector<8x128xf32>
    %396 = arith.mulf %386, %367 : vector<8x128xf32>
    %397 = arith.addf %395, %396 : vector<8x128xf32>
    %c32_113 = arith.constant 32 : index
    %c0_114 = arith.constant 0 : index
    %398 = vector.load %arg16[%c32_113, %c0_114] : memref<64x384xf32, #tpu.memory_space<vmem>>, vector<8x384xf32>
    %399 = arith.truncf %397 : vector<8x128xf32> to vector<8x128xbf16>
    %cst_115 = arith.constant dense<0.000000e+00> : vector<8x384xf32>
    %400 = tpu.matmul %399, %273, %cst_115 {dimension_numbers = #tpu.dot_dimension_numbers<[1], [0], [0], [1], [0, 0, 1, 1], [], []>} : vector<8x128xbf16>, vector<128x384xbf16>, vector<8x384xf32> -> vector<8x384xf32>
    %401 = vector.extract_strided_slice %398 {offsets = [0, 0], sizes = [8, 128], strides = [1, 1]} : vector<8x384xf32> to vector<8x128xf32>
    %402 = vector.extract_strided_slice %400 {offsets = [0, 0], sizes = [8, 128], strides = [1, 1]} : vector<8x384xf32> to vector<8x128xf32>
    %403 = arith.addf %401, %402 : vector<8x128xf32>
    %404 = arith.negf %403 : vector<8x128xf32>
    %405 = math.exp %404 : vector<8x128xf32>
    %cst_116 = arith.constant 1.000000e+00 : f32
    %406 = vector.broadcast %cst_116 : f32 to vector<8x128xf32>
    %407 = arith.addf %406, %405 : vector<8x128xf32>
    %408 = arith.divf %406, %407 : vector<8x128xf32>
    %409 = vector.extract_strided_slice %398 {offsets = [0, 128], sizes = [8, 128], strides = [1, 1]} : vector<8x384xf32> to vector<8x128xf32>
    %410 = vector.extract_strided_slice %400 {offsets = [0, 128], sizes = [8, 128], strides = [1, 1]} : vector<8x384xf32> to vector<8x128xf32>
    %411 = arith.addf %409, %410 : vector<8x128xf32>
    %412 = arith.negf %411 : vector<8x128xf32>
    %413 = math.exp %412 : vector<8x128xf32>
    %cst_117 = arith.constant 1.000000e+00 : f32
    %414 = vector.broadcast %cst_117 : f32 to vector<8x128xf32>
    %415 = arith.addf %414, %413 : vector<8x128xf32>
    %416 = arith.divf %414, %415 : vector<8x128xf32>
    %417 = vector.extract_strided_slice %398 {offsets = [0, 256], sizes = [8, 128], strides = [1, 1]} : vector<8x384xf32> to vector<8x128xf32>
    %418 = vector.extract_strided_slice %400 {offsets = [0, 256], sizes = [8, 128], strides = [1, 1]} : vector<8x384xf32> to vector<8x128xf32>
    %419 = arith.addf %418, %276 : vector<8x128xf32>
    %420 = arith.mulf %408, %419 : vector<8x128xf32>
    %421 = arith.addf %417, %420 : vector<8x128xf32>
    %422 = math.tanh %421 : vector<8x128xf32>
    %cst_118 = arith.constant 1.000000e+00 : f32
    %423 = vector.broadcast %cst_118 : f32 to vector<8x128xf32>
    %424 = arith.subf %423, %416 : vector<8x128xf32>
    %425 = arith.mulf %424, %422 : vector<8x128xf32>
    %426 = arith.mulf %416, %397 : vector<8x128xf32>
    %427 = arith.addf %425, %426 : vector<8x128xf32>
    %c40_119 = arith.constant 40 : index
    %c0_120 = arith.constant 0 : index
    %428 = vector.load %arg16[%c40_119, %c0_120] : memref<64x384xf32, #tpu.memory_space<vmem>>, vector<8x384xf32>
    %429 = arith.truncf %427 : vector<8x128xf32> to vector<8x128xbf16>
    %cst_121 = arith.constant dense<0.000000e+00> : vector<8x384xf32>
    %430 = tpu.matmul %429, %273, %cst_121 {dimension_numbers = #tpu.dot_dimension_numbers<[1], [0], [0], [1], [0, 0, 1, 1], [], []>} : vector<8x128xbf16>, vector<128x384xbf16>, vector<8x384xf32> -> vector<8x384xf32>
    %431 = vector.extract_strided_slice %428 {offsets = [0, 0], sizes = [8, 128], strides = [1, 1]} : vector<8x384xf32> to vector<8x128xf32>
    %432 = vector.extract_strided_slice %430 {offsets = [0, 0], sizes = [8, 128], strides = [1, 1]} : vector<8x384xf32> to vector<8x128xf32>
    %433 = arith.addf %431, %432 : vector<8x128xf32>
    %434 = arith.negf %433 : vector<8x128xf32>
    %435 = math.exp %434 : vector<8x128xf32>
    %cst_122 = arith.constant 1.000000e+00 : f32
    %436 = vector.broadcast %cst_122 : f32 to vector<8x128xf32>
    %437 = arith.addf %436, %435 : vector<8x128xf32>
    %438 = arith.divf %436, %437 : vector<8x128xf32>
    %439 = vector.extract_strided_slice %428 {offsets = [0, 128], sizes = [8, 128], strides = [1, 1]} : vector<8x384xf32> to vector<8x128xf32>
    %440 = vector.extract_strided_slice %430 {offsets = [0, 128], sizes = [8, 128], strides = [1, 1]} : vector<8x384xf32> to vector<8x128xf32>
    %441 = arith.addf %439, %440 : vector<8x128xf32>
    %442 = arith.negf %441 : vector<8x128xf32>
    %443 = math.exp %442 : vector<8x128xf32>
    %cst_123 = arith.constant 1.000000e+00 : f32
    %444 = vector.broadcast %cst_123 : f32 to vector<8x128xf32>
    %445 = arith.addf %444, %443 : vector<8x128xf32>
    %446 = arith.divf %444, %445 : vector<8x128xf32>
    %447 = vector.extract_strided_slice %428 {offsets = [0, 256], sizes = [8, 128], strides = [1, 1]} : vector<8x384xf32> to vector<8x128xf32>
    %448 = vector.extract_strided_slice %430 {offsets = [0, 256], sizes = [8, 128], strides = [1, 1]} : vector<8x384xf32> to vector<8x128xf32>
    %449 = arith.addf %448, %276 : vector<8x128xf32>
    %450 = arith.mulf %438, %449 : vector<8x128xf32>
    %451 = arith.addf %447, %450 : vector<8x128xf32>
    %452 = math.tanh %451 : vector<8x128xf32>
    %cst_124 = arith.constant 1.000000e+00 : f32
    %453 = vector.broadcast %cst_124 : f32 to vector<8x128xf32>
    %454 = arith.subf %453, %446 : vector<8x128xf32>
    %455 = arith.mulf %454, %452 : vector<8x128xf32>
    %456 = arith.mulf %446, %427 : vector<8x128xf32>
    %457 = arith.addf %455, %456 : vector<8x128xf32>
    %c48_125 = arith.constant 48 : index
    %c0_126 = arith.constant 0 : index
    %458 = vector.load %arg16[%c48_125, %c0_126] : memref<64x384xf32, #tpu.memory_space<vmem>>, vector<8x384xf32>
    %459 = arith.truncf %457 : vector<8x128xf32> to vector<8x128xbf16>
    %cst_127 = arith.constant dense<0.000000e+00> : vector<8x384xf32>
    %460 = tpu.matmul %459, %273, %cst_127 {dimension_numbers = #tpu.dot_dimension_numbers<[1], [0], [0], [1], [0, 0, 1, 1], [], []>} : vector<8x128xbf16>, vector<128x384xbf16>, vector<8x384xf32> -> vector<8x384xf32>
    %461 = vector.extract_strided_slice %458 {offsets = [0, 0], sizes = [8, 128], strides = [1, 1]} : vector<8x384xf32> to vector<8x128xf32>
    %462 = vector.extract_strided_slice %460 {offsets = [0, 0], sizes = [8, 128], strides = [1, 1]} : vector<8x384xf32> to vector<8x128xf32>
    %463 = arith.addf %461, %462 : vector<8x128xf32>
    %464 = arith.negf %463 : vector<8x128xf32>
    %465 = math.exp %464 : vector<8x128xf32>
    %cst_128 = arith.constant 1.000000e+00 : f32
    %466 = vector.broadcast %cst_128 : f32 to vector<8x128xf32>
    %467 = arith.addf %466, %465 : vector<8x128xf32>
    %468 = arith.divf %466, %467 : vector<8x128xf32>
    %469 = vector.extract_strided_slice %458 {offsets = [0, 128], sizes = [8, 128], strides = [1, 1]} : vector<8x384xf32> to vector<8x128xf32>
    %470 = vector.extract_strided_slice %460 {offsets = [0, 128], sizes = [8, 128], strides = [1, 1]} : vector<8x384xf32> to vector<8x128xf32>
    %471 = arith.addf %469, %470 : vector<8x128xf32>
    %472 = arith.negf %471 : vector<8x128xf32>
    %473 = math.exp %472 : vector<8x128xf32>
    %cst_129 = arith.constant 1.000000e+00 : f32
    %474 = vector.broadcast %cst_129 : f32 to vector<8x128xf32>
    %475 = arith.addf %474, %473 : vector<8x128xf32>
    %476 = arith.divf %474, %475 : vector<8x128xf32>
    %477 = vector.extract_strided_slice %458 {offsets = [0, 256], sizes = [8, 128], strides = [1, 1]} : vector<8x384xf32> to vector<8x128xf32>
    %478 = vector.extract_strided_slice %460 {offsets = [0, 256], sizes = [8, 128], strides = [1, 1]} : vector<8x384xf32> to vector<8x128xf32>
    %479 = arith.addf %478, %276 : vector<8x128xf32>
    %480 = arith.mulf %468, %479 : vector<8x128xf32>
    %481 = arith.addf %477, %480 : vector<8x128xf32>
    %482 = math.tanh %481 : vector<8x128xf32>
    %cst_130 = arith.constant 1.000000e+00 : f32
    %483 = vector.broadcast %cst_130 : f32 to vector<8x128xf32>
    %484 = arith.subf %483, %476 : vector<8x128xf32>
    %485 = arith.mulf %484, %482 : vector<8x128xf32>
    %486 = arith.mulf %476, %457 : vector<8x128xf32>
    %487 = arith.addf %485, %486 : vector<8x128xf32>
    %c56_131 = arith.constant 56 : index
    %c0_132 = arith.constant 0 : index
    %488 = vector.load %arg16[%c56_131, %c0_132] : memref<64x384xf32, #tpu.memory_space<vmem>>, vector<8x384xf32>
    %489 = arith.truncf %487 : vector<8x128xf32> to vector<8x128xbf16>
    %cst_133 = arith.constant dense<0.000000e+00> : vector<8x384xf32>
    %490 = tpu.matmul %489, %273, %cst_133 {dimension_numbers = #tpu.dot_dimension_numbers<[1], [0], [0], [1], [0, 0, 1, 1], [], []>} : vector<8x128xbf16>, vector<128x384xbf16>, vector<8x384xf32> -> vector<8x384xf32>
    %491 = vector.extract_strided_slice %488 {offsets = [0, 0], sizes = [8, 128], strides = [1, 1]} : vector<8x384xf32> to vector<8x128xf32>
    %492 = vector.extract_strided_slice %490 {offsets = [0, 0], sizes = [8, 128], strides = [1, 1]} : vector<8x384xf32> to vector<8x128xf32>
    %493 = arith.addf %491, %492 : vector<8x128xf32>
    %494 = arith.negf %493 : vector<8x128xf32>
    %495 = math.exp %494 : vector<8x128xf32>
    %cst_134 = arith.constant 1.000000e+00 : f32
    %496 = vector.broadcast %cst_134 : f32 to vector<8x128xf32>
    %497 = arith.addf %496, %495 : vector<8x128xf32>
    %498 = arith.divf %496, %497 : vector<8x128xf32>
    %499 = vector.extract_strided_slice %488 {offsets = [0, 128], sizes = [8, 128], strides = [1, 1]} : vector<8x384xf32> to vector<8x128xf32>
    %500 = vector.extract_strided_slice %490 {offsets = [0, 128], sizes = [8, 128], strides = [1, 1]} : vector<8x384xf32> to vector<8x128xf32>
    %501 = arith.addf %499, %500 : vector<8x128xf32>
    %502 = arith.negf %501 : vector<8x128xf32>
    %503 = math.exp %502 : vector<8x128xf32>
    %cst_135 = arith.constant 1.000000e+00 : f32
    %504 = vector.broadcast %cst_135 : f32 to vector<8x128xf32>
    %505 = arith.addf %504, %503 : vector<8x128xf32>
    %506 = arith.divf %504, %505 : vector<8x128xf32>
    %507 = vector.extract_strided_slice %488 {offsets = [0, 256], sizes = [8, 128], strides = [1, 1]} : vector<8x384xf32> to vector<8x128xf32>
    %508 = vector.extract_strided_slice %490 {offsets = [0, 256], sizes = [8, 128], strides = [1, 1]} : vector<8x384xf32> to vector<8x128xf32>
    %509 = arith.addf %508, %276 : vector<8x128xf32>
    %510 = arith.mulf %498, %509 : vector<8x128xf32>
    %511 = arith.addf %507, %510 : vector<8x128xf32>
    %512 = math.tanh %511 : vector<8x128xf32>
    %cst_136 = arith.constant 1.000000e+00 : f32
    %513 = vector.broadcast %cst_136 : f32 to vector<8x128xf32>
    %514 = arith.subf %513, %506 : vector<8x128xf32>
    %515 = arith.mulf %514, %512 : vector<8x128xf32>
    %516 = arith.mulf %506, %487 : vector<8x128xf32>
    %517 = arith.addf %515, %516 : vector<8x128xf32>
    %c0_137 = arith.constant 0 : index
    %c0_138 = arith.constant 0 : index
    %518 = vector.load %arg14[%c0_137, %c0_138] : memref<8x128xf32, #tpu.memory_space<vmem>>, vector<8x128xf32>
    tpu.vector_store %arg14[%c0_137, %c0_138], %517 {strides = array<i32>} : memref<8x128xf32, #tpu.memory_space<vmem>>, vector<8x128xf32>,
    %519 = arith.extui %0 : i1 to i32
    %c0_i32_139 = arith.constant 0 : i32
    %520 = arith.cmpi ne, %519, %c0_i32_139 : i32
    scf.if %520 {
      %521 = arith.truncf %517 : vector<8x128xf32> to vector<8x128xbf16>
      %c0_140 = arith.constant 0 : index
      %c0_141 = arith.constant 0 : index
      %522 = vector.load %arg10[%c0_140, %c0_141] : memref<128x128xbf16, #tpu.memory_space<vmem>>, vector<128x128xbf16>
      %cst_142 = arith.constant dense<0.000000e+00> : vector<8x128xf32>
      %523 = tpu.matmul %521, %522, %cst_142 {dimension_numbers = #tpu.dot_dimension_numbers<[1], [0], [0], [1], [0, 0, 1, 1], [], []>} : vector<8x128xbf16>, vector<128x128xbf16>, vector<8x128xf32> -> vector<8x128xf32>
      %c0_143 = arith.constant 0 : index
      %c0_144 = arith.constant 0 : index
      %524 = vector.load %arg11[%c0_143, %c0_144] : memref<1x128xf32, #tpu.memory_space<vmem>>, vector<1x128xf32>
      %525 = vector.broadcast %524 : vector<1x128xf32> to vector<8x128xf32>
      %526 = arith.addf %523, %525 : vector<8x128xf32>
      %cst_145 = arith.constant dense<0xFF800000> : vector<8xf32>
      %527 = vector.multi_reduction <maximumf>, %526, %cst_145 [1] : vector<8x128xf32> to vector<8xf32>
      %528 = vector.shape_cast %527 : vector<8xf32> to vector<8x1xf32>
      %529 = vector.broadcast %528 : vector<8x1xf32> to vector<8x128xf32>
      %530 = arith.subf %526, %529 : vector<8x128xf32>
      %531 = math.exp %530 : vector<8x128xf32>
      %cst_146 = arith.constant dense<0.000000e+00> : vector<8xf32>
      %532 = vector.multi_reduction <add>, %531, %cst_146 [1] : vector<8x128xf32> to vector<8xf32>
      %533 = vector.shape_cast %532 : vector<8xf32> to vector<8x1xf32>
      %534 = vector.broadcast %533 : vector<8x1xf32> to vector<8x128xf32>
      %535 = arith.divf %531, %534 : vector<8x128xf32>
      %c0_147 = arith.constant 0 : index
      %c0_148 = arith.constant 0 : index
      %536 = vector.load %arg12[%c0_147, %c0_148] : memref<8x128xf32, #tpu.memory_space<vmem>>, vector<8x128xf32>
      tpu.vector_store %arg12[%c0_147, %c0_148], %535 {strides = array<i32>} : memref<8x128xf32, #tpu.memory_space<vmem>>, vector<8x128xf32>,
    } else {
    }
    return
  }
  func.func @transform_0(%arg0: i32) -> (i32, i32) {
    %c0_i32 = arith.constant 0 : i32
    %c0_i32_0 = arith.constant 0 : i32
    return %arg0, %c0_i32 : i32, i32
  }
  func.func @transform_1(%arg0: i32) -> (i32, i32) {
    %c0_i32 = arith.constant 0 : i32
    %c0_i32_0 = arith.constant 0 : i32
    %c0_i32_1 = arith.constant 0 : i32
    return %c0_i32, %c0_i32_0 : i32, i32
  }
  func.func @transform_2(%arg0: i32) -> (i32, i32) {
    %c0_i32 = arith.constant 0 : i32
    %c0_i32_0 = arith.constant 0 : i32
    %c0_i32_1 = arith.constant 0 : i32
    return %c0_i32, %c0_i32_0 : i32, i32
  }
  func.func @transform_3(%arg0: i32) -> (i32, i32) {
    %c0_i32 = arith.constant 0 : i32
    %c0_i32_0 = arith.constant 0 : i32
    %c0_i32_1 = arith.constant 0 : i32
    return %c0_i32, %c0_i32_0 : i32, i32
  }
  func.func @transform_4(%arg0: i32) -> (i32, i32) {
    %c0_i32 = arith.constant 0 : i32
    %c0_i32_0 = arith.constant 0 : i32
    %c0_i32_1 = arith.constant 0 : i32
    return %c0_i32, %c0_i32_0 : i32, i32
  }
  func.func @transform_5(%arg0: i32) -> (i32, i32) {
    %c0_i32 = arith.constant 0 : i32
    %c0_i32_0 = arith.constant 0 : i32
    %c0_i32_1 = arith.constant 0 : i32
    return %c0_i32, %c0_i32_0 : i32, i32
  }
  func.func @transform_6(%arg0: i32) -> (i32, i32) {
    %c0_i32 = arith.constant 0 : i32
    %c0_i32_0 = arith.constant 0 : i32
    %c0_i32_1 = arith.constant 0 : i32
    return %c0_i32, %c0_i32_0 : i32, i32
  }
  func.func @transform_7(%arg0: i32) -> (i32, i32) {
    %c0_i32 = arith.constant 0 : i32
    %c0_i32_0 = arith.constant 0 : i32
    %c0_i32_1 = arith.constant 0 : i32
    return %c0_i32, %c0_i32_0 : i32, i32
  }
  func.func @transform_8(%arg0: i32) -> (i32, i32) {
    %c0_i32 = arith.constant 0 : i32
    %c0_i32_0 = arith.constant 0 : i32
    %c0_i32_1 = arith.constant 0 : i32
    return %c0_i32, %c0_i32_0 : i32, i32
  }
  func.func @transform_9(%arg0: i32) -> (i32, i32) {
    %c0_i32 = arith.constant 0 : i32
    %c0_i32_0 = arith.constant 0 : i32
    %c0_i32_1 = arith.constant 0 : i32
    return %c0_i32, %c0_i32_0 : i32, i32
  }
  func.func @transform_10(%arg0: i32) -> (i32, i32) {
    %c0_i32 = arith.constant 0 : i32
    %c0_i32_0 = arith.constant 0 : i32
    %c0_i32_1 = arith.constant 0 : i32
    return %c0_i32, %c0_i32_0 : i32, i32
  }
  func.func @transform_11(%arg0: i32) -> (i32, i32) {
    %c0_i32 = arith.constant 0 : i32
    %c0_i32_0 = arith.constant 0 : i32
    %c0_i32_1 = arith.constant 0 : i32
    return %c0_i32, %c0_i32_0 : i32, i32
  }
}

</mosaic_0001>

<bundles_post_ra>
// kernel: gru_forward.1
= control target key start
LH: loop header
LB: loop body
LE: loop exit
PB: predicated region body
PF: predicated region fallthrough
CT: control target
= control target key end

     0   :  { %16 = vsyncpa [#allocation7], 0  ;;  %s4343_s0 = inlined_call_operand.vmem [shape: bf16[64,16], index: 0, kind: input, shape index: {}]   ;;  %s4344_s1 = inlined_call_operand.vmem [shape: bf16[16,384], index: 1, kind: input, shape index: {}]   ;;  %s4345_s2 = inlined_call_operand.hbm [shape: bf16[128,384], index: 2, kind: input, shape index: {}]   ;;  %s4346_s3 = inlined_call_operand.hbm [shape: f32[1,384], index: 3, kind: input, shape index: {}]   ;;  %s4347_s4 = inlined_call_operand.hbm [shape: f32[1,128], index: 4, kind: input, shape index: {}]   ;;  %s4348_s5 = inlined_call_operand.hbm [shape: bf16[128,384], index: 5, kind: input, shape index: {}]   ;;  %s4349_s6 = inlined_call_operand.hbm [shape: bf16[128,384], index: 6, kind: input, shape index: {}]   ;;  %s4350_s7 = inlined_call_operand.hbm [shape: f32[1,384], index: 7, kind: input, shape index: {}]   ;;  %s4351_s8 = inlined_call_operand.hbm [shape: f32[1,128], index: 8, kind: input, shape index: {}]   ;;  %s4352_s9 = inlined_call_operand.vmem [shape: bf16[128,128], index: 9, kind: input, shape index: {}]   ;;  %s4353_s10 = inlined_call_operand.vmem [shape: f32[1,128], index: 10, kind: input, shape index: {}]   ;;  %s4354_s11 = inlined_call_operand.vmem [shape: f32[8,128], index: 11, kind: output, shape index: {}]  }
   0x1   :  { %17 = vsyncpa [#allocation9], 0 }
   0x2   :  { %18 = vsyncpa [#allocation12], 0  ;;  %s42_s19 = sshll.u32 %s4346_s3, 4  ;;  %s43_s19 = int_to_ptr.hbm [resolvable:$true] %s42_s19 }
   0x3   :  { %19 = vsyncpa [#allocation15], 0  ;;  %s3364_s20 = smov [#allocation8]   ;;  %s63_s24 = sshll.u32 %s4348_s5, 4  ;;  %s64_s24 = int_to_ptr.hbm [resolvable:$true] %s63_s24 }
   0x4   :  { %s44_s21 = sshll.u32 %s3364_s20, 4  ;;  %s3365_s25 = smov [#allocation11]   ;;  %s45_s21 = int_to_ptr.vmem [resolvable:$true] %s44_s21 }
   0x5   :  { %47 = dma.hbm_to_vmem [thread:$0]  %s43_s19, 48, %s45_s21, [#allocation9]  }
   0x6   :  { %s65_s26 = sshll.u32 %s3365_s25, 4  ;;  %s90_s29 = sshll.u32 %s4350_s7, 4  ;;  %s66_s26 = int_to_ptr.vmem [resolvable:$true] %s65_s26  ;;  %s91_s29 = int_to_ptr.hbm [resolvable:$true] %s90_s29 }
   0x7   :  { %s3366_s3 = smov 192   ;;  %s3367_s30 = smov 12  }
   0x8   :  { %71 = dma.hbm_to_vmem [thread:$0]  %s64_s24, 3072, %s66_s26, [#allocation12], %s3366_s3, %s3366_s3, %s3367_s30  }
   0x9   :  { %s28_s14 = sshll.u32 %s4345_s2, 4  ;;  %s3368_s15 = smov [#allocation14]   ;;  %s29_s14 = int_to_ptr.hbm [resolvable:$true] %s28_s14 }
   0xa   :  { %s92_s16 = sshll.u32 %s3368_s15, 4  ;;  %s3369_s5 = smov [#allocation6]   ;;  %s93_s16 = int_to_ptr.vmem [resolvable:$true] %s92_s16 }
   0xb   :  { %95 = dma.hbm_to_vmem [thread:$0]  %s91_s29, 48, %s93_s16, [#allocation15]  }
   0xc   :  { %s30_s17 = sshll.u32 %s3369_s5, 4  ;;  %s53_s7 = sshll.u32 %s4347_s4, 4  ;;  %s31_s17 = int_to_ptr.vmem [resolvable:$true] %s30_s17  ;;  %s54_s7 = int_to_ptr.hbm [resolvable:$true] %s53_s7 }
   0xd   :  { %36 = dma.hbm_to_vmem [thread:$0]  %s29_s14, 3072, %s31_s17, [#allocation7], %s3366_s3, %s3366_s3, %s3367_s30  }
   0xe   :  { %s76_s22 = sshll.u32 %s4349_s6, 4  ;;  %s3370_s23 = smov [#allocation10]   ;;  %s77_s22 = int_to_ptr.hbm [resolvable:$true] %s76_s22 }
   0xf   :  { %s55_s2 = sshll.u32 %s3370_s23, 4  ;;  %s3371_s24 = smov [#allocation13]   ;;  %s56_s2 = int_to_ptr.vmem [resolvable:$true] %s55_s2 }
  0x10   :  { %58 = dma.hbm_to_vmem [thread:$0]  %s54_s7, 16, %s56_s2, [#allocation9]  }
  0x11   :  { %s78_s25 = sshll.u32 %s3371_s24, 4  ;;  %s101_s28 = sshll.u32 %s4351_s8, 4  ;;  %s79_s25 = int_to_ptr.vmem [resolvable:$true] %s78_s25  ;;  %s102_s28 = int_to_ptr.hbm [resolvable:$true] %s101_s28 }
  0x12   :  { %84 = dma.hbm_to_vmem [thread:$0]  %s77_s22, 3072, %s79_s25, [#allocation12], %s3366_s3, %s3366_s3, %s3367_s30  }
  0x13   :  { %s3372_s4 = smov [#allocation16]  }
  0x14   :  { %s103_s29 = sshll.u32 %s3372_s4, 4  ;;  %s104_s29 = int_to_ptr.vmem [resolvable:$true] %s103_s29 }
  0x15   :  { %106 = dma.hbm_to_vmem [thread:$0]  %s102_s28, 16, %s104_s29, [#allocation15]  }
  0x16   :  { %3356 = dma.done.wait [#allocation7], 3072  }
  0x17   :  { %3357 = vsyncadd [#allocation7], 4294964224 }
  0x18   :  { %3358 = dma.done.wait [#allocation9], 64  }
  0x19   :  { %3359 = vsyncadd [#allocation9], 4294967232 }
  0x1a   :  { %3360 = dma.done.wait [#allocation12], 6144  }
  0x1b   :  { %3361 = vsyncadd [#allocation12], 4294961152 }
  0x1c   :  { %3362 = dma.done.wait [#allocation15], 64  }
  0x1d   :  { %3363 = vsyncadd [#allocation15], 4294967232  ;;  %v2655_v0 = vld [vmem:[#allocation6 + $0xa8] sm:$0xf]  ;;  %v2950_v1 = vld [vmem:[#allocation6 + $0xb0] sm:$0xf0] }
  0x1e   :  { %v2643_v2 = vld [vmem:[#allocation6 + $0x90] sm:$0xf]  ;;  %v3455_v3 = vor.u32 %v2950_v1, %v2655_v0  ;;  %v2947_v4 = vld [vmem:[#allocation6 + $0x98] sm:$0xf0]  ;;  %v2547_v5 = vld [vmem:[%s4344_s1] sm:$0xf] }
  0x1f   :  { %v3461_v6 = vor.u32 %v2947_v4, %v2643_v2  ;;  %v2926_v7 = vld [vmem:[%s4344_s1 + $0x8] sm:$0xf0]  ;;  %v2631_v8 = vld [vmem:[#allocation6 + $0x78] sm:$0xf]  ;;  %v2944_v9 = vld [vmem:[#allocation6 + $0x80] sm:$0xf0] }
  0x20   :  { %495 = vmatpush.bf16.msra.mxu3 %v3455_v3  ;;  %v2548_v10 = vor.u32 %v2926_v7, %v2547_v5  ;;  %v3469_v11 = vld [vmem:[%s4343_s0] sm:$0xff]  ;;  %vm202_vm0 = vcmask 130048   ;;  %v3472_v12 = vor.u32 %v2944_v9, %v2631_v8  ;;  %v2941_v14 = vld [vmem:[#allocation6 + $0x68] sm:$0xf0]  ;;  %v2663_v15 = vld [vmem:[#allocation6 + $0xb0] sm:$0xf] }
  0x21   :  { %v2619_v13 = vld [vmem:[#allocation6 + $0x60] sm:$0xf]  ;;  %v2951_v16 = vld [vmem:[#allocation6 + $0xb8] sm:$0xf0]  ;;  %v2651_v18 = vld [vmem:[#allocation6 + $0x98] sm:$0xf] }
  0x22   :  { %222 = vmatpush.bf16.msra.mxu0 %v2548_v10  ;;  %3008 = vmatpush.bf16.msra.mxu1 %v2548_v10  ;;  %v3476_v17 = vor.u32 %v2951_v16, %v2663_v15  ;;  %v2948_v19 = vld [vmem:[#allocation6 + $0xa0] sm:$0xf0]  ;;  %v3481_v20 = vld [vmem:[%s4343_s0 + $0x18] sm:$0xff]  ;;  %v3484_v21 = vor.u32 %v2941_v14, %v2619_v13  ;;  %v2607_v22 = vld [vmem:[#allocation6 + $0x48] sm:$0xf]  ;;  %v4355_v4 = vmov 0.0|0.0  }
  0x23   :  { %v2938_v23 = vld [vmem:[#allocation6 + $0x50] sm:$0xf0]  ;;  %v3487_v24 = vor.u32 %v2948_v19, %v2651_v18  ;;  %v2639_v25 = vld [vmem:[#allocation6 + $0x80] sm:$0xf]  ;;  %v2945_v26 = vld [vmem:[#allocation6 + $0x88] sm:$0xf0] }
  0x24   :  { %496 = vmatpush.bf16.msra.mxu3 %v3461_v6  ;;  %v3492_v27 = vor.u32 %v2938_v23, %v2607_v22  ;;  %v2595_v28 = vld [vmem:[#allocation6 + $0x30] sm:$0xf]  ;;  %v2935_v29 = vld [vmem:[#allocation6 + $0x38] sm:$0xf0]  ;;  %v3495_v30 = vor.u32 %v2945_v26, %v2639_v25  ;;  %v2627_v31 = vld [vmem:[#allocation6 + $0x68] sm:$0xf] }
  0x25   :  { %2557 = vmatmul.msk.bf16.vlgmr.msra.gmra.mxu0 %vm202_vm0, %v3469_v11  ;;  %2560 = vmatmul.msk.bf16.vlgmr.msra.gmra.mxu1 %vm202_vm0, %v3481_v20  ;;  %v2942_v32 = vld [vmem:[#allocation6 + $0x70] sm:$0xf0]  ;;  %v2925_v33 = vld [vmem:[%s4344_s1 + $0x4] sm:$0xf]  ;;  %v2549_v34 = vld [vmem:[%s4344_s1 + $0xc] sm:$0xf0]  ;;  %v3504_v36 = vor.u32 %v2935_v29, %v2595_v28 }
  0x26   :  { %521 = vmatpush.bf16.msrb.mxu0 %v3476_v17  ;;  %v2552_v35 = vor.u32 %v2925_v33, %v2549_v34  ;;  %v2583_v37 = vld [vmem:[#allocation6 + $0x18] sm:$0xf]  ;;  %v3507_v38 = vor.u32 %v2942_v32, %v2627_v31  ;;  %v2932_v39 = vld [vmem:[#allocation6 + $0x20] sm:$0xf0]  ;;  %v2615_v40 = vld [vmem:[#allocation6 + $0x50] sm:$0xf] }
  0x27   :  { %v2939_v41 = vld [vmem:[#allocation6 + $0x58] sm:$0xf0]  ;;  %v3512_v42 = vld [vmem:[%s4343_s0 + $0x8] sm:$0xff]  ;;  %v3516_v43 = vor.u32 %v2932_v39, %v2583_v37  ;;  %v2571_v44 = vld [vmem:[#allocation6] sm:$0xf] }
  0x28   :  { %497 = vmatpush.bf16.msra.mxu3 %v3472_v12  ;;  %251 = vmatpush.bf16.msrb.mxu1 %v2552_v35  ;;  %v3519_v45 = vor.u32 %v2939_v41, %v2615_v40  ;;  %v2929_v46 = vld [vmem:[#allocation6 + $0x8] sm:$0xf0]  ;;  %v2603_v47 = vld [vmem:[#allocation6 + $0x38] sm:$0xf]  ;;  %v2936_v48 = vld [vmem:[#allocation6 + $0x40] sm:$0xf0] }
  0x29   :  { %v2949_v49 = vld [vmem:[#allocation6 + $0xac] sm:$0xf]  ;;  %v2657_v50 = vld [vmem:[#allocation6 + $0xb4] sm:$0xf0]  ;;  %v2555_v51 = vld [vmem:[%s4344_s1 + $0x8] sm:$0xf]  ;;  %v3531_v53 = vor.u32 %v2929_v46, %v2571_v44  ;;  %v3534_v54 = vor.u32 %v2936_v48, %v2603_v47 }
  0x2a   :  { %522 = vmatpush.bf16.msrb.mxu0 %v3487_v24  ;;  %v2927_v52 = vld [vmem:[%s4344_s1 + $0x10] sm:$0xf0]  ;;  %v3536_v56 = vor.u32 %v2949_v49, %v2657_v50  ;;  %v2591_v57 = vld [vmem:[#allocation6 + $0x20] sm:$0xf]  ;;  %v2933_v58 = vld [vmem:[#allocation6 + $0x28] sm:$0xf0] }
  0x2b   :  { %v2556_v55 = vor.u32 %v2927_v52, %v2555_v51  ;;  %v2946_v59 = vld [vmem:[#allocation6 + $0x94] sm:$0xf]  ;;  %v2645_v60 = vld [vmem:[#allocation6 + $0x9c] sm:$0xf0]  ;;  %v3544_v61 = vor.u32 %v2933_v58, %v2591_v57  ;;  %v2579_v63 = vld [vmem:[#allocation6 + $0x8] sm:$0xf] }
  0x2c   :  { %498 = vmatpush.bf16.msra.mxu3 %v3484_v21  ;;  %587 = vmatpush.bf16.msra.mxu1 %v3455_v3  ;;  %v3547_v62 = vor.u32 %v2946_v59, %v2645_v60  ;;  %v2930_v0 = vld [vmem:[#allocation6 + $0x10] sm:$0xf0]  ;;  %v2943_v1 = vld [vmem:[#allocation6 + $0x7c] sm:$0xf]  ;;  %v2633_v2 = vld [vmem:[#allocation6 + $0x84] sm:$0xf0] }
  0x2d   :  { %280 = vmatpush.bf16.msra.mxu2 %v2556_v55  ;;  %v3555_v5 = vor.u32 %v2930_v0, %v2579_v63  ;;  %v3558_v7 = vor.u32 %v2943_v1, %v2633_v2  ;;  %v2940_v8 = vld [vmem:[#allocation6 + $0x64] sm:$0xf]  ;;  %v2621_v9 = vld [vmem:[#allocation6 + $0x6c] sm:$0xf0]  ;;  %v2937_v13 = vld [vmem:[#allocation6 + $0x4c] sm:$0xf] }
  0x2e   :  { %523 = vmatpush.bf16.msrb.mxu0 %v3495_v30  ;;  %v2923_v10 = vld [vmem:[%s4343_s0 + $0x10] sm:$0xff]  ;;  %v2609_v14 = vld [vmem:[#allocation6 + $0x54] sm:$0xf0]  ;;  %v2597_v18 = vld [vmem:[#allocation6 + $0x3c] sm:$0xf0] }
  0x2f   :  { %v3574_v15 = vor.u32 %v2937_v13, %v2609_v14  ;;  %v2934_v16 = vld [vmem:[#allocation6 + $0x34] sm:$0xf]  ;;  %v2931_v22 = vld [vmem:[#allocation6 + $0x1c] sm:$0xf]  ;;  %v2585_v23 = vld [vmem:[#allocation6 + $0x24] sm:$0xf0] }
  0x30   :  { %499 = vmatpush.bf16.msra.mxu3 %v3492_v27  ;;  %588 = vmatpush.bf16.msra.mxu1 %v3461_v6  ;;  %v3582_v19 = vor.u32 %v2934_v16, %v2597_v18  ;;  %v3591_v25 = vor.u32 %v2931_v22, %v2585_v23  ;;  %v2928_v26 = vld [vmem:[#allocation6 + $0x4] sm:$0xf]  ;;  %v2573_v28 = vld [vmem:[#allocation6 + $0xc] sm:$0xf0]  ;;  %v158_v31 = vld [vmem:[#allocation8] sm:$0x7] }
  0x31   :  { %600 = vmatpush.bf16.msrb.mxu2 %v3536_v56  ;;  %v3597_v29 = vor.u32 %v2928_v26, %v2573_v28  ;;  %v3653_v33 = vperm.slane %v158_v31, 0  ;;  %v3671_v59 = vperm.slane %v158_v31, 1  ;;  %v3674_v22 = vld [vmem:[#allocation10] ss:$0 sm:$0xff] }
  0x32   :  { %524 = vmatpush.bf16.msrb.mxu0 %v3507_v38  ;;  %2565 = vmatmul.msk.bf16.vlgmr.msra.gmra.mxu2 %vm202_vm0, %v3469_v11 }
  0x34   :  { %500 = vmatpush.bf16.msra.mxu3 %v3504_v36  ;;  %589 = vmatpush.bf16.msra.mxu1 %v3472_v12 }
  0x35   :  { %2558 = vmatmul.msk.bf16.gmra.mxu0 %vm202_vm0, %v3512_v42  ;;  %2561 = vmatmul.msk.bf16.vlgmr.msrb.gmra.mxu1 %vm202_vm0, %v3469_v11  ;;  %v3567_v11 = vor.u32 %v2940_v8, %v2621_v9 }
  0x36   :  { %525 = vmatpush.bf16.msrb.mxu0 %v3519_v45  ;;  %601 = vmatpush.bf16.msrb.mxu2 %v3547_v62 }
  0x38   :  { %501 = vmatpush.bf16.msra.mxu3 %v3516_v43  ;;  %590 = vmatpush.bf16.msra.mxu1 %v3484_v21 }
  0x3a   :  { %526 = vmatpush.bf16.msrb.mxu0 %v3534_v54  ;;  %602 = vmatpush.bf16.msrb.mxu2 %v3558_v7 }
  0x3c   :  { %502 = vmatpush.bf16.msra.mxu3 %v3531_v53  ;;  %591 = vmatpush.bf16.msra.mxu1 %v3492_v27 }
  0x3e   :  { %527 = vmatpush.bf16.msrb.mxu0 %v3544_v61  ;;  %603 = vmatpush.bf16.msrb.mxu2 %v3567_v11 }
  0x3f   :  { %503 = vmatmul.bf16.vlgmr.msra.gmra.mxu3 %v4355_v4 }
  0x40   :  { %508 = vmatpush.bf16.msrb.mxu3 %v3536_v56  ;;  %592 = vmatpush.bf16.msra.mxu1 %v3504_v36 }
  0x42   :  { %528 = vmatpush.bf16.msrb.mxu0 %v3555_v5  ;;  %604 = vmatpush.bf16.msrb.mxu2 %v3574_v15 }
  0x43   :  { %2566 = vmatmul.msk.bf16.gmra.mxu2 %vm202_vm0, %v3512_v42 }
  0x44   :  { %509 = vmatpush.bf16.msrb.mxu3 %v3547_v62  ;;  %593 = vmatpush.bf16.msra.mxu1 %v3516_v43 }
  0x45   :  { %2559 = vmatmul.msk.bf16.gmra.mxu0 %vm202_vm0, %v2923_v10  ;;  %2562 = vmatmul.msk.bf16.gmra.mxu1 %vm202_vm0, %v3512_v42 }
  0x46   :  { %679 = vmatpush.bf16.msra.mxu0 %v3455_v3  ;;  %605 = vmatpush.bf16.msrb.mxu2 %v3582_v19 }
  0x48   :  { %510 = vmatpush.bf16.msrb.mxu3 %v3558_v7  ;;  %594 = vmatpush.bf16.msra.mxu1 %v3531_v53 }
  0x4a   :  { %680 = vmatpush.bf16.msra.mxu0 %v3461_v6  ;;  %606 = vmatpush.bf16.msrb.mxu2 %v3591_v25 }
  0x4c   :  { %511 = vmatpush.bf16.msrb.mxu3 %v3567_v11  ;;  %692 = vmatpush.bf16.msrb.mxu1 %v3536_v56 }
  0x4e   :  { %681 = vmatpush.bf16.msra.mxu0 %v3472_v12  ;;  %607 = vmatpush.bf16.msrb.mxu2 %v3597_v29 }
  0x50   :  { %512 = vmatpush.bf16.msrb.mxu3 %v3574_v15  ;;  %693 = vmatpush.bf16.msrb.mxu1 %v3547_v62 }
  0x52   :  { %682 = vmatpush.bf16.msra.mxu0 %v3484_v21  ;;  %705 = vmatpush.bf16.msra.mxu2 %v3476_v17 }
  0x53   :  { %2567 = vmatmul.msk.bf16.gmra.mxu2 %vm202_vm0, %v2923_v10 }
  0x54   :  { %513 = vmatpush.bf16.msrb.mxu3 %v3582_v19  ;;  %694 = vmatpush.bf16.msrb.mxu1 %v3558_v7 }
  0x55   :  { %529 = vmatmul.bf16.vlgmr.msrb.gmra.mxu0 %v4355_v4  ;;  %2563 = vmatmul.msk.bf16.gmra.mxu1 %vm202_vm0, %v2923_v10 }
  0x56   :  { %683 = vmatpush.bf16.msra.mxu0 %v3492_v27  ;;  %706 = vmatpush.bf16.msra.mxu2 %v3487_v24 }
  0x58   :  { %514 = vmatpush.bf16.msrb.mxu3 %v3591_v25  ;;  %695 = vmatpush.bf16.msrb.mxu1 %v3567_v11 }
  0x5a   :  { %684 = vmatpush.bf16.msra.mxu0 %v3504_v36  ;;  %707 = vmatpush.bf16.msra.mxu2 %v3495_v30 }
  0x5c   :  { %515 = vmatpush.bf16.msrb.mxu3 %v3597_v29  ;;  %696 = vmatpush.bf16.msrb.mxu1 %v3574_v15 }
  0x5e   :  { %685 = vmatpush.bf16.msra.mxu0 %v3516_v43  ;;  %708 = vmatpush.bf16.msra.mxu2 %v3507_v38 }
  0x5f   :  { %516 = vmatmul.bf16.vlgmr.msrb.gmra.mxu3 %v4355_v4 }
  0x60   :  { %613 = vmatpush.bf16.msra.mxu3 %v3476_v17  ;;  %697 = vmatpush.bf16.msrb.mxu1 %v3582_v19 }
  0x62   :  { %686 = vmatpush.bf16.msra.mxu0 %v3531_v53  ;;  %709 = vmatpush.bf16.msra.mxu2 %v3519_v45 }
  0x63   :  { %2568 = vmatmul.msk.bf16.gmra.mxu2 %vm202_vm0, %v3481_v20 }
  0x64   :  { %614 = vmatpush.bf16.msra.mxu3 %v3487_v24  ;;  %698 = vmatpush.bf16.msrb.mxu1 %v3591_v25 }
  0x65   :  { %2564 = vmatmul.msk.bf16.gmra.mxu1 %vm202_vm0, %v3481_v20 }
  0x66   :  { %784 = vmatpush.bf16.msrb.mxu0 %v3536_v56  ;;  %710 = vmatpush.bf16.msra.mxu2 %v3534_v54 }
  0x68   :  { %615 = vmatpush.bf16.msra.mxu3 %v3495_v30  ;;  %699 = vmatpush.bf16.msrb.mxu1 %v3597_v29 }
  0x6a   :  { %785 = vmatpush.bf16.msrb.mxu0 %v3547_v62  ;;  %711 = vmatpush.bf16.msra.mxu2 %v3544_v61 }
  0x6c   :  { %616 = vmatpush.bf16.msra.mxu3 %v3507_v38 }
  0x6e   :  { %786 = vmatpush.bf16.msrb.mxu0 %v3558_v7  ;;  %712 = vmatpush.bf16.msra.mxu2 %v3555_v5 }
  0x70   :  { %617 = vmatpush.bf16.msra.mxu3 %v3519_v45 }
  0x72   :  { %787 = vmatpush.bf16.msrb.mxu0 %v3567_v11 }
  0x74   :  { %618 = vmatpush.bf16.msra.mxu3 %v3534_v54 }
  0x76   :  { %788 = vmatpush.bf16.msrb.mxu0 %v3574_v15 }
  0x78   :  { %619 = vmatpush.bf16.msra.mxu3 %v3544_v61 }
  0x7a   :  { %789 = vmatpush.bf16.msrb.mxu0 %v3582_v19 }
  0x7c   :  { %620 = vmatpush.bf16.msra.mxu3 %v3555_v5 }
  0x7e   :  { %790 = vmatpush.bf16.msrb.mxu0 %v3591_v25 }
  0x80   :  { %771 = vmatpush.bf16.msrb.mxu3 %v3455_v3 }
  0x82   :  { %791 = vmatpush.bf16.msrb.mxu0 %v3597_v29 }
  0x84   :  { %772 = vmatpush.bf16.msrb.mxu3 %v3461_v6 }
  0x88   :  { %773 = vmatpush.bf16.msrb.mxu3 %v3472_v12 }
  0x8c   :  { %774 = vmatpush.bf16.msrb.mxu3 %v3484_v21 }
  0x90   :  { %775 = vmatpush.bf16.msrb.mxu3 %v3492_v27 }
  0x94   :  { %776 = vmatpush.bf16.msrb.mxu3 %v3504_v36 }
  0x98   :  { %777 = vmatpush.bf16.msrb.mxu3 %v3516_v43 }
  0x9c   :  { %778 = vmatpush.bf16.msrb.mxu3 %v3531_v53 }
  0xa2   :  { %v224_v20 = vpop.f32.mrf.mxu0  ;;  %v239_v34 = vpop.f32.mrf.mxu1 }
  0xa3   :  { %v3656_v35 = vadd.f32 %v239_v34, %v3653_v33  ;;  %v225_v41 = vadd.f32 %v224_v20, %v3653_v33 }
  0xa5   :  { %4357 = vst [vmem:[#allocation21_spill] sm:$0xff] %v3656_v35 }
  0xaa   :  { %v3651_v32 = vpop.f32.mrf.mxu0  ;;  %v3669_v55 = vpop.f32.mrf.mxu1 }
  0xab   :  { %4358 = vst [vmem:[#allocation22_spill] sm:$0xff] %v3669_v55 }
  0xb2   :  { %v229_v37 = vpop.f32.mrf.mxu0  ;;  %v253_v60 = vpop.f32.mrf.mxu1 }
  0xb3   :  { %v3659_v39 = vadd.f32 %v229_v37, %v3653_v33  ;;  %v254_v1 = vadd.f32 %v253_v60, %v3671_v59 }
  0xba   :  { %v3661_v40 = vpop.f32.mrf.mxu0 }
  0xc2   :  { %v504_v42 = vpop.f32.mrf.mxu3  ;;  %v234_v46 = vpop.f32.mrf.mxu0 }
  0xc3   :  { %v534_v44 = vadd.f32 %v504_v42, %v225_v41  ;;  %v3665_v47 = vadd.f32 %v234_v46, %v3653_v33  ;;  %v3677_v41 = vperm.slane %v158_v31, 2 }
  0xc5   :  { %v2665_v48 = vmul.f32 -1.442695, %v534_v44  ;;  %v282_v44 = vpop.f32.mrf.mxu2 }
  0xc7   :  { %3022 = vpow2.f32 %v2665_v48  ;;  %v283_v48 = vadd.f32 %v282_v44, %v3677_v41 }
  0xca   :  { %v506_v49 = vpop.f32.mrf.mxu3  ;;  %v3667_v50 = vpop.f32.mrf.mxu0 }
  0xcd   :  { %v3023_v51 = vpop.eup %3022 }
  0xce   :  { %v538_v52 = vadd.f32 1.0, %v3023_v51 }
  0xd0   :  { %3024 = vrcp.f32 %v538_v52  ;;  %v550_v18 = vand.u32 2147483648, %v538_v52  ;;  %vm544_vm2 = vweird.f32 %v538_v52  ;;  %v548_v23 = vand.u32 2147483647, %v538_v52 }
  0xd2   :  { %v530_v57 = vpop.f32.mrf.mxu0  ;;  %v551_v34 = vor.u32 1.1754944e-38, %v550_v18  ;;  %vm549_vm4 = vcmp.eq.f32.partialorder %v548_v23, 8.507059e+37  ;;  %v255_v18 = vpop.f32.mrf.mxu1 }
  0xd3   :  { %v574_v37 = vadd.f32 %v3674_v22, %v530_v57  ;;  %v284_v23 = vpop.f32.mrf.mxu2 }
  0xd6   :  { %v3025_v58 = vpop.eup %3024 }
  0xd7   :  { %v540_v63 = vmul.f32 %v3025_v58, %v538_v52  ;;  %vm545_vm1 = vweird.f32 %v3025_v58 }
  0xd8   :  { %vm546_vm3 = vmor %vm544_vm2, %vm545_vm1 }
  0xd9   :  { %v541_v2 = vsub.f32 1.0, %v540_v63 }
  0xda   :  { %v532_v0 = vpop.f32.mrf.mxu0 }
  0xdb   :  { %v542_v13 = vmul.f32 %v3025_v58, %v541_v2 }
  0xdd   :  { %v543_v14 = vadd.f32 %v3025_v58, %v542_v13 }
  0xdf   :  { %v547_v28 = vsel %vm546_vm3, %v3025_v58, %v543_v14 }
  0xe0   :  { %v552_v42 = vsel %vm549_vm4, %v551_v34, %v547_v28  ;;  %v3710_v28 = vpop.f32.mrf.mxu2 }
  0xe1   :  { %v575_v46 = vmul.f32 %v574_v37, %v552_v42 }
  0xe2   :  { %v517_v8 = vpop.f32.mrf.mxu3 }
  0xe3   :  { %v554_v9 = vadd.f32 %v517_v8, %v254_v1  ;;  %v576_v60 = vadd.f32 %v575_v46, %v283_v48 }
  0xe5   :  { %v2666_v10 = vmul.f32 -1.442695, %v554_v9 }
  0xe7   :  { %3026 = vpow2.f32 %v2666_v10 }
  0xe8   :  { %v3714_v34 = vpop.f32.mrf.mxu2 }
  0xea   :  { %v519_v16 = vpop.f32.mrf.mxu3 }
  0xed   :  { %v3027_v26 = vpop.eup %3026 }
  0xee   :  { %v558_v20 = vadd.f32 1.0, %v3027_v26  ;;  %v3708_v26 = vpop.f32.mrf.mxu1 }
  0xf0   :  { %3028 = vrcp.f32 %v558_v20  ;;  %v570_v63 = vand.u32 2147483648, %v558_v20  ;;  %v568_v58 = vand.u32 2147483647, %v558_v20  ;;  %vm564_vm6 = vweird.f32 %v558_v20  ;;  %v3718_v42 = vpop.f32.mrf.mxu2 }
  0xf1   :  { %3030 = vtanh.f32 %v576_v60 }
  0xf2   :  { %v571_v57 = vor.u32 1.1754944e-38, %v570_v63  ;;  %vm569_vm8 = vcmp.eq.f32.partialorder %v568_v58, 8.507059e+37 }
  0xf6   :  { %v3029_v49 = vpop.eup %3028 }
  0xf7   :  { %v560_v51 = vmul.f32 %v3029_v49, %v558_v20  ;;  %vm565_vm5 = vweird.f32 %v3029_v49  ;;  %v3031_v9 = vpop.eup %3030  ;;  %v3712_v20 = vpop.f32.mrf.mxu1 }
  0xf8   :  { %vm566_vm7 = vmor %vm564_vm6, %vm565_vm5  ;;  %v3722_v46 = vpop.f32.mrf.mxu2 }
  0xf9   :  { %v561_v52 = vsub.f32 1.0, %v560_v51 }
  0xfb   :  { %v562_v0 = vmul.f32 %v3029_v49, %v561_v52  ;;  %v227_v52 = vadd.f32 %v3651_v32, %v3653_v33 }
  0xfd   :  { %v563_v1 = vadd.f32 %v3029_v49, %v562_v0 }
  0xff   :  { %v567_v31 = vsel %vm566_vm7, %v3029_v49, %v563_v1  ;;  %v3716_v37 = vpop.f32.mrf.mxu1  ;;  %v256_v1 = vadd.f32 %v255_v18, %v3671_v59 }
 0x100   :  { %v572_v2 = vsel %vm569_vm8, %v571_v57, %v567_v31  ;;  %v3726_v49 = vpop.f32.mrf.mxu2 }
 0x101   :  { %v578_v8 = vsub.f32 1.0, %v572_v2  ;;  %v580_v13 = vmul.f32 0.0, %v572_v2  ;;  %4360 = vst [vmem:[#allocation24_spill] sm:$0xff] %v3726_v49 }
 0x103   :  { %v579_v10 = vmul.f32 %v3031_v9, %v578_v8 }
 0x105   :  { %v3680_v14 = vadd.f32 %v580_v13, %v579_v10 }
 0x107   :  { %v586_v16 = vpack.c.bf16 %v3680_v14, %v3680_v14  ;;  %v3720_v44 = vpop.f32.mrf.mxu1 }
 0x108   :  { %v3730_v60 = vpop.f32.mrf.mxu2 }
 0x109   :  { %595 = vmatmul.bf16.vlgmr.msra.gmra.mxu1 %v586_v16  ;;  %608 = vmatmul.bf16.vlgmr.msrb.gmra.mxu2 %v586_v16  ;;  %4362 = vst [vmem:[#allocation26_spill] sm:$0xff] %v3730_v60 }
 0x10a   :  { %621 = vmatmul.bf16.vlgmr.msra.gmra.mxu3 %v586_v16  ;;  %797 = vmatpush.bf16.msra.mxu1 %v3476_v17 }
 0x10b   :  { %863 = vmatpush.bf16.msrb.mxu2 %v3455_v3  ;;  %876 = vmatpush.bf16.msra.mxu3 %v3536_v56 }
 0x10e   :  { %798 = vmatpush.bf16.msra.mxu1 %v3487_v24 }
 0x10f   :  { %864 = vmatpush.bf16.msrb.mxu2 %v3461_v6  ;;  %877 = vmatpush.bf16.msra.mxu3 %v3547_v62  ;;  %v3724_v48 = vpop.f32.mrf.mxu1 }
 0x110   :  { %4359 = vst [vmem:[#allocation23_spill] sm:$0xff] %v3724_v48 }
 0x112   :  { %799 = vmatpush.bf16.msra.mxu1 %v3495_v30 }
 0x113   :  { %865 = vmatpush.bf16.msrb.mxu2 %v3472_v12  ;;  %878 = vmatpush.bf16.msra.mxu3 %v3558_v7 }
 0x116   :  { %800 = vmatpush.bf16.msra.mxu1 %v3507_v38 }
 0x117   :  { %866 = vmatpush.bf16.msrb.mxu2 %v3484_v21  ;;  %879 = vmatpush.bf16.msra.mxu3 %v3567_v11  ;;  %v3728_v51 = vpop.f32.mrf.mxu1 }
 0x118   :  { %4361 = vst [vmem:[#allocation25_spill] sm:$0xff] %v3728_v51 }
 0x11a   :  { %801 = vmatpush.bf16.msra.mxu1 %v3519_v45 }
 0x11b   :  { %867 = vmatpush.bf16.msrb.mxu2 %v3492_v27  ;;  %880 = vmatpush.bf16.msra.mxu3 %v3574_v15 }
 0x11e   :  { %802 = vmatpush.bf16.msra.mxu1 %v3534_v54 }
 0x11f   :  { %868 = vmatpush.bf16.msrb.mxu2 %v3504_v36  ;;  %881 = vmatpush.bf16.msra.mxu3 %v3582_v19 }
 0x122   :  { %803 = vmatpush.bf16.msra.mxu1 %v3544_v61 }
 0x123   :  { %869 = vmatpush.bf16.msrb.mxu2 %v3516_v43  ;;  %882 = vmatpush.bf16.msra.mxu3 %v3591_v25 }
 0x126   :  { %804 = vmatpush.bf16.msra.mxu1 %v3555_v5 }
 0x127   :  { %870 = vmatpush.bf16.msrb.mxu2 %v3531_v53  ;;  %883 = vmatpush.bf16.msra.mxu3 %v3597_v29 }
 0x186   :  { %v596_v63 = vpop.f32.mrf.mxu1 }
 0x187   :  { %v626_v0 = vadd.f32 %v596_v63, %v227_v52 }
 0x189   :  { %v2667_v58 = vmul.f32 -1.442695, %v626_v0 }
 0x18b   :  { %3032 = vpow2.f32 %v2667_v58 }
 0x18c   :  { %v609_v57 = vpop.f32.mrf.mxu2 }
 0x18d   :  { %v646_v31 = vadd.f32 %v609_v57, %v256_v1  ;;  %v622_v2 = vpop.f32.mrf.mxu3 }
 0x18e   :  { %v598_v8 = vpop.f32.mrf.mxu1 }
 0x18f   :  { %v2668_v9 = vmul.f32 -1.442695, %v646_v31 }
 0x191   :  { %v3033_v10 = vpop.eup %3032  ;;  %3034 = vpow2.f32 %v2668_v9 }
 0x192   :  { %v630_v13 = vadd.f32 1.0, %v3033_v10 }
 0x194   :  { %3036 = vrcp.f32 %v630_v13  ;;  %v611_v16 = vpop.f32.mrf.mxu2  ;;  %v642_v0 = vand.u32 2147483648, %v630_v13  ;;  %v640_v58 = vand.u32 2147483647, %v630_v13  ;;  %vm636_vm10 = vweird.f32 %v630_v13 }
 0x195   :  { %v624_v4 = vpop.f32.mrf.mxu3 }
 0x196   :  { %v643_v31 = vor.u32 1.1754944e-38, %v642_v0  ;;  %vm641_vm12 = vcmp.eq.f32.partialorder %v640_v58, 8.507059e+37  ;;  %v666_v4 = vadd.f32 %v3674_v22, %v622_v2 }
 0x197   :  { %v3035_v60 = vpop.eup %3034 }
 0x198   :  { %v650_v55 = vadd.f32 1.0, %v3035_v60  ;;  %v285_v60 = vadd.f32 %v284_v23, %v3677_v41 }
 0x19a   :  { %v3037_v32 = vpop.eup %3036  ;;  %3038 = vrcp.f32 %v650_v55  ;;  %v660_v49 = vand.u32 2147483647, %v650_v55  ;;  %vm656_vm14 = vweird.f32 %v650_v55 }
 0x19b   :  { %v632_v52 = vmul.f32 %v3037_v32, %v630_v13  ;;  %vm637_vm9 = vweird.f32 %v3037_v32 }
 0x19c   :  { %vm638_vm11 = vmor %vm636_vm10, %vm637_vm9  ;;  %vm661_vm0 = vcmp.eq.f32.partialorder %v660_v49, 8.507059e+37 }
 0x19d   :  { %v633_v63 = vsub.f32 1.0, %v632_v52  ;;  %v662_v52 = vand.u32 2147483648, %v650_v55 }
 0x19f   :  { %v634_v18 = vmul.f32 %v3037_v32, %v633_v63  ;;  %v663_v13 = vor.u32 1.1754944e-38, %v662_v52 }
 0x1a0   :  { %v3039_v1 = vpop.eup %3038 }
 0x1a1   :  { %v652_v57 = vmul.f32 %v3039_v1, %v650_v55  ;;  %v635_v8 = vadd.f32 %v3037_v32, %v634_v18  ;;  %vm657_vm13 = vweird.f32 %v3039_v1 }
 0x1a2   :  { %vm658_vm15 = vmor %vm656_vm14, %vm657_vm13 }
 0x1a3   :  { %v653_v9 = vsub.f32 1.0, %v652_v57  ;;  %v639_v10 = vsel %vm638_vm11, %v3037_v32, %v635_v8 }
 0x1a4   :  { %v644_v16 = vsel %vm641_vm12, %v643_v31, %v639_v10 }
 0x1a5   :  { %v654_v51 = vmul.f32 %v3039_v1, %v653_v9  ;;  %v667_v63 = vmul.f32 %v666_v4, %v644_v16 }
 0x1a7   :  { %v655_v35 = vadd.f32 %v3039_v1, %v654_v51  ;;  %v668_v48 = vadd.f32 %v667_v63, %v285_v60 }
 0x1a9   :  { %v659_v18 = vsel %vm658_vm15, %v3039_v1, %v655_v35  ;;  %3040 = vtanh.f32 %v668_v48  ;;  %v259_v35 = vadd.f32 %v3708_v26, %v3671_v59 }
 0x1aa   :  { %v664_v32 = vsel %vm661_vm0, %v663_v13, %v659_v18 }
 0x1ab   :  { %v670_v0 = vsub.f32 1.0, %v664_v32  ;;  %v672_v23 = vmul.f32 %v664_v32, %v3680_v14 }
 0x1af   :  { %v3041_v58 = vpop.eup %3040 }
 0x1b0   :  { %v671_v2 = vmul.f32 %v3041_v58, %v670_v0 }
 0x1b2   :  { %v3738_v57 = vadd.f32 %v672_v23, %v671_v2 }
 0x1b4   :  { %v678_v8 = vpack.c.bf16 %v3738_v57, %v3738_v57 }
 0x1b6   :  { %687 = vmatmul.bf16.vlgmr.msra.gmra.mxu0 %v678_v8  ;;  %700 = vmatmul.bf16.vlgmr.msrb.gmra.mxu1 %v678_v8 }
 0x1b7   :  { %713 = vmatmul.bf16.vlgmr.msra.gmra.mxu2 %v678_v8  ;;  %889 = vmatpush.bf16.msra.mxu0 %v3476_v17 }
 0x1b8   :  { %955 = vmatpush.bf16.msrb.mxu1 %v3455_v3  ;;  %968 = vmatpush.bf16.msra.mxu2 %v3536_v56 }
 0x1bb   :  { %890 = vmatpush.bf16.msra.mxu0 %v3487_v24 }
 0x1bc   :  { %956 = vmatpush.bf16.msrb.mxu1 %v3461_v6  ;;  %969 = vmatpush.bf16.msra.mxu2 %v3547_v62 }
 0x1bf   :  { %891 = vmatpush.bf16.msra.mxu0 %v3495_v30 }
 0x1c0   :  { %957 = vmatpush.bf16.msrb.mxu1 %v3472_v12  ;;  %970 = vmatpush.bf16.msra.mxu2 %v3558_v7 }
 0x1c3   :  { %892 = vmatpush.bf16.msra.mxu0 %v3507_v38 }
 0x1c4   :  { %958 = vmatpush.bf16.msrb.mxu1 %v3484_v21  ;;  %971 = vmatpush.bf16.msra.mxu2 %v3567_v11 }
 0x1c7   :  { %893 = vmatpush.bf16.msra.mxu0 %v3519_v45 }
 0x1c8   :  { %959 = vmatpush.bf16.msrb.mxu1 %v3492_v27  ;;  %972 = vmatpush.bf16.msra.mxu2 %v3574_v15 }
 0x1cb   :  { %894 = vmatpush.bf16.msra.mxu0 %v3534_v54 }
 0x1cc   :  { %960 = vmatpush.bf16.msrb.mxu1 %v3504_v36  ;;  %973 = vmatpush.bf16.msra.mxu2 %v3582_v19 }
 0x1cf   :  { %895 = vmatpush.bf16.msra.mxu0 %v3544_v61 }
 0x1d0   :  { %961 = vmatpush.bf16.msrb.mxu1 %v3516_v43  ;;  %974 = vmatpush.bf16.msra.mxu2 %v3591_v25 }
 0x1d3   :  { %896 = vmatpush.bf16.msra.mxu0 %v3555_v5 }
 0x1d4   :  { %962 = vmatpush.bf16.msrb.mxu1 %v3531_v53  ;;  %975 = vmatpush.bf16.msra.mxu2 %v3597_v29 }
 0x233   :  { %v688_v55 = vpop.f32.mrf.mxu0  ;;  %v701_v48 = vpop.f32.mrf.mxu1 }
 0x234   :  { %v718_v49 = vadd.f32 %v688_v55, %v3659_v39  ;;  %v738_v51 = vadd.f32 %v701_v48, %v259_v35 }
 0x236   :  { %v2669_v1 = vmul.f32 -1.442695, %v718_v49  ;;  %v2670_v31 = vmul.f32 -1.442695, %v738_v51 }
 0x238   :  { %3042 = vpow2.f32 %v2669_v1 }
 0x239   :  { %3044 = vpow2.f32 %v2670_v31 }
 0x23a   :  { %v714_v9 = vpop.f32.mrf.mxu2 }
 0x23b   :  { %v690_v10 = vpop.f32.mrf.mxu0  ;;  %v703_v4 = vpop.f32.mrf.mxu1  ;;  %v758_v51 = vadd.f32 %v3674_v22, %v714_v9 }
 0x23c   :  { %v288_v10 = vadd.f32 %v3710_v28, %v3677_v41 }
 0x23e   :  { %v3043_v60 = vpop.eup %3042 }
 0x23f   :  { %v3045_v16 = vpop.eup %3044  ;;  %v722_v52 = vadd.f32 1.0, %v3043_v60 }
 0x240   :  { %v742_v63 = vadd.f32 1.0, %v3045_v16 }
 0x241   :  { %3046 = vrcp.f32 %v722_v52  ;;  %v734_v2 = vand.u32 2147483648, %v722_v52  ;;  %v732_v8 = vand.u32 2147483647, %v722_v52  ;;  %vm728_vm2 = vweird.f32 %v722_v52 }
 0x242   :  { %3048 = vrcp.f32 %v742_v63  ;;  %v716_v13 = vpop.f32.mrf.mxu2  ;;  %v754_v4 = vand.u32 2147483648, %v742_v63  ;;  %vm748_vm6 = vweird.f32 %v742_v63  ;;  %v752_v16 = vand.u32 2147483647, %v742_v63 }
 0x243   :  { %v735_v48 = vor.u32 1.1754944e-38, %v734_v2  ;;  %vm733_vm4 = vcmp.eq.f32.partialorder %v732_v8, 8.507059e+37 }
 0x244   :  { %vm753_vm8 = vcmp.eq.f32.partialorder %v752_v16, 8.507059e+37 }
 0x247   :  { %v3047_v26 = vpop.eup %3046 }
 0x248   :  { %v3049_v18 = vpop.eup %3048  ;;  %v724_v32 = vmul.f32 %v3047_v26, %v722_v52  ;;  %vm729_vm1 = vweird.f32 %v3047_v26  ;;  %v755_v52 = vor.u32 1.1754944e-38, %v754_v4 }
 0x249   :  { %v744_v0 = vmul.f32 %v3049_v18, %v742_v63  ;;  %vm730_vm3 = vmor %vm728_vm2, %vm729_vm1  ;;  %vm749_vm5 = vweird.f32 %v3049_v18  ;;  %v261_v63 = vadd.f32 %v3712_v20, %v3671_v59 }
 0x24a   :  { %v725_v39 = vsub.f32 1.0, %v724_v32  ;;  %vm750_vm7 = vmor %vm748_vm6, %vm749_vm5 }
 0x24b   :  { %v745_v58 = vsub.f32 1.0, %v744_v0 }
 0x24c   :  { %v726_v23 = vmul.f32 %v3047_v26, %v725_v39 }
 0x24d   :  { %v746_v35 = vmul.f32 %v3049_v18, %v745_v58 }
 0x24e   :  { %v727_v55 = vadd.f32 %v3047_v26, %v726_v23 }
 0x24f   :  { %v747_v1 = vadd.f32 %v3049_v18, %v746_v35 }
 0x250   :  { %v731_v49 = vsel %vm730_vm3, %v3047_v26, %v727_v55  ;;  %v232_v55 = vadd.f32 %v3661_v40, %v3653_v33 }
 0x251   :  { %v736_v31 = vsel %vm733_vm4, %v735_v48, %v731_v49  ;;  %v751_v32 = vsel %vm750_vm7, %v3049_v18, %v747_v1 }
 0x252   :  { %v759_v60 = vmul.f32 %v758_v51, %v736_v31  ;;  %v756_v26 = vsel %vm753_vm8, %v755_v52, %v751_v32 }
 0x253   :  { %v762_v0 = vsub.f32 1.0, %v756_v26  ;;  %v764_v58 = vmul.f32 %v756_v26, %v3738_v57 }
 0x254   :  { %v760_v13 = vadd.f32 %v759_v60, %v288_v10 }
 0x256   :  { %3050 = vtanh.f32 %v760_v13 }
 0x25c   :  { %v3051_v39 = vpop.eup %3050 }
 0x25d   :  { %v763_v9 = vmul.f32 %v3051_v39, %v762_v0 }
 0x25f   :  { %v3773_v2 = vadd.f32 %v764_v58, %v763_v9 }
 0x261   :  { %v770_v28 = vpack.c.bf16 %v3773_v2, %v3773_v2 }
 0x263   :  { %779 = vmatmul.bf16.vlgmr.msrb.gmra.mxu3 %v770_v28  ;;  %792 = vmatmul.bf16.vlgmr.msrb.gmra.mxu0 %v770_v28 }
 0x264   :  { %805 = vmatmul.bf16.vlgmr.msra.gmra.mxu1 %v770_v28  ;;  %981 = vmatpush.bf16.msrb.mxu3 %v3476_v17 }
 0x265   :  { %1047 = vmatpush.bf16.msrb.mxu0 %v3455_v3  ;;  %1060 = vmatpush.bf16.msra.mxu1 %v3536_v56 }
 0x268   :  { %982 = vmatpush.bf16.msrb.mxu3 %v3487_v24 }
 0x269   :  { %1048 = vmatpush.bf16.msrb.mxu0 %v3461_v6  ;;  %1061 = vmatpush.bf16.msra.mxu1 %v3547_v62 }
 0x26c   :  { %983 = vmatpush.bf16.msrb.mxu3 %v3495_v30 }
 0x26d   :  { %1049 = vmatpush.bf16.msrb.mxu0 %v3472_v12  ;;  %1062 = vmatpush.bf16.msra.mxu1 %v3558_v7 }
 0x270   :  { %984 = vmatpush.bf16.msrb.mxu3 %v3507_v38 }
 0x271   :  { %1050 = vmatpush.bf16.msrb.mxu0 %v3484_v21  ;;  %1063 = vmatpush.bf16.msra.mxu1 %v3567_v11 }
 0x274   :  { %985 = vmatpush.bf16.msrb.mxu3 %v3519_v45 }
 0x275   :  { %1051 = vmatpush.bf16.msrb.mxu0 %v3492_v27  ;;  %1064 = vmatpush.bf16.msra.mxu1 %v3574_v15 }
 0x278   :  { %986 = vmatpush.bf16.msrb.mxu3 %v3534_v54 }
 0x279   :  { %1052 = vmatpush.bf16.msrb.mxu0 %v3504_v36  ;;  %1065 = vmatpush.bf16.msra.mxu1 %v3582_v19 }
 0x27c   :  { %987 = vmatpush.bf16.msrb.mxu3 %v3544_v61 }
 0x27d   :  { %1053 = vmatpush.bf16.msrb.mxu0 %v3516_v43  ;;  %1066 = vmatpush.bf16.msra.mxu1 %v3591_v25 }
 0x280   :  { %988 = vmatpush.bf16.msrb.mxu3 %v3555_v5 }
 0x281   :  { %1054 = vmatpush.bf16.msrb.mxu0 %v3531_v53  ;;  %1067 = vmatpush.bf16.msra.mxu1 %v3597_v29 }
 0x2e0   :  { %v793_v18 = vpop.f32.mrf.mxu0 }
 0x2e1   :  { %v830_v23 = vadd.f32 %v793_v18, %v261_v63  ;;  %v806_v8 = vpop.f32.mrf.mxu1 }
 0x2e3   :  { %v2672_v35 = vmul.f32 -1.442695, %v830_v23  ;;  %v850_v23 = vadd.f32 %v3674_v22, %v806_v8 }
 0x2e5   :  { %3052 = vpow2.f32 %v2672_v35 }
 0x2e6   :  { %v780_v48 = vpop.f32.mrf.mxu3 }
 0x2e7   :  { %v810_v49 = vadd.f32 %v780_v48, %v232_v55 }
 0x2e8   :  { %v795_v51 = vpop.f32.mrf.mxu0 }
 0x2e9   :  { %v2671_v1 = vmul.f32 -1.442695, %v810_v49  ;;  %v808_v31 = vpop.f32.mrf.mxu1  ;;  %v290_v49 = vadd.f32 %v3714_v34, %v3677_v41 }
 0x2eb   :  { %v3053_v10 = vpop.eup %3052  ;;  %3054 = vpow2.f32 %v2671_v1 }
 0x2ec   :  { %v834_v4 = vadd.f32 1.0, %v3053_v10 }
 0x2ee   :  { %v782_v60 = vpop.f32.mrf.mxu3  ;;  %3056 = vrcp.f32 %v834_v4  ;;  %v846_v51 = vand.u32 2147483648, %v834_v4  ;;  %vm840_vm14 = vweird.f32 %v834_v4  ;;  %v844_v31 = vand.u32 2147483647, %v834_v4 }
 0x2f0   :  { %vm845_vm0 = vcmp.eq.f32.partialorder %v844_v31, 8.507059e+37 }
 0x2f1   :  { %v3055_v16 = vpop.eup %3054 }
 0x2f2   :  { %v814_v20 = vadd.f32 1.0, %v3055_v16  ;;  %v847_v16 = vor.u32 1.1754944e-38, %v846_v51 }
 0x2f4   :  { %3058 = vrcp.f32 %v814_v20  ;;  %v3057_v13 = vpop.eup %3056  ;;  %v826_v39 = vand.u32 2147483648, %v814_v20  ;;  %v824_v58 = vand.u32 2147483647, %v814_v20  ;;  %vm820_vm10 = vweird.f32 %v814_v20 }
 0x2f5   :  { %v836_v32 = vmul.f32 %v3057_v13, %v834_v4  ;;  %vm841_vm13 = vweird.f32 %v3057_v13 }
 0x2f6   :  { %v827_v18 = vor.u32 1.1754944e-38, %v826_v39  ;;  %vm825_vm12 = vcmp.eq.f32.partialorder %v824_v58, 8.507059e+37  ;;  %vm842_vm15 = vmor %vm840_vm14, %vm841_vm13 }
 0x2f7   :  { %v837_v0 = vsub.f32 1.0, %v836_v32 }
 0x2f9   :  { %v838_v28 = vmul.f32 %v3057_v13, %v837_v0 }
 0x2fa   :  { %v3059_v52 = vpop.eup %3058 }
 0x2fb   :  { %v816_v26 = vmul.f32 %v3059_v52, %v814_v20  ;;  %vm821_vm9 = vweird.f32 %v3059_v52  ;;  %v839_v55 = vadd.f32 %v3057_v13, %v838_v28 }
 0x2fc   :  { %vm822_vm11 = vmor %vm820_vm10, %vm821_vm9 }
 0x2fd   :  { %v817_v40 = vsub.f32 1.0, %v816_v26  ;;  %v843_v60 = vsel %vm842_vm15, %v3057_v13, %v839_v55 }
 0x2fe   :  { %v848_v20 = vsel %vm845_vm0, %v847_v16, %v843_v60 }
 0x2ff   :  { %v818_v9 = vmul.f32 %v3059_v52, %v817_v40  ;;  %v854_v8 = vsub.f32 1.0, %v848_v20  ;;  %v856_v26 = vmul.f32 %v848_v20, %v3773_v2 }
 0x301   :  { %v819_v63 = vadd.f32 %v3059_v52, %v818_v9 }
 0x303   :  { %v823_v35 = vsel %vm822_vm11, %v3059_v52, %v819_v63 }
 0x304   :  { %v828_v48 = vsel %vm825_vm12, %v827_v18, %v823_v35 }
 0x305   :  { %v851_v1 = vmul.f32 %v850_v23, %v828_v48 }
 0x307   :  { %v852_v10 = vadd.f32 %v851_v1, %v290_v49  ;;  %v293_v49 = vadd.f32 %v3718_v42, %v3677_v41 }
 0x309   :  { %3060 = vtanh.f32 %v852_v10 }
 0x30f   :  { %v3061_v32 = vpop.eup %3060 }
 0x310   :  { %v855_v52 = vmul.f32 %v3061_v32, %v854_v8 }
 0x312   :  { %v3809_v0 = vadd.f32 %v856_v26, %v855_v52 }
 0x314   :  { %v862_v34 = vpack.c.bf16 %v3809_v0, %v3809_v0 }
 0x316   :  { %871 = vmatmul.bf16.vlgmr.msrb.gmra.mxu2 %v862_v34  ;;  %884 = vmatmul.bf16.vlgmr.msra.gmra.mxu3 %v862_v34 }
 0x317   :  { %897 = vmatmul.bf16.vlgmr.msra.gmra.mxu0 %v862_v34  ;;  %1073 = vmatpush.bf16.msrb.mxu2 %v3476_v17 }
 0x318   :  { %1139 = vmatpush.bf16.msra.mxu3 %v3455_v3  ;;  %1152 = vmatpush.bf16.msra.mxu0 %v3536_v56 }
 0x31b   :  { %1074 = vmatpush.bf16.msrb.mxu2 %v3487_v24 }
 0x31c   :  { %1140 = vmatpush.bf16.msra.mxu3 %v3461_v6  ;;  %1153 = vmatpush.bf16.msra.mxu0 %v3547_v62  ;;  %v264_v6 = vadd.f32 %v3716_v37, %v3671_v59 }
 0x31f   :  { %1075 = vmatpush.bf16.msrb.mxu2 %v3495_v30 }
 0x320   :  { %1141 = vmatpush.bf16.msra.mxu3 %v3472_v12  ;;  %1154 = vmatpush.bf16.msra.mxu0 %v3558_v7 }
 0x323   :  { %1076 = vmatpush.bf16.msrb.mxu2 %v3507_v38 }
 0x324   :  { %1142 = vmatpush.bf16.msra.mxu3 %v3484_v21  ;;  %1155 = vmatpush.bf16.msra.mxu0 %v3567_v11 }
 0x327   :  { %1077 = vmatpush.bf16.msrb.mxu2 %v3519_v45 }
 0x328   :  { %1143 = vmatpush.bf16.msra.mxu3 %v3492_v27  ;;  %1156 = vmatpush.bf16.msra.mxu0 %v3574_v15 }
 0x32b   :  { %1078 = vmatpush.bf16.msrb.mxu2 %v3534_v54 }
 0x32c   :  { %1144 = vmatpush.bf16.msra.mxu3 %v3504_v36  ;;  %1157 = vmatpush.bf16.msra.mxu0 %v3582_v19 }
 0x32f   :  { %1079 = vmatpush.bf16.msrb.mxu2 %v3544_v61 }
 0x330   :  { %1145 = vmatpush.bf16.msra.mxu3 %v3516_v43  ;;  %1158 = vmatpush.bf16.msra.mxu0 %v3591_v25 }
 0x333   :  { %1080 = vmatpush.bf16.msrb.mxu2 %v3555_v5 }
 0x334   :  { %1146 = vmatpush.bf16.msra.mxu3 %v3531_v53  ;;  %1159 = vmatpush.bf16.msra.mxu0 %v3597_v29 }
 0x394   :  { %v898_v3 = vpop.f32.mrf.mxu0 }
 0x395   :  { %v942_v23 = vadd.f32 %v3674_v22, %v898_v3  ;;  %v237_v3 = vadd.f32 %v3667_v50, %v3653_v33  ;;  %v2968_v50 = vld [vmem:[#allocation11 + $0x80] sm:$0xf0] }
 0x399   :  { %v872_v12 = vpop.f32.mrf.mxu2  ;;  %v885_v21 = vpop.f32.mrf.mxu3 }
 0x39a   :  { %v902_v27 = vadd.f32 %v872_v12, %v3665_v47  ;;  %v922_v36 = vadd.f32 %v885_v21, %v264_v6  ;;  %v2767_v6 = vld [vmem:[#allocation11 + $0xa8] sm:$0xf]  ;;  %v2974_v12 = vld [vmem:[#allocation11 + $0xb0] sm:$0xf0] }
 0x39b   :  { %v2768_v21 = vor.u32 %v2974_v12, %v2767_v6 }
 0x39c   :  { %v2673_v56 = vmul.f32 -1.442695, %v902_v27  ;;  %v2674_v62 = vmul.f32 -1.442695, %v922_v36  ;;  %v900_v43 = vpop.f32.mrf.mxu0  ;;  %v2755_v27 = vld [vmem:[#allocation11 + $0x90] sm:$0xf] }
 0x39e   :  { %3062 = vpow2.f32 %v2673_v56  ;;  %v2743_v56 = vld [vmem:[#allocation11 + $0x78] sm:$0xf] }
 0x39f   :  { %3064 = vpow2.f32 %v2674_v62  ;;  %v2744_v43 = vor.u32 %v2968_v50, %v2743_v56  ;;  %v3870_v56 = vpack.c.bf16 %v3738_v57, %v3680_v14  ;;  %v3875_v50 = vpack.c.bf16 %v3809_v0, %v3773_v2  ;;  %v2851_v14 = vld [vmem:[#allocation13 + $0x90] sm:$0xf]  ;;  %v2995_v57 = vld [vmem:[#allocation13 + $0x98] sm:$0xf0]  ;;  %v2839_v2 = vld [vmem:[#allocation13 + $0x78] sm:$0xf] }
 0x3a1   :  { %v874_v7 = vpop.f32.mrf.mxu2  ;;  %v887_v11 = vpop.f32.mrf.mxu3 }
 0x3a2   :  { %v2731_v11 = vld [vmem:[#allocation11 + $0x60] sm:$0xf] }
 0x3a4   :  { %v3063_v15 = vpop.eup %3062 }
 0x3a5   :  { %v3065_v53 = vpop.eup %3064  ;;  %v906_v19 = vadd.f32 1.0, %v3063_v15  ;;  %v2965_v15 = vld [vmem:[#allocation11 + $0x68] sm:$0xf0] }
 0x3a6   :  { %v926_v25 = vadd.f32 1.0, %v3065_v53 }
 0x3a7   :  { %3066 = vrcp.f32 %v906_v19  ;;  %v918_v47 = vand.u32 2147483648, %v906_v19  ;;  %v916_v58 = vand.u32 2147483647, %v906_v19  ;;  %vm912_vm2 = vweird.f32 %v906_v19 }
 0x3a8   :  { %3068 = vrcp.f32 %v926_v25  ;;  %v938_v1 = vand.u32 2147483648, %v926_v25  ;;  %vm932_vm6 = vweird.f32 %v926_v25  ;;  %v936_v31 = vand.u32 2147483647, %v926_v25 }
 0x3a9   :  { %v919_v18 = vor.u32 1.1754944e-38, %v918_v47  ;;  %vm917_vm4 = vcmp.eq.f32.partialorder %v916_v58, 8.507059e+37  ;;  %v2707_v47 = vld [vmem:[#allocation11 + $0x30] sm:$0xf] }
 0x3aa   :  { %v939_v16 = vor.u32 1.1754944e-38, %v938_v1  ;;  %vm937_vm8 = vcmp.eq.f32.partialorder %v936_v31, 8.507059e+37 }
 0x3ad   :  { %v3067_v29 = vpop.eup %3066 }
 0x3ae   :  { %v3069_v37 = vpop.eup %3068  ;;  %v908_v4 = vmul.f32 %v3067_v29, %v906_v19  ;;  %vm913_vm1 = vweird.f32 %v3067_v29  ;;  %v2732_v19 = vor.u32 %v2965_v15, %v2731_v11  ;;  %v3886_v15 = vor.u32 %v2995_v57, %v2851_v14 }
 0x3af   :  { %v928_v13 = vmul.f32 %v3069_v37, %v926_v25  ;;  %vm914_vm3 = vmor %vm912_vm2, %vm913_vm1  ;;  %vm933_vm5 = vweird.f32 %v3069_v37 }
 0x3b0   :  { %v909_v40 = vsub.f32 1.0, %v908_v4  ;;  %vm934_vm7 = vmor %vm932_vm6, %vm933_vm5  ;;  %v2962_v4 = vld [vmem:[#allocation11 + $0x50] sm:$0xf0] }
 0x3b1   :  { %v929_v39 = vsub.f32 1.0, %v928_v13 }
 0x3b2   :  { %v910_v9 = vmul.f32 %v3067_v29, %v909_v40 }
 0x3b3   :  { %v930_v28 = vmul.f32 %v3069_v37, %v929_v39  ;;  %v2959_v39 = vld [vmem:[#allocation11 + $0x38] sm:$0xf0] }
 0x3b4   :  { %v911_v63 = vadd.f32 %v3067_v29, %v910_v9  ;;  %v2708_v58 = vor.u32 %v2959_v39, %v2707_v47 }
 0x3b5   :  { %v931_v48 = vadd.f32 %v3069_v37, %v930_v28  ;;  %v2695_v28 = vld [vmem:[#allocation11 + $0x18] sm:$0xf] }
 0x3b6   :  { %v915_v35 = vsel %vm914_vm3, %v3067_v29, %v911_v63  ;;  %v2956_v63 = vld [vmem:[#allocation11 + $0x20] sm:$0xf0] }
 0x3b7   :  { %v920_v55 = vsel %vm917_vm4, %v919_v18, %v915_v35  ;;  %v935_v60 = vsel %vm934_vm7, %v3069_v37, %v931_v48  ;;  %v2719_v37 = vld [vmem:[#allocation11 + $0x48] sm:$0xf]  ;;  %v2696_v35 = vor.u32 %v2956_v63, %v2695_v28  ;;  %v2683_v48 = vld [vmem:[#allocation11] sm:$0xf] }
 0x3b8   :  { %v943_v51 = vmul.f32 %v942_v23, %v920_v55  ;;  %v940_v20 = vsel %vm937_vm8, %v939_v16, %v935_v60  ;;  %v2720_v13 = vor.u32 %v2962_v4, %v2719_v37  ;;  %v2973_v37 = vld [vmem:[#allocation11 + $0xac] sm:$0xf]  ;;  %v2769_v4 = vld [vmem:[#allocation11 + $0xb4] sm:$0xf0] }
 0x3b9   :  { %v946_v8 = vsub.f32 1.0, %v940_v20  ;;  %v948_v26 = vmul.f32 %v940_v20, %v3809_v0  ;;  %v2992_v0 = vld [vmem:[#allocation13 + $0x80] sm:$0xf0]  ;;  %v2772_v39 = vor.u32 %v2973_v37, %v2769_v4  ;;  %v2727_v4 = vld [vmem:[#allocation11 + $0x50] sm:$0xf] }
 0x3ba   :  { %v944_v10 = vadd.f32 %v943_v51, %v293_v49  ;;  %v2953_v49 = vld [vmem:[#allocation11 + $0x8] sm:$0xf0] }
 0x3bb   :  { %v2684_v60 = vor.u32 %v2953_v49, %v2683_v48 }
 0x3bc   :  { %3070 = vtanh.f32 %v944_v10 }
 0x3c2   :  { %v3071_v32 = vpop.eup %3070 }
 0x3c3   :  { %v947_v52 = vmul.f32 %v3071_v32, %v946_v8 }
 0x3c5   :  { %v3844_v34 = vadd.f32 %v948_v26, %v947_v52 }
 0x3c7   :  { %v954_v42 = vpack.c.bf16 %v3844_v34, %v3844_v34 }
 0x3c9   :  { %963 = vmatmul.bf16.vlgmr.msrb.gmra.mxu1 %v954_v42  ;;  %976 = vmatmul.bf16.vlgmr.msra.gmra.mxu2 %v954_v42 }
 0x3ca   :  { %989 = vmatmul.bf16.vlgmr.msrb.gmra.mxu3 %v954_v42  ;;  %1165 = vmatpush.bf16.msrb.mxu1 %v3476_v17  ;;  %v295_v42 = vadd.f32 %v3722_v46, %v3677_v41 }
 0x3cb   :  { %1408 = vmatpush.bf16.msra.mxu2 %v2768_v21  ;;  %1437 = vmatpush.bf16.msrb.mxu3 %v2772_v39  ;;  %v2709_v39 = vld [vmem:[#allocation11 + $0x3c] sm:$0xf0] }
 0x3ce   :  { %1166 = vmatpush.bf16.msrb.mxu1 %v3487_v24 }
 0x3d2   :  { %1167 = vmatpush.bf16.msrb.mxu1 %v3495_v30 }
 0x3d6   :  { %1168 = vmatpush.bf16.msrb.mxu1 %v3507_v38  ;;  %v2971_v38 = vld [vmem:[#allocation11 + $0x98] sm:$0xf0] }
 0x3d7   :  { %v2756_v36 = vor.u32 %v2971_v38, %v2755_v27 }
 0x3d9   :  { %1409 = vmatpush.bf16.msra.mxu2 %v2756_v36 }
 0x3da   :  { %1169 = vmatpush.bf16.msrb.mxu1 %v3519_v45  ;;  %v266_v45 = vadd.f32 %v3720_v44, %v3671_v59 }
 0x3dd   :  { %1410 = vmatpush.bf16.msra.mxu2 %v2744_v43  ;;  %v2863_v43 = vld [vmem:[#allocation13 + $0xa8] sm:$0xf] }
 0x3de   :  { %1170 = vmatpush.bf16.msrb.mxu1 %v3534_v54 }
 0x3e1   :  { %1411 = vmatpush.bf16.msra.mxu2 %v2732_v19  ;;  %v2989_v19 = vld [vmem:[#allocation13 + $0x68] sm:$0xf0] }
 0x3e2   :  { %1171 = vmatpush.bf16.msrb.mxu1 %v3544_v61 }
 0x3e5   :  { %1412 = vmatpush.bf16.msra.mxu2 %v2720_v13  ;;  %v2775_v13 = vld [vmem:[#allocation11 + $0xb0] sm:$0xf] }
 0x3e6   :  { %1172 = vmatpush.bf16.msrb.mxu1 %v3555_v5 }
 0x3e9   :  { %1413 = vmatpush.bf16.msra.mxu2 %v2708_v58  ;;  %v4364_v58 = vld [vmem:[#allocation21_spill] sm:$0xff] }
 0x3ed   :  { %1414 = vmatpush.bf16.msra.mxu2 %v2696_v35  ;;  %v2986_v35 = vld [vmem:[#allocation13 + $0x50] sm:$0xf0] }
 0x3f1   :  { %1415 = vmatpush.bf16.msra.mxu2 %v2684_v60 }
 0x446   :  { %v964_v17 = vpop.f32.mrf.mxu1 }
 0x447   :  { %v994_v24 = vadd.f32 %v964_v17, %v237_v3 }
 0x449   :  { %v2675_v30 = vmul.f32 -1.442695, %v994_v24 }
 0x44b   :  { %3072 = vpow2.f32 %v2675_v30 }
 0x44c   :  { %v977_v54 = vpop.f32.mrf.mxu2 }
 0x44d   :  { %v1014_v61 = vadd.f32 %v977_v54, %v266_v45  ;;  %v990_v5 = vpop.f32.mrf.mxu3 }
 0x44e   :  { %v966_v62 = vpop.f32.mrf.mxu1  ;;  %v1034_v26 = vadd.f32 %v3674_v22, %v990_v5 }
 0x44f   :  { %v2676_v7 = vmul.f32 -1.442695, %v1014_v61 }
 0x451   :  { %v3073_v53 = vpop.eup %3072  ;;  %3074 = vpow2.f32 %v2676_v7  ;;  %v2998_v7 = vld [vmem:[#allocation13 + $0xb0] sm:$0xf0] }
 0x452   :  { %v998_v25 = vadd.f32 1.0, %v3073_v53  ;;  %v3883_v11 = vor.u32 %v2998_v7, %v2863_v43  ;;  %v3889_v53 = vor.u32 %v2992_v0, %v2839_v2  ;;  %v2779_v2 = vld [vmem:[#allocation13] sm:$0xf] }
 0x454   :  { %3076 = vrcp.f32 %v998_v25  ;;  %v979_v29 = vpop.f32.mrf.mxu2  ;;  %v1010_v51 = vand.u32 2147483648, %v998_v25  ;;  %v1008_v31 = vand.u32 2147483647, %v998_v25  ;;  %vm1004_vm10 = vweird.f32 %v998_v25 }
 0x455   :  { %v992_v44 = vpop.f32.mrf.mxu3 }
 0x456   :  { %v1011_v8 = vor.u32 1.1754944e-38, %v1010_v51  ;;  %vm1009_vm12 = vcmp.eq.f32.partialorder %v1008_v31, 8.507059e+37  ;;  %v2970_v51 = vld [vmem:[#allocation11 + $0x94] sm:$0xf]  ;;  %v2763_v31 = vld [vmem:[#allocation11 + $0x98] sm:$0xf] }
 0x457   :  { %v3075_v40 = vpop.eup %3074 }
 0x458   :  { %v1018_v9 = vadd.f32 1.0, %v3075_v40 }
 0x45a   :  { %v3077_v18 = vpop.eup %3076  ;;  %3078 = vrcp.f32 %v1018_v9  ;;  %v1030_v12 = vand.u32 2147483648, %v1018_v9  ;;  %v1028_v21 = vand.u32 2147483647, %v1018_v9  ;;  %vm1024_vm14 = vweird.f32 %v1018_v9 }
 0x45b   :  { %v1000_v23 = vmul.f32 %v3077_v18, %v998_v25  ;;  %vm1005_vm9 = vweird.f32 %v3077_v18  ;;  %v4363_v25 = vld [vmem:[#allocation23_spill] sm:$0xff] }
 0x45c   :  { %vm1006_vm11 = vmor %vm1004_vm10, %vm1005_vm9  ;;  %v1031_v27 = vor.u32 1.1754944e-38, %v1030_v12  ;;  %vm1029_vm0 = vcmp.eq.f32.partialorder %v1028_v21, 8.507059e+37  ;;  %v269_v29 = vadd.f32 %v4363_v25, %v3671_v59  ;;  %v2969_v21 = vld [vmem:[#allocation11 + $0x88] sm:$0xf0] }
 0x45d   :  { %v1001_v55 = vsub.f32 1.0, %v1000_v23  ;;  %v2815_v23 = vld [vmem:[#allocation13 + $0x48] sm:$0xf]  ;;  %v2961_v25 = vld [vmem:[#allocation11 + $0x4c] sm:$0xf] }
 0x45e   :  { %v3898_v49 = vor.u32 %v2986_v35, %v2815_v23 }
 0x45f   :  { %v1002_v1 = vmul.f32 %v3077_v18, %v1001_v55 }
 0x460   :  { %v3079_v10 = vpop.eup %3078 }
 0x461   :  { %v1020_v16 = vmul.f32 %v3079_v10, %v1018_v9  ;;  %v1003_v20 = vadd.f32 %v3077_v18, %v1002_v1  ;;  %vm1025_vm13 = vweird.f32 %v3079_v10  ;;  %v2975_v9 = vld [vmem:[#allocation11 + $0xb8] sm:$0xf0]  ;;  %v2757_v1 = vld [vmem:[#allocation11 + $0x9c] sm:$0xf0] }
 0x462   :  { %vm1026_vm15 = vmor %vm1024_vm14, %vm1025_vm13  ;;  %v2760_v60 = vor.u32 %v2970_v51, %v2757_v1  ;;  %v2955_v51 = vld [vmem:[#allocation11 + $0x1c] sm:$0xf]  ;;  %v2697_v1 = vld [vmem:[#allocation11 + $0x24] sm:$0xf0] }
 0x463   :  { %v1021_v32 = vsub.f32 1.0, %v1020_v16  ;;  %v1007_v52 = vsel %vm1006_vm11, %v3077_v18, %v1003_v20  ;;  %v2776_v18 = vor.u32 %v2975_v9, %v2775_v13  ;;  %v2803_v20 = vld [vmem:[#allocation13 + $0x30] sm:$0xf]  ;;  %v2963_v13 = vld [vmem:[#allocation11 + $0x58] sm:$0xf0] }
 0x464   :  { %v1012_v3 = vsel %vm1009_vm12, %v1011_v8, %v1007_v52  ;;  %v2983_v8 = vld [vmem:[#allocation13 + $0x38] sm:$0xf0]  ;;  %1438 = vmatpush.bf16.msrb.mxu3 %v2760_v60  ;;  %v2715_v9 = vld [vmem:[#allocation11 + $0x38] sm:$0xf]  ;;  %v2700_v60 = vor.u32 %v2955_v51, %v2697_v1  ;;  %v2985_v1 = vld [vmem:[#allocation13 + $0x4c] sm:$0xf] }
 0x465   :  { %v1022_v6 = vmul.f32 %v3079_v10, %v1021_v32  ;;  %v1035_v17 = vmul.f32 %v1034_v26, %v1012_v3  ;;  %v3903_v52 = vor.u32 %v2983_v8, %v2803_v20  ;;  %v2967_v26 = vld [vmem:[#allocation11 + $0x7c] sm:$0xf]  ;;  %v2751_v3 = vld [vmem:[#allocation11 + $0x80] sm:$0xf]  ;;  %v2957_v20 = vld [vmem:[#allocation11 + $0x28] sm:$0xf0] }
 0x467   :  { %v1023_v24 = vadd.f32 %v3079_v10, %v1022_v6  ;;  %v1036_v30 = vadd.f32 %v1035_v17, %v295_v42  ;;  %v2745_v42 = vld [vmem:[#allocation11 + $0x84] sm:$0xf0] }
 0x468   :  { %v2748_v17 = vor.u32 %v2967_v26, %v2745_v42 }
 0x469   :  { %v1027_v38 = vsel %vm1026_vm15, %v3079_v10, %v1023_v24  ;;  %3080 = vtanh.f32 %v1036_v30  ;;  %v2972_v10 = vld [vmem:[#allocation11 + $0xa0] sm:$0xf0]  ;;  %v2752_v24 = vor.u32 %v2969_v21, %v2751_v3  ;;  %v2791_v30 = vld [vmem:[#allocation13 + $0x18] sm:$0xf] }
 0x46a   :  { %v1032_v36 = vsel %vm1029_vm0, %v1031_v27, %v1027_v38  ;;  %v2764_v16 = vor.u32 %v2972_v10, %v2763_v31  ;;  %v2980_v27 = vld [vmem:[#allocation13 + $0x20] sm:$0xf0]  ;;  %1439 = vmatpush.bf16.msrb.mxu3 %v2748_v17  ;;  %v2691_v17 = vld [vmem:[#allocation11 + $0x8] sm:$0xf] }
 0x46b   :  { %v1038_v22 = vsub.f32 1.0, %v1032_v36  ;;  %v1040_v46 = vmul.f32 %v1032_v36, %v3844_v34  ;;  %v2964_v38 = vld [vmem:[#allocation11 + $0x64] sm:$0xf] }
 0x46f   :  { %v3081_v45 = vpop.eup %3080 }
 0x470   :  { %v1039_v54 = vmul.f32 %v3081_v45, %v1038_v22  ;;  %v3906_v22 = vor.u32 %v2980_v27, %v2791_v30  ;;  %v2733_v45 = vld [vmem:[#allocation11 + $0x6c] sm:$0xf0]  ;;  %v2954_v30 = vld [vmem:[#allocation11 + $0x10] sm:$0xf0] }
 0x471   :  { %v2736_v7 = vor.u32 %v2964_v38, %v2733_v45  ;;  %v2692_v38 = vor.u32 %v2954_v30, %v2691_v17  ;;  %v3916_v45 = vld [vmem:[#allocation10] ss:$0 sm:$0xff] }
 0x472   :  { %v3864_v61 = vadd.f32 %v1040_v46, %v1039_v54  ;;  %v2739_v54 = vld [vmem:[#allocation11 + $0x68] sm:$0xf]  ;;  %v2966_v46 = vld [vmem:[#allocation11 + $0x70] sm:$0xf0] }
 0x473   :  { %v2740_v14 = vor.u32 %v2966_v46, %v2739_v54  ;;  %1440 = vmatpush.bf16.msrb.mxu3 %v2736_v7  ;;  %v4365_v7 = vld [vmem:[#allocation24_spill] sm:$0xff] }
 0x474   :  { %v1046_v5 = vpack.c.bf16 %v3864_v61, %v3864_v61  ;;  %v3880_v62 = vpack.c.bf16 %v3864_v61, %v3844_v34  ;;  %v2827_v34 = vld [vmem:[#allocation13 + $0x60] sm:$0xf] }
 0x475   :  { %v3894_v44 = vor.u32 %v2989_v19, %v2827_v34  ;;  %v2977_v34 = vld [vmem:[#allocation13 + $0x8] sm:$0xf0] }
 0x476   :  { %1055 = vmatmul.bf16.vlgmr.msrb.gmra.mxu0 %v1046_v5  ;;  %1068 = vmatmul.bf16.vlgmr.msra.gmra.mxu1 %v1046_v5  ;;  %v3912_v19 = vor.u32 %v2977_v34, %v2779_v2 }
 0x477   :  { %1081 = vmatmul.bf16.vlgmr.msrb.gmra.mxu2 %v1046_v5  ;;  %1688 = vmatpush.bf16.msra.mxu1 %v3883_v11 }
 0x478   :  { %1466 = vmatpush.bf16.msrb.mxu0 %v2776_v18 }
 0x47b   :  { %1689 = vmatpush.bf16.msra.mxu1 %v3886_v15 }
 0x47c   :  { %1467 = vmatpush.bf16.msrb.mxu0 %v2764_v16  ;;  %v2703_v16 = vld [vmem:[#allocation11 + $0x20] sm:$0xf] }
 0x47d   :  { %v2704_v42 = vor.u32 %v2957_v20, %v2703_v16  ;;  %v2805_v16 = vld [vmem:[#allocation13 + $0x3c] sm:$0xf0]  ;;  %v4366_v20 = vmov 0.0|0.0  }
 0x47f   :  { %1690 = vmatpush.bf16.msra.mxu1 %v3889_v53 }
 0x480   :  { %1468 = vmatpush.bf16.msrb.mxu0 %v2752_v24 }
 0x483   :  { %1691 = vmatpush.bf16.msra.mxu1 %v3894_v44 }
 0x484   :  { %1469 = vmatpush.bf16.msrb.mxu0 %v2740_v14 }
 0x487   :  { %1416 = vmatmul.bf16.vlgmr.msra.gmra.mxu2 %v3870_v56  ;;  %1692 = vmatpush.bf16.msra.mxu1 %v3898_v49 }
 0x48b   :  { %1693 = vmatpush.bf16.msra.mxu1 %v3903_v52 }
 0x48f   :  { %1694 = vmatpush.bf16.msra.mxu1 %v3906_v22 }
 0x493   :  { %1695 = vmatpush.bf16.msra.mxu1 %v3912_v19 }
 0x497   :  { %1421 = vmatmul.bf16.gmra.mxu2 %v3875_v50 }
 0x4a7   :  { %1426 = vmatmul.bf16.gmra.mxu2 %v3880_v62 }
 0x4f3   :  { %v1056_v40 = vpop.f32.mrf.mxu0  ;;  %v1069_v47 = vpop.f32.mrf.mxu1 }
 0x4f4   :  { %v1086_v28 = vadd.f32 %v1056_v40, %v4364_v58  ;;  %v1106_v63 = vadd.f32 %v1069_v47, %v269_v29  ;;  %v2721_v29 = vld [vmem:[#allocation11 + $0x54] sm:$0xf0]  ;;  %v2728_v40 = vor.u32 %v2963_v13, %v2727_v4  ;;  %v2958_v47 = vld [vmem:[#allocation11 + $0x34] sm:$0xf]  ;;  %v2960_v58 = vld [vmem:[#allocation11 + $0x40] sm:$0xf0] }
 0x4f5   :  { %v2724_v37 = vor.u32 %v2961_v25, %v2721_v29  ;;  %v2716_v18 = vor.u32 %v2960_v58, %v2715_v9 }
 0x4f6   :  { %v2677_v55 = vmul.f32 -1.442695, %v1086_v28  ;;  %v2678_v48 = vmul.f32 -1.442695, %v1106_v63  ;;  %1470 = vmatpush.bf16.msrb.mxu0 %v2728_v40  ;;  %v2712_v63 = vor.u32 %v2958_v47, %v2709_v39  ;;  %v2997_v47 = vld [vmem:[#allocation13 + $0xac] sm:$0xf] }
 0x4f7   :  { %1441 = vmatpush.bf16.msrb.mxu3 %v2724_v37  ;;  %v2865_v39 = vld [vmem:[#allocation13 + $0xb4] sm:$0xf0] }
 0x4f8   :  { %3082 = vpow2.f32 %v2677_v55  ;;  %v3930_v58 = vor.u32 %v2997_v47, %v2865_v39 }
 0x4f9   :  { %3084 = vpow2.f32 %v2678_v48 }
 0x4fa   :  { %v3901_v32 = vpop.f32.mrf.mxu2  ;;  %1471 = vmatpush.bf16.msrb.mxu0 %v2716_v18 }
 0x4fb   :  { %v1058_v6 = vpop.f32.mrf.mxu0  ;;  %v1071_v12 = vpop.f32.mrf.mxu1  ;;  %1442 = vmatpush.bf16.msrb.mxu3 %v2712_v63  ;;  %v1126_v54 = vadd.f32 %v3916_v45, %v3901_v32  ;;  %v2853_v63 = vld [vmem:[#allocation13 + $0x9c] sm:$0xf0] }
 0x4fc   :  { %v2952_v6 = vld [vmem:[#allocation11 + $0x4] sm:$0xf]  ;;  %v2685_v12 = vld [vmem:[#allocation11 + $0xc] sm:$0xf0] }
 0x4fd   :  { %v2688_v24 = vor.u32 %v2952_v6, %v2685_v12  ;;  %v2781_v6 = vld [vmem:[#allocation13 + $0xc] sm:$0xf0] }
 0x4fe   :  { %v3083_v36 = vpop.eup %3082  ;;  %1472 = vmatpush.bf16.msrb.mxu0 %v2704_v42  ;;  %v2793_v42 = vld [vmem:[#allocation13 + $0x24] sm:$0xf0] }
 0x4ff   :  { %v3085_v5 = vpop.eup %3084  ;;  %v1090_v43 = vadd.f32 1.0, %v3083_v36  ;;  %1443 = vmatpush.bf16.msrb.mxu3 %v2700_v60  ;;  %v2982_v60 = vld [vmem:[#allocation13 + $0x34] sm:$0xf] }
 0x500   :  { %v3908_v57 = vadd.f32 1.0, %v3085_v5 }
 0x501   :  { %3086 = vrcp.f32 %v1090_v43  ;;  %v1102_v10 = vand.u32 2147483648, %v1090_v43  ;;  %v1100_v26 = vand.u32 2147483647, %v1090_v43  ;;  %vm1096_vm2 = vweird.f32 %v1090_v43 }
 0x502   :  { %3088 = vrcp.f32 %v3908_v57  ;;  %v1084_v0 = vpop.f32.mrf.mxu2  ;;  %v1122_v14 = vand.u32 2147483648, %v3908_v57  ;;  %vm1116_vm6 = vweird.f32 %v3908_v57  ;;  %1473 = vmatpush.bf16.msrb.mxu0 %v2692_v38  ;;  %v2871_v38 = vld [vmem:[#allocation13 + $0xb0] sm:$0xf] }
 0x503   :  { %v1103_v27 = vor.u32 1.1754944e-38, %v1102_v10  ;;  %vm1101_vm4 = vcmp.eq.f32.partialorder %v1100_v26, 8.507059e+37  ;;  %1444 = vmatpush.bf16.msrb.mxu3 %v2688_v24  ;;  %v1120_v0 = vand.u32 2147483647, %v3908_v57  ;;  %v2979_v26 = vld [vmem:[#allocation13 + $0x1c] sm:$0xf] }
 0x504   :  { %v1123_v29 = vor.u32 1.1754944e-38, %v1122_v14 }
 0x505   :  { %vm1121_vm8 = vcmp.eq.f32.partialorder %v1120_v0, 8.507059e+37  ;;  %v2993_v0 = vld [vmem:[#allocation13 + $0x88] sm:$0xf0] }
 0x507   :  { %v3087_v28 = vpop.eup %3086 }
 0x508   :  { %v3089_v23 = vpop.eup %3088  ;;  %v1092_v35 = vmul.f32 %v3087_v28, %v1090_v43  ;;  %vm1097_vm1 = vweird.f32 %v3087_v28  ;;  %v298_v43 = vadd.f32 %v4365_v7, %v3677_v41 }
 0x509   :  { %v1112_v55 = vmul.f32 %v3089_v23, %v3908_v57  ;;  %vm1098_vm3 = vmor %vm1096_vm2, %vm1097_vm1  ;;  %vm1117_vm5 = vweird.f32 %v3089_v23 }
 0x50a   :  { %v1093_v48 = vsub.f32 1.0, %v1092_v35  ;;  %vm1118_vm7 = vmor %vm1116_vm6, %vm1117_vm5 }
 0x50b   :  { %v1113_v31 = vsub.f32 1.0, %v1112_v55  ;;  %v2988_v55 = vld [vmem:[#allocation13 + $0x64] sm:$0xf] }
 0x50c   :  { %v1094_v8 = vmul.f32 %v3087_v28, %v1093_v48  ;;  %v2829_v48 = vld [vmem:[#allocation13 + $0x6c] sm:$0xf0] }
 0x50d   :  { %v1114_v3 = vmul.f32 %v3089_v23, %v1113_v31  ;;  %v3944_v51 = vor.u32 %v2988_v55, %v2829_v48  ;;  %v2817_v31 = vld [vmem:[#allocation13 + $0x54] sm:$0xf0] }
 0x50e   :  { %v1095_v21 = vadd.f32 %v3087_v28, %v1094_v8  ;;  %v3949_v10 = vor.u32 %v2985_v1, %v2817_v31  ;;  %v3957_v8 = vor.u32 %v2982_v60, %v2805_v16  ;;  %v2811_v60 = vld [vmem:[#allocation13 + $0x38] sm:$0xf]  ;;  %v2984_v16 = vld [vmem:[#allocation13 + $0x40] sm:$0xf0] }
 0x50f   :  { %v1115_v46 = vadd.f32 %v3089_v23, %v1114_v3  ;;  %v3962_v3 = vor.u32 %v2979_v26, %v2793_v42  ;;  %v2799_v26 = vld [vmem:[#allocation13 + $0x20] sm:$0xf] }
 0x510   :  { %v1099_v36 = vsel %vm1098_vm3, %v3087_v28, %v1095_v21  ;;  %v2994_v28 = vld [vmem:[#allocation13 + $0x94] sm:$0xf] }
 0x511   :  { %v1104_v5 = vsel %vm1101_vm4, %v1103_v27, %v1099_v36  ;;  %v1119_v25 = vsel %vm1118_vm7, %v3089_v23, %v1115_v46  ;;  %v3934_v18 = vor.u32 %v2994_v28, %v2853_v63  ;;  %v2841_v23 = vld [vmem:[#allocation13 + $0x84] sm:$0xf0]  ;;  %v2999_v36 = vld [vmem:[#allocation13 + $0xb8] sm:$0xf0]  ;;  %v2859_v46 = vld [vmem:[#allocation13 + $0x98] sm:$0xf] }
 0x512   :  { %v1127_v2 = vmul.f32 %v1126_v54, %v1104_v5  ;;  %v1124_v32 = vsel %vm1121_vm8, %v1123_v29, %v1119_v25  ;;  %v3990_v54 = vor.u32 %v2999_v36, %v2871_v38  ;;  %v4368_v5 = vld [vmem:[#allocation22_spill] sm:$0xff]  ;;  %v2787_v36 = vld [vmem:[#allocation13 + $0x8] sm:$0xf] }
 0x513   :  { %v1130_v37 = vsub.f32 1.0, %v1124_v32  ;;  %v1132_v40 = vmul.f32 %v1124_v32, %v3864_v61  ;;  %v2991_v61 = vld [vmem:[#allocation13 + $0x7c] sm:$0xf]  ;;  %v242_v7 = vadd.f32 %v4368_v5, %v3653_v33 }
 0x514   :  { %v1128_v34 = vadd.f32 %v1127_v2, %v298_v43  ;;  %v3939_v35 = vor.u32 %v2991_v61, %v2841_v23  ;;  %1714 = vmatpush.bf16.msrb.mxu2 %v3990_v54  ;;  %v2847_v2 = vld [vmem:[#allocation13 + $0x80] sm:$0xf]  ;;  %v2823_v61 = vld [vmem:[#allocation13 + $0x50] sm:$0xf]  ;;  %v2987_v23 = vld [vmem:[#allocation13 + $0x58] sm:$0xf0] }
 0x515   :  { %v4000_v32 = vor.u32 %v2993_v0, %v2847_v2  ;;  %v4019_v55 = vor.u32 %v2987_v23, %v2823_v61 }
 0x516   :  { %3090 = vtanh.f32 %v1128_v34 }
 0x51c   :  { %v3091_v4 = vpop.eup %3090 }
 0x51d   :  { %v1131_v13 = vmul.f32 %v3091_v4, %v1130_v37  ;;  %v2835_v37 = vld [vmem:[#allocation13 + $0x68] sm:$0xf]  ;;  %v2990_v4 = vld [vmem:[#allocation13 + $0x70] sm:$0xf0] }
 0x51e   :  { %v4007_v47 = vor.u32 %v2990_v4, %v2835_v37 }
 0x51f   :  { %v3926_v9 = vadd.f32 %v1132_v40, %v1131_v13 }
 0x521   :  { %v1138_v57 = vpack.c.bf16 %v3926_v9, %v3926_v9 }
 0x523   :  { %1147 = vmatmul.bf16.vlgmr.msra.gmra.mxu3 %v1138_v57  ;;  %1160 = vmatmul.bf16.vlgmr.msra.gmra.mxu0 %v1138_v57 }
 0x524   :  { %1173 = vmatmul.bf16.vlgmr.msrb.gmra.mxu1 %v1138_v57  ;;  %1779 = vmatpush.bf16.msra.mxu3 %v3883_v11 }
 0x525   :  { %1701 = vmatpush.bf16.msrb.mxu1 %v3930_v58  ;;  %1792 = vmatpush.bf16.msra.mxu0 %v3930_v58 }
 0x528   :  { %1780 = vmatpush.bf16.msra.mxu3 %v3886_v15 }
 0x529   :  { %1702 = vmatpush.bf16.msrb.mxu1 %v3934_v18  ;;  %1793 = vmatpush.bf16.msra.mxu0 %v3934_v18 }
 0x52c   :  { %1781 = vmatpush.bf16.msra.mxu3 %v3889_v53 }
 0x52d   :  { %1703 = vmatpush.bf16.msrb.mxu1 %v3939_v35  ;;  %1794 = vmatpush.bf16.msra.mxu0 %v3939_v35 }
 0x530   :  { %1782 = vmatpush.bf16.msra.mxu3 %v3894_v44 }
 0x531   :  { %1704 = vmatpush.bf16.msrb.mxu1 %v3944_v51  ;;  %1795 = vmatpush.bf16.msra.mxu0 %v3944_v51 }
 0x533   :  { %1445 = vmatmul.bf16.vlgmr.msrb.gmra.mxu3 %v3870_v56  ;;  %1474 = vmatmul.bf16.vlgmr.msrb.gmra.mxu0 %v3870_v56  ;;  %v2976_v56 = vld [vmem:[#allocation13 + $0x4] sm:$0xf] }
 0x534   :  { %1696 = vmatmul.bf16.vlgmr.msra.gmra.mxu1 %v4366_v20  ;;  %1783 = vmatpush.bf16.msra.mxu3 %v3898_v49  ;;  %v3967_v12 = vor.u32 %v2976_v56, %v2781_v6  ;;  %v4026_v56 = vor.u32 %v2984_v16, %v2811_v60  ;;  %v2981_v6 = vld [vmem:[#allocation13 + $0x28] sm:$0xf0] }
 0x535   :  { %1705 = vmatpush.bf16.msrb.mxu1 %v3949_v10  ;;  %1796 = vmatpush.bf16.msra.mxu0 %v3949_v10 }
 0x538   :  { %1784 = vmatpush.bf16.msra.mxu3 %v3903_v52 }
 0x539   :  { %1706 = vmatpush.bf16.msrb.mxu1 %v3957_v8  ;;  %1797 = vmatpush.bf16.msra.mxu0 %v3957_v8 }
 0x53c   :  { %1785 = vmatpush.bf16.msra.mxu3 %v3906_v22 }
 0x53d   :  { %1707 = vmatpush.bf16.msrb.mxu1 %v3962_v3  ;;  %1798 = vmatpush.bf16.msra.mxu0 %v3962_v3 }
 0x540   :  { %1786 = vmatpush.bf16.msra.mxu3 %v3912_v19 }
 0x541   :  { %1708 = vmatpush.bf16.msrb.mxu1 %v3967_v12  ;;  %1799 = vmatpush.bf16.msra.mxu0 %v3967_v12 }
 0x543   :  { %1450 = vmatmul.bf16.gmra.mxu3 %v3875_v50  ;;  %1479 = vmatmul.bf16.gmra.mxu0 %v3875_v50  ;;  %v4367_v50 = vld [vmem:[#allocation25_spill] sm:$0xff] }
 0x544   :  { %1883 = vmatpush.bf16.msrb.mxu3 %v3930_v58  ;;  %1709 = vmatmul.bf16.vlgmr.msrb.gmra.mxu1 %v4366_v20  ;;  %v271_v17 = vadd.f32 %v4367_v50, %v3671_v59 }
 0x545   :  { %1805 = vmatpush.bf16.msra.mxu1 %v3990_v54  ;;  %1896 = vmatpush.bf16.msrb.mxu0 %v3990_v54 }
 0x548   :  { %1884 = vmatpush.bf16.msrb.mxu3 %v3934_v18 }
 0x54c   :  { %1885 = vmatpush.bf16.msrb.mxu3 %v3939_v35 }
 0x550   :  { %1886 = vmatpush.bf16.msrb.mxu3 %v3944_v51 }
 0x553   :  { %1455 = vmatmul.bf16.gmra.mxu3 %v3880_v62  ;;  %1484 = vmatmul.bf16.gmra.mxu0 %v3880_v62  ;;  %v2996_v62 = vld [vmem:[#allocation13 + $0xa0] sm:$0xf0] }
 0x554   :  { %1887 = vmatpush.bf16.msrb.mxu3 %v3949_v10  ;;  %v3995_v14 = vor.u32 %v2996_v62, %v2859_v46  ;;  %v2978_v46 = vld [vmem:[#allocation13 + $0x10] sm:$0xf0] }
 0x556   :  { %1715 = vmatpush.bf16.msrb.mxu2 %v3995_v14  ;;  %1806 = vmatpush.bf16.msra.mxu1 %v3995_v14 }
 0x557   :  { %1897 = vmatpush.bf16.msrb.mxu0 %v3995_v14 }
 0x558   :  { %1888 = vmatpush.bf16.msrb.mxu3 %v3957_v8 }
 0x55a   :  { %1716 = vmatpush.bf16.msrb.mxu2 %v4000_v32  ;;  %1807 = vmatpush.bf16.msra.mxu1 %v4000_v32 }
 0x55b   :  { %1898 = vmatpush.bf16.msrb.mxu0 %v4000_v32 }
 0x55c   :  { %1889 = vmatpush.bf16.msrb.mxu3 %v3962_v3 }
 0x55e   :  { %1717 = vmatpush.bf16.msrb.mxu2 %v4007_v47  ;;  %1808 = vmatpush.bf16.msra.mxu1 %v4007_v47 }
 0x55f   :  { %1899 = vmatpush.bf16.msrb.mxu0 %v4007_v47 }
 0x560   :  { %1890 = vmatpush.bf16.msrb.mxu3 %v3967_v12 }
 0x562   :  { %1718 = vmatpush.bf16.msrb.mxu2 %v4019_v55  ;;  %1809 = vmatpush.bf16.msra.mxu1 %v4019_v55 }
 0x563   :  { %1900 = vmatpush.bf16.msrb.mxu0 %v4019_v55 }
 0x566   :  { %1719 = vmatpush.bf16.msrb.mxu2 %v4026_v56  ;;  %1810 = vmatpush.bf16.msra.mxu1 %v4026_v56 }
 0x567   :  { %1901 = vmatpush.bf16.msrb.mxu0 %v4026_v56 }
 0x5a0   :  { %v1161_v21 = vpop.f32.mrf.mxu0 }
 0x5a1   :  { %v1198_v24 = vadd.f32 %v1161_v21, %v271_v17  ;;  %v3988_v30 = vpop.f32.mrf.mxu1  ;;  %v4029_v21 = vor.u32 %v2981_v6, %v2799_v26 }
 0x5a2   :  { %v1218_v2 = vadd.f32 %v3916_v45, %v3988_v30 }
 0x5a3   :  { %v2680_v27 = vmul.f32 -1.442695, %v1198_v24  ;;  %1720 = vmatpush.bf16.msrb.mxu2 %v4029_v21  ;;  %1811 = vmatpush.bf16.msra.mxu1 %v4029_v21 }
 0x5a4   :  { %1902 = vmatpush.bf16.msrb.mxu0 %v4029_v21 }
 0x5a5   :  { %3092 = vpow2.f32 %v2680_v27 }
 0x5a6   :  { %v1148_v43 = vpop.f32.mrf.mxu3 }
 0x5a7   :  { %v1178_v59 = vadd.f32 %v1148_v43, %v242_v7  ;;  %v4037_v43 = vor.u32 %v2978_v46, %v2787_v36 }
 0x5a8   :  { %v1163_v34 = vpop.f32.mrf.mxu0 }
 0x5a9   :  { %v2679_v25 = vmul.f32 -1.442695, %v1178_v59  ;;  %v1176_v29 = vpop.f32.mrf.mxu1  ;;  %1721 = vmatpush.bf16.msrb.mxu2 %v4037_v43  ;;  %1812 = vmatpush.bf16.msra.mxu1 %v4037_v43 }
 0x5aa   :  { %v4369_v29 = vld [vmem:[#allocation26_spill] sm:$0xff]  ;;  %1903 = vmatpush.bf16.msrb.mxu0 %v4037_v43 }
 0x5ab   :  { %v3093_v33 = vpop.eup %3092  ;;  %3094 = vpow2.f32 %v2679_v25 }
 0x5ac   :  { %v4004_v13 = vadd.f32 1.0, %v3093_v33  ;;  %v300_v33 = vadd.f32 %v4369_v29, %v3677_v41 }
 0x5ad   :  { %1870 = vmatpush.bf16.msra.mxu2 %v3883_v11  ;;  %1961 = vmatpush.bf16.msrb.mxu1 %v3883_v11 }
 0x5ae   :  { %v1150_v40 = vpop.f32.mrf.mxu3  ;;  %3096 = vrcp.f32 %v4004_v13  ;;  %v1214_v37 = vand.u32 2147483648, %v4004_v13  ;;  %vm1208_vm14 = vweird.f32 %v4004_v13  ;;  %v1212_v45 = vand.u32 2147483647, %v4004_v13 }
 0x5b0   :  { %v1215_v40 = vor.u32 1.1754944e-38, %v1214_v37  ;;  %vm1213_vm0 = vcmp.eq.f32.partialorder %v1212_v45, 8.507059e+37 }
 0x5b1   :  { %v3095_v39 = vpop.eup %3094  ;;  %v4012_v57 = vpop.f32.mrf.mxu1  ;;  %1871 = vmatpush.bf16.msra.mxu2 %v3886_v15  ;;  %1962 = vmatpush.bf16.msrb.mxu1 %v3886_v15 }
 0x5b2   :  { %v1182_v28 = vadd.f32 1.0, %v3095_v39 }
 0x5b4   :  { %3098 = vrcp.f32 %v1182_v28  ;;  %v4017_v63 = vpop.eup %3096  ;;  %v1194_v24 = vand.u32 2147483648, %v1182_v28  ;;  %v1192_v38 = vand.u32 2147483647, %v1182_v28  ;;  %vm1188_vm10 = vweird.f32 %v1182_v28 }
 0x5b5   :  { %v1204_v48 = vmul.f32 %v4017_v63, %v4004_v13  ;;  %vm1209_vm13 = vweird.f32 %v4017_v63  ;;  %1872 = vmatpush.bf16.msra.mxu2 %v3889_v53  ;;  %1963 = vmatpush.bf16.msrb.mxu1 %v3889_v53 }
 0x5b6   :  { %v1195_v59 = vor.u32 1.1754944e-38, %v1194_v24  ;;  %vm1193_vm12 = vcmp.eq.f32.partialorder %v1192_v38, 8.507059e+37  ;;  %vm1210_vm15 = vmor %vm1208_vm14, %vm1209_vm13 }
 0x5b7   :  { %v1205_v50 = vsub.f32 1.0, %v1204_v48 }
 0x5b9   :  { %v1699_v1 = vpop.f32.mrf.mxu1  ;;  %v1206_v62 = vmul.f32 %v4017_v63, %v1205_v50  ;;  %1873 = vmatpush.bf16.msra.mxu2 %v3894_v44  ;;  %1964 = vmatpush.bf16.msrb.mxu1 %v3894_v44  ;;  %v1446_v50 = vpop.f32.mrf.mxu3 }
 0x5ba   :  { %v3099_v31 = vpop.eup %3098 }
 0x5bb   :  { %v1184_v42 = vmul.f32 %v3099_v31, %v1182_v28  ;;  %vm1189_vm9 = vweird.f32 %v3099_v31  ;;  %v1207_v25 = vadd.f32 %v4017_v63, %v1206_v62 }
 0x5bc   :  { %vm1190_vm11 = vmor %vm1188_vm10, %vm1189_vm9 }
 0x5bd   :  { %v1185_v17 = vsub.f32 1.0, %v1184_v42  ;;  %v1211_v41 = vsel %vm1210_vm15, %v4017_v63, %v1207_v25  ;;  %1874 = vmatpush.bf16.msra.mxu2 %v3898_v49  ;;  %1965 = vmatpush.bf16.msrb.mxu1 %v3898_v49 }
 0x5be   :  { %v1216_v28 = vsel %vm1213_vm0, %v1215_v40, %v1211_v41  ;;  %v4103_v40 = vld [vmem:[#allocation16] ss:$0 sm:$0xff] }
 0x5bf   :  { %v1186_v27 = vmul.f32 %v3099_v31, %v1185_v17  ;;  %v1222_v13 = vsub.f32 1.0, %v1216_v28  ;;  %v1224_v48 = vmul.f32 %v1216_v28, %v3926_v9 }
 0x5c1   :  { %v1187_v5 = vadd.f32 %v3099_v31, %v1186_v27  ;;  %v4034_v7 = vpop.f32.mrf.mxu1  ;;  %1875 = vmatpush.bf16.msra.mxu2 %v3903_v52  ;;  %1966 = vmatpush.bf16.msrb.mxu1 %v3903_v52 }
 0x5c3   :  { %v1191_v0 = vsel %vm1190_vm11, %v3099_v31, %v1187_v5 }
 0x5c4   :  { %v1196_v34 = vsel %vm1193_vm12, %v1195_v59, %v1191_v0 }
 0x5c5   :  { %v1219_v4 = vmul.f32 %v1218_v2, %v1196_v34  ;;  %1876 = vmatpush.bf16.msra.mxu2 %v3906_v22  ;;  %1967 = vmatpush.bf16.msrb.mxu1 %v3906_v22 }
 0x5c7   :  { %v1220_v30 = vadd.f32 %v1219_v4, %v300_v33 }
 0x5c9   :  { %3100 = vtanh.f32 %v1220_v30  ;;  %v1712_v39 = vpop.f32.mrf.mxu1  ;;  %1877 = vmatpush.bf16.msra.mxu2 %v3912_v19  ;;  %1968 = vmatpush.bf16.msrb.mxu1 %v3912_v19 }
 0x5cf   :  { %v3101_v61 = vpop.eup %3100 }
 0x5d0   :  { %v1223_v23 = vmul.f32 %v3101_v61, %v1222_v13 }
 0x5d2   :  { %v1225_v1 = vadd.f32 %v1224_v48, %v1223_v23  ;;  %v1475_v23 = vpop.f32.mrf.mxu0 }
 0x5d4   :  { %v1239_v63 = vpack.c.bf16 %v1225_v1, %v3926_v9  ;;  %v1417_v9 = vpop.f32.mrf.mxu2 }
 0x5d6   :  { %1431 = vmatmul.bf16.gmra.mxu2 %v1239_v63  ;;  %1460 = vmatmul.bf16.gmra.mxu3 %v1239_v63 }
 0x5d7   :  { %1489 = vmatmul.bf16.gmra.mxu0 %v1239_v63 }
 0x5dc   :  { %v4081_v31 = vpop.f32.mrf.mxu2 }
 0x5e4   :  { %v4083_v60 = vpop.f32.mrf.mxu2 }
 0x5e6   :  { %1722 = vmatmul.bf16.vlgmr.msrb.gmra.mxu2 %v4366_v20  ;;  %v1272_v20 = vld [vmem:[#allocation14] sm:$0x7] }
 0x5e7   :  { %1974 = vmatpush.bf16.msrb.mxu2 %v3930_v58  ;;  %v4085_v16 = vperm.slane %v1272_v20, 0  ;;  %v4089_v6 = vperm.slane %v1272_v20, 1  ;;  %v4105_v13 = vperm.slane %v1272_v20, 2 }
 0x5e9   :  { %v1418_v26 = vadd.f32 %v1417_v9, %v4085_v16  ;;  %v1447_v27 = vadd.f32 %v1446_v50, %v4089_v6 }
 0x5eb   :  { %1975 = vmatpush.bf16.msrb.mxu2 %v3934_v18  ;;  %v1727_v42 = vadd.f32 %v4012_v57, %v1418_v26  ;;  %v1747_v38 = vadd.f32 %v4034_v7, %v1447_v27 }
 0x5ec   :  { %v4091_v17 = vpop.f32.mrf.mxu2 }
 0x5ed   :  { %v2873_v24 = vmul.f32 -1.442695, %v1727_v42  ;;  %v2874_v36 = vmul.f32 -1.442695, %v1747_v38  ;;  %v1476_v42 = vadd.f32 %v1475_v23, %v4105_v13 }
 0x5ef   :  { %1976 = vmatpush.bf16.msrb.mxu2 %v3939_v35  ;;  %3102 = vpow2.f32 %v2873_v24 }
 0x5f0   :  { %3104 = vpow2.f32 %v2874_v36 }
 0x5f3   :  { %1977 = vmatpush.bf16.msrb.mxu2 %v3944_v51 }
 0x5f4   :  { %v4095_v46 = vpop.f32.mrf.mxu2 }
 0x5f5   :  { %v3103_v62 = vpop.eup %3102 }
 0x5f6   :  { %v1731_v5 = vadd.f32 1.0, %v3103_v62  ;;  %v3105_v59 = vpop.eup %3104 }
 0x5f7   :  { %1978 = vmatpush.bf16.msrb.mxu2 %v3949_v10  ;;  %v1751_v2 = vadd.f32 1.0, %v3105_v59 }
 0x5f8   :  { %3106 = vrcp.f32 %v1731_v5  ;;  %v1743_v41 = vand.u32 2147483648, %v1731_v5  ;;  %vm1737_vm2 = vweird.f32 %v1731_v5  ;;  %v1741_v39 = vand.u32 2147483647, %v1731_v5 }
 0x5f9   :  { %3108 = vrcp.f32 %v1751_v2  ;;  %v1763_v50 = vand.u32 2147483648, %v1751_v2  ;;  %vm1757_vm6 = vweird.f32 %v1751_v2  ;;  %v1761_v27 = vand.u32 2147483647, %v1751_v2 }
 0x5fa   :  { %v1744_v1 = vor.u32 1.1754944e-38, %v1743_v41  ;;  %vm1742_vm4 = vcmp.eq.f32.partialorder %v1741_v39, 8.507059e+37 }
 0x5fb   :  { %1979 = vmatpush.bf16.msrb.mxu2 %v3957_v8  ;;  %v1764_v36 = vor.u32 1.1754944e-38, %v1763_v50  ;;  %vm1762_vm8 = vcmp.eq.f32.partialorder %v1761_v27, 8.507059e+37 }
 0x5fc   :  { %v4097_v57 = vpop.f32.mrf.mxu2 }
 0x5fe   :  { %v3107_v0 = vpop.eup %3106 }
 0x5ff   :  { %1980 = vmatpush.bf16.msrb.mxu2 %v3962_v3  ;;  %v1733_v34 = vmul.f32 %v3107_v0, %v1731_v5  ;;  %v3109_v29 = vpop.eup %3108  ;;  %vm1738_vm1 = vweird.f32 %v3107_v0 }
 0x600   :  { %v1753_v7 = vmul.f32 %v3109_v29, %v1751_v2  ;;  %vm1739_vm3 = vmor %vm1737_vm2, %vm1738_vm1  ;;  %vm1758_vm5 = vweird.f32 %v3109_v29  ;;  %v1477_v2 = vpop.f32.mrf.mxu0 }
 0x601   :  { %v1734_v33 = vsub.f32 1.0, %v1733_v34  ;;  %vm1759_vm7 = vmor %vm1757_vm6, %vm1758_vm5 }
 0x602   :  { %v1754_v45 = vsub.f32 1.0, %v1753_v7 }
 0x603   :  { %1981 = vmatpush.bf16.msrb.mxu2 %v3967_v12  ;;  %v1735_v37 = vmul.f32 %v3107_v0, %v1734_v33 }
 0x604   :  { %v1755_v28 = vmul.f32 %v3109_v29, %v1754_v45 }
 0x605   :  { %v1736_v30 = vadd.f32 %v3107_v0, %v1735_v37 }
 0x606   :  { %v1756_v26 = vadd.f32 %v3109_v29, %v1755_v28 }
 0x607   :  { %v1740_v61 = vsel %vm1739_vm3, %v3107_v0, %v1736_v30 }
 0x608   :  { %v1745_v9 = vsel %vm1742_vm4, %v1744_v1, %v1740_v61  ;;  %v1760_v20 = vsel %vm1759_vm7, %v3109_v29, %v1756_v26  ;;  %v1448_v29 = vpop.f32.mrf.mxu3  ;;  %v4137_v45 = vpop.f32.mrf.mxu0 }
 0x609   :  { %v1765_v5 = vsel %vm1762_vm8, %v1764_v36, %v1760_v20  ;;  %v1420_v20 = vadd.f32 %v4081_v31, %v4085_v16 }
 0x60a   :  { %v1771_v59 = vsub.f32 1.0, %v1765_v5  ;;  %v1773_v33 = vmul.f32 0.0, %v1765_v5 }
 0x610   :  { %v4139_v30 = vpop.f32.mrf.mxu3  ;;  %v4141_v41 = vpop.f32.mrf.mxu0 }
 0x618   :  { %v4143_v39 = vpop.f32.mrf.mxu3  ;;  %v4145_v28 = vpop.f32.mrf.mxu0 }
 0x620   :  { %v4147_v61 = vpop.f32.mrf.mxu3  ;;  %v4149_v23 = vpop.f32.mrf.mxu0 }
 0x654   :  { %v4153_v1 = vpop.f32.mrf.mxu0 }
 0x655   :  { %4371 = vst [vmem:[#allocation21_spill] sm:$0xff] %v4153_v1 }
 0x659   :  { %v4099_v25 = vpop.f32.mrf.mxu2 }
 0x661   :  { %v4101_v4 = vpop.f32.mrf.mxu2 }
 0x662   :  { %4370 = vst [vmem:[#allocation23_spill] sm:$0xff] %v4101_v4 }
 0x669   :  { %v1723_v48 = vpop.f32.mrf.mxu2 }
 0x66a   :  { %v1767_v63 = vadd.f32 %v4103_v40, %v1723_v48  ;;  %v4151_v48 = vpop.f32.mrf.mxu3 }
 0x66c   :  { %v1768_v24 = vmul.f32 %v1767_v63, %v1745_v9  ;;  %v4157_v9 = vpop.f32.mrf.mxu0 }
 0x66d   :  { %4373 = vst [vmem:[#allocation25_spill] sm:$0xff] %v4157_v9 }
 0x66e   :  { %v1769_v38 = vadd.f32 %v1768_v24, %v1476_v42  ;;  %v1449_v42 = vadd.f32 %v1448_v29, %v4089_v6 }
 0x670   :  { %3110 = vtanh.f32 %v1769_v38 }
 0x671   :  { %v1725_v62 = vpop.f32.mrf.mxu2 }
 0x672   :  { %v4155_v63 = vpop.f32.mrf.mxu3 }
 0x673   :  { %4372 = vst [vmem:[#allocation24_spill] sm:$0xff] %v4155_v63 }
 0x676   :  { %v3111_v0 = vpop.eup %3110 }
 0x677   :  { %v1772_v34 = vmul.f32 %v3111_v0, %v1771_v59 }
 0x679   :  { %v4109_v7 = vadd.f32 %v1773_v33, %v1772_v34 }
 0x67a   :  { %v4159_v26 = vpop.f32.mrf.mxu3 }
 0x67b   :  { %v1778_v37 = vpack.c.bf16 %v4109_v7, %v4109_v7  ;;  %4374 = vst [vmem:[#allocation22_spill] sm:$0xff] %v4159_v26 }
 0x67d   :  { %1787 = vmatmul.bf16.vlgmr.msra.gmra.mxu3 %v1778_v37  ;;  %1800 = vmatmul.bf16.vlgmr.msra.gmra.mxu0 %v1778_v37 }
 0x67e   :  { %1813 = vmatmul.bf16.vlgmr.msra.gmra.mxu1 %v1778_v37  ;;  %1987 = vmatpush.bf16.msra.mxu3 %v3990_v54 }
 0x67f   :  { %2052 = vmatpush.bf16.msra.mxu0 %v3883_v11  ;;  %2065 = vmatpush.bf16.msra.mxu1 %v3930_v58 }
 0x682   :  { %1988 = vmatpush.bf16.msra.mxu3 %v3995_v14 }
 0x683   :  { %2053 = vmatpush.bf16.msra.mxu0 %v3886_v15  ;;  %2066 = vmatpush.bf16.msra.mxu1 %v3934_v18 }
 0x686   :  { %1989 = vmatpush.bf16.msra.mxu3 %v4000_v32 }
 0x687   :  { %2054 = vmatpush.bf16.msra.mxu0 %v3889_v53  ;;  %2067 = vmatpush.bf16.msra.mxu1 %v3939_v35 }
 0x68a   :  { %1990 = vmatpush.bf16.msra.mxu3 %v4007_v47 }
 0x68b   :  { %2055 = vmatpush.bf16.msra.mxu0 %v3894_v44  ;;  %2068 = vmatpush.bf16.msra.mxu1 %v3944_v51 }
 0x68e   :  { %1991 = vmatpush.bf16.msra.mxu3 %v4019_v55 }
 0x68f   :  { %2056 = vmatpush.bf16.msra.mxu0 %v3898_v49  ;;  %2069 = vmatpush.bf16.msra.mxu1 %v3949_v10 }
 0x692   :  { %1992 = vmatpush.bf16.msra.mxu3 %v4026_v56 }
 0x693   :  { %2057 = vmatpush.bf16.msra.mxu0 %v3903_v52  ;;  %2070 = vmatpush.bf16.msra.mxu1 %v3957_v8 }
 0x696   :  { %1993 = vmatpush.bf16.msra.mxu3 %v4029_v21 }
 0x697   :  { %2058 = vmatpush.bf16.msra.mxu0 %v3906_v22  ;;  %2071 = vmatpush.bf16.msra.mxu1 %v3962_v3 }
 0x69a   :  { %1994 = vmatpush.bf16.msra.mxu3 %v4037_v43 }
 0x69b   :  { %2059 = vmatpush.bf16.msra.mxu0 %v3912_v19  ;;  %2072 = vmatpush.bf16.msra.mxu1 %v3967_v12 }
 0x6fa   :  { %v1801_v50 = vpop.f32.mrf.mxu0 }
 0x6fb   :  { %v1838_v24 = vadd.f32 %v1801_v50, %v1449_v42  ;;  %v1814_v27 = vpop.f32.mrf.mxu1 }
 0x6fd   :  { %v2876_v38 = vmul.f32 -1.442695, %v1838_v24 }
 0x6ff   :  { %3112 = vpow2.f32 %v2876_v38 }
 0x700   :  { %v1788_v36 = vpop.f32.mrf.mxu3 }
 0x701   :  { %v1818_v62 = vadd.f32 %v1788_v36, %v1420_v20 }
 0x702   :  { %v1803_v5 = vpop.f32.mrf.mxu0 }
 0x703   :  { %v2875_v59 = vmul.f32 -1.442695, %v1818_v62  ;;  %v1816_v0 = vpop.f32.mrf.mxu1 }
 0x705   :  { %v3113_v34 = vpop.eup %3112  ;;  %3114 = vpow2.f32 %v2875_v59  ;;  %v1858_v59 = vadd.f32 %v4103_v40, %v1814_v27 }
 0x706   :  { %v1842_v33 = vadd.f32 1.0, %v3113_v34 }
 0x708   :  { %v1790_v37 = vpop.f32.mrf.mxu3  ;;  %3116 = vrcp.f32 %v1842_v33  ;;  %vm1848_vm14 = vweird.f32 %v1842_v33 }
 0x709   :  { %v1478_v37 = vadd.f32 %v1477_v2, %v4105_v13 }
 0x70b   :  { %v3115_v9 = vpop.eup %3114 }
 0x70c   :  { %v1822_v29 = vadd.f32 1.0, %v3115_v9 }
 0x70e   :  { %3118 = vrcp.f32 %v1822_v29  ;;  %v3117_v42 = vpop.eup %3116  ;;  %v1834_v38 = vand.u32 2147483648, %v1822_v29  ;;  %v1832_v20 = vand.u32 2147483647, %v1822_v29  ;;  %vm1828_vm10 = vweird.f32 %v1822_v29 }
 0x70f   :  { %v1844_v50 = vmul.f32 %v3117_v42, %v1842_v33  ;;  %vm1849_vm13 = vweird.f32 %v3117_v42 }
 0x710   :  { %v1835_v5 = vor.u32 1.1754944e-38, %v1834_v38  ;;  %vm1833_vm12 = vcmp.eq.f32.partialorder %v1832_v20, 8.507059e+37  ;;  %vm1850_vm15 = vmor %vm1848_vm14, %vm1849_vm13 }
 0x711   :  { %v1845_v4 = vsub.f32 1.0, %v1844_v50  ;;  %v1854_v50 = vand.u32 2147483648, %v1842_v33 }
 0x713   :  { %v1846_v36 = vmul.f32 %v3117_v42, %v1845_v4 }
 0x714   :  { %v3119_v24 = vpop.eup %3118 }
 0x715   :  { %v1824_v26 = vmul.f32 %v3119_v24, %v1822_v29  ;;  %vm1829_vm9 = vweird.f32 %v3119_v24  ;;  %v1847_v9 = vadd.f32 %v3117_v42, %v1846_v36 }
 0x716   :  { %vm1830_vm11 = vmor %vm1828_vm10, %vm1829_vm9 }
 0x717   :  { %v1825_v31 = vsub.f32 1.0, %v1824_v26  ;;  %v1851_v4 = vsel %vm1850_vm15, %v3117_v42, %v1847_v9 }
 0x719   :  { %v1826_v1 = vmul.f32 %v3119_v24, %v1825_v31  ;;  %v1852_v31 = vand.u32 2147483647, %v1842_v33  ;;  %v1452_v33 = vadd.f32 %v4139_v30, %v4089_v6 }
 0x71b   :  { %v1827_v62 = vadd.f32 %v3119_v24, %v1826_v1  ;;  %v1855_v1 = vor.u32 1.1754944e-38, %v1854_v50  ;;  %vm1853_vm0 = vcmp.eq.f32.partialorder %v1852_v31, 8.507059e+37 }
 0x71d   :  { %v1831_v0 = vsel %vm1830_vm11, %v3119_v24, %v1827_v62  ;;  %v1856_v29 = vsel %vm1853_vm0, %v1855_v1, %v1851_v4 }
 0x71e   :  { %v1836_v34 = vsel %vm1833_vm12, %v1835_v5, %v1831_v0  ;;  %v1862_v38 = vsub.f32 1.0, %v1856_v29  ;;  %v1864_v20 = vmul.f32 %v1856_v29, %v4109_v7 }
 0x71f   :  { %v1859_v26 = vmul.f32 %v1858_v59, %v1836_v34 }
 0x721   :  { %v1860_v63 = vadd.f32 %v1859_v26, %v1478_v37 }
 0x723   :  { %3120 = vtanh.f32 %v1860_v63  ;;  %v1423_v63 = vadd.f32 %v4083_v60, %v4085_v16 }
 0x729   :  { %v3121_v27 = vpop.eup %3120 }
 0x72a   :  { %v1863_v24 = vmul.f32 %v3121_v27, %v1862_v38 }
 0x72c   :  { %v4167_v36 = vadd.f32 %v1864_v20, %v1863_v24 }
 0x72e   :  { %v1869_v2 = vpack.c.bf16 %v4167_v36, %v4167_v36 }
 0x730   :  { %1878 = vmatmul.bf16.vlgmr.msra.gmra.mxu2 %v1869_v2  ;;  %1891 = vmatmul.bf16.vlgmr.msrb.gmra.mxu3 %v1869_v2 }
 0x731   :  { %1904 = vmatmul.bf16.vlgmr.msrb.gmra.mxu0 %v1869_v2  ;;  %2078 = vmatpush.bf16.msra.mxu2 %v3990_v54 }
 0x732   :  { %2143 = vmatpush.bf16.msrb.mxu3 %v3883_v11  ;;  %2156 = vmatpush.bf16.msrb.mxu0 %v3930_v58 }
 0x735   :  { %2079 = vmatpush.bf16.msra.mxu2 %v3995_v14 }
 0x736   :  { %2144 = vmatpush.bf16.msrb.mxu3 %v3886_v15  ;;  %2157 = vmatpush.bf16.msrb.mxu0 %v3934_v18 }
 0x739   :  { %2080 = vmatpush.bf16.msra.mxu2 %v4000_v32 }
 0x73a   :  { %2145 = vmatpush.bf16.msrb.mxu3 %v3889_v53  ;;  %2158 = vmatpush.bf16.msrb.mxu0 %v3939_v35 }
 0x73d   :  { %2081 = vmatpush.bf16.msra.mxu2 %v4007_v47 }
 0x73e   :  { %2146 = vmatpush.bf16.msrb.mxu3 %v3894_v44  ;;  %2159 = vmatpush.bf16.msrb.mxu0 %v3944_v51 }
 0x741   :  { %2082 = vmatpush.bf16.msra.mxu2 %v4019_v55 }
 0x742   :  { %2147 = vmatpush.bf16.msrb.mxu3 %v3898_v49  ;;  %2160 = vmatpush.bf16.msrb.mxu0 %v3949_v10 }
 0x745   :  { %2083 = vmatpush.bf16.msra.mxu2 %v4026_v56 }
 0x746   :  { %2148 = vmatpush.bf16.msrb.mxu3 %v3903_v52  ;;  %2161 = vmatpush.bf16.msrb.mxu0 %v3957_v8 }
 0x749   :  { %2084 = vmatpush.bf16.msra.mxu2 %v4029_v21 }
 0x74a   :  { %2149 = vmatpush.bf16.msrb.mxu3 %v3906_v22  ;;  %2162 = vmatpush.bf16.msrb.mxu0 %v3962_v3 }
 0x74d   :  { %2085 = vmatpush.bf16.msra.mxu2 %v4037_v43 }
 0x74e   :  { %2150 = vmatpush.bf16.msrb.mxu3 %v3912_v19  ;;  %2163 = vmatpush.bf16.msrb.mxu0 %v3967_v12 }
 0x7ae   :  { %v1905_v7 = vpop.f32.mrf.mxu0 }
 0x7b3   :  { %v1879_v42 = vpop.f32.mrf.mxu2  ;;  %v1892_v62 = vpop.f32.mrf.mxu3 }
 0x7b4   :  { %v1909_v5 = vadd.f32 %v1879_v42, %v1423_v63  ;;  %v1929_v59 = vadd.f32 %v1892_v62, %v1452_v33 }
 0x7b6   :  { %v2877_v0 = vmul.f32 -1.442695, %v1909_v5  ;;  %v2878_v9 = vmul.f32 -1.442695, %v1929_v59  ;;  %v1907_v34 = vpop.f32.mrf.mxu0  ;;  %v1949_v5 = vadd.f32 %v4103_v40, %v1905_v7 }
 0x7b7   :  { %v1481_v34 = vadd.f32 %v4137_v45, %v4105_v13 }
 0x7b8   :  { %3122 = vpow2.f32 %v2877_v0 }
 0x7b9   :  { %3124 = vpow2.f32 %v2878_v9 }
 0x7bb   :  { %v1881_v37 = vpop.f32.mrf.mxu2  ;;  %v1894_v50 = vpop.f32.mrf.mxu3 }
 0x7be   :  { %v3123_v26 = vpop.eup %3122 }
 0x7bf   :  { %v3125_v31 = vpop.eup %3124  ;;  %v1913_v4 = vadd.f32 1.0, %v3123_v26 }
 0x7c0   :  { %v1933_v1 = vadd.f32 1.0, %v3125_v31 }
 0x7c1   :  { %3126 = vrcp.f32 %v1913_v4  ;;  %v1925_v24 = vand.u32 2147483648, %v1913_v4  ;;  %v1923_v63 = vand.u32 2147483647, %v1913_v4  ;;  %vm1919_vm2 = vweird.f32 %v1913_v4 }
 0x7c2   :  { %3128 = vrcp.f32 %v1933_v1  ;;  %v1945_v50 = vand.u32 2147483648, %v1933_v1  ;;  %vm1939_vm6 = vweird.f32 %v1933_v1  ;;  %v1943_v26 = vand.u32 2147483647, %v1933_v1 }
 0x7c3   :  { %v1926_v62 = vor.u32 1.1754944e-38, %v1925_v24  ;;  %vm1924_vm4 = vcmp.eq.f32.partialorder %v1923_v63, 8.507059e+37  ;;  %v1454_v63 = vadd.f32 %v4143_v39, %v4089_v6 }
 0x7c4   :  { %vm1944_vm8 = vcmp.eq.f32.partialorder %v1943_v26, 8.507059e+37 }
 0x7c7   :  { %v3127_v60 = vpop.eup %3126 }
 0x7c8   :  { %v3129_v29 = vpop.eup %3128  ;;  %v1915_v30 = vmul.f32 %v3127_v60, %v1913_v4  ;;  %vm1920_vm1 = vweird.f32 %v3127_v60  ;;  %v1946_v4 = vor.u32 1.1754944e-38, %v1945_v50 }
 0x7c9   :  { %v1935_v38 = vmul.f32 %v3129_v29, %v1933_v1  ;;  %vm1921_vm3 = vmor %vm1919_vm2, %vm1920_vm1  ;;  %vm1940_vm5 = vweird.f32 %v3129_v29 }
 0x7ca   :  { %v1916_v27 = vsub.f32 1.0, %v1915_v30  ;;  %vm1941_vm7 = vmor %vm1939_vm6, %vm1940_vm5 }
 0x7cb   :  { %v1936_v20 = vsub.f32 1.0, %v1935_v38 }
 0x7cc   :  { %v1917_v2 = vmul.f32 %v3127_v60, %v1916_v27 }
 0x7cd   :  { %v1937_v33 = vmul.f32 %v3129_v29, %v1936_v20 }
 0x7ce   :  { %v1918_v42 = vadd.f32 %v3127_v60, %v1917_v2 }
 0x7cf   :  { %v1938_v9 = vadd.f32 %v3129_v29, %v1937_v33 }
 0x7d0   :  { %v1922_v59 = vsel %vm1921_vm3, %v3127_v60, %v1918_v42 }
 0x7d1   :  { %v1927_v0 = vsel %vm1924_vm4, %v1926_v62, %v1922_v59  ;;  %v1942_v30 = vsel %vm1941_vm7, %v3129_v29, %v1938_v9 }
 0x7d2   :  { %v1950_v37 = vmul.f32 %v1949_v5, %v1927_v0  ;;  %v1947_v38 = vsel %vm1944_vm8, %v1946_v4, %v1942_v30 }
 0x7d3   :  { %v1953_v7 = vsub.f32 1.0, %v1947_v38  ;;  %v1955_v24 = vmul.f32 %v1947_v38, %v4167_v36  ;;  %v1425_v36 = vadd.f32 %v4091_v17, %v4085_v16 }
 0x7d4   :  { %v1951_v31 = vadd.f32 %v1950_v37, %v1481_v34 }
 0x7d6   :  { %3130 = vtanh.f32 %v1951_v31 }
 0x7dc   :  { %v3131_v60 = vpop.eup %3130 }
 0x7dd   :  { %v1954_v27 = vmul.f32 %v3131_v60, %v1953_v7 }
 0x7df   :  { %v4203_v20 = vadd.f32 %v1955_v24, %v1954_v27 }
 0x7e1   :  { %v1960_v45 = vpack.c.bf16 %v4203_v20, %v4203_v20 }
 0x7e3   :  { %1969 = vmatmul.bf16.vlgmr.msrb.gmra.mxu1 %v1960_v45  ;;  %1982 = vmatmul.bf16.vlgmr.msrb.gmra.mxu2 %v1960_v45 }
 0x7e4   :  { %1995 = vmatmul.bf16.vlgmr.msra.gmra.mxu3 %v1960_v45  ;;  %2169 = vmatpush.bf16.msrb.mxu1 %v3990_v54 }
 0x7e5   :  { %2234 = vmatpush.bf16.msrb.mxu2 %v3883_v11  ;;  %2247 = vmatpush.bf16.msra.mxu3 %v3930_v58 }
 0x7e8   :  { %2170 = vmatpush.bf16.msrb.mxu1 %v3995_v14 }
 0x7e9   :  { %2235 = vmatpush.bf16.msrb.mxu2 %v3886_v15  ;;  %2248 = vmatpush.bf16.msra.mxu3 %v3934_v18 }
 0x7ec   :  { %2171 = vmatpush.bf16.msrb.mxu1 %v4000_v32 }
 0x7ed   :  { %2236 = vmatpush.bf16.msrb.mxu2 %v3889_v53  ;;  %2249 = vmatpush.bf16.msra.mxu3 %v3939_v35 }
 0x7f0   :  { %2172 = vmatpush.bf16.msrb.mxu1 %v4007_v47 }
 0x7f1   :  { %2237 = vmatpush.bf16.msrb.mxu2 %v3894_v44  ;;  %2250 = vmatpush.bf16.msra.mxu3 %v3944_v51 }
 0x7f4   :  { %2173 = vmatpush.bf16.msrb.mxu1 %v4019_v55 }
 0x7f5   :  { %2238 = vmatpush.bf16.msrb.mxu2 %v3898_v49  ;;  %2251 = vmatpush.bf16.msra.mxu3 %v3949_v10 }
 0x7f8   :  { %2174 = vmatpush.bf16.msrb.mxu1 %v4026_v56 }
 0x7f9   :  { %2239 = vmatpush.bf16.msrb.mxu2 %v3903_v52  ;;  %2252 = vmatpush.bf16.msra.mxu3 %v3957_v8 }
 0x7fc   :  { %2175 = vmatpush.bf16.msrb.mxu1 %v4029_v21 }
 0x7fd   :  { %2240 = vmatpush.bf16.msrb.mxu2 %v3906_v22  ;;  %2253 = vmatpush.bf16.msra.mxu3 %v3962_v3 }
 0x800   :  { %2176 = vmatpush.bf16.msrb.mxu1 %v4037_v43 }
 0x801   :  { %2241 = vmatpush.bf16.msrb.mxu2 %v3912_v19  ;;  %2254 = vmatpush.bf16.msra.mxu3 %v3967_v12 }
 0x860   :  { %v1970_v1 = vpop.f32.mrf.mxu1 }
 0x861   :  { %v2000_v29 = vadd.f32 %v1970_v1, %v1425_v36 }
 0x863   :  { %v2879_v2 = vmul.f32 -1.442695, %v2000_v29  ;;  %v1483_v29 = vadd.f32 %v4141_v41, %v4105_v13 }
 0x865   :  { %3132 = vpow2.f32 %v2879_v2 }
 0x866   :  { %v1983_v33 = vpop.f32.mrf.mxu2 }
 0x867   :  { %v2020_v42 = vadd.f32 %v1983_v33, %v1454_v63  ;;  %v1996_v62 = vpop.f32.mrf.mxu3 }
 0x868   :  { %v1972_v5 = vpop.f32.mrf.mxu1  ;;  %v2040_v1 = vadd.f32 %v4103_v40, %v1996_v62 }
 0x869   :  { %v2880_v59 = vmul.f32 -1.442695, %v2020_v42 }
 0x86b   :  { %v3133_v0 = vpop.eup %3132  ;;  %3134 = vpow2.f32 %v2880_v59 }
 0x86c   :  { %v2004_v9 = vadd.f32 1.0, %v3133_v0 }
 0x86e   :  { %3136 = vrcp.f32 %v2004_v9  ;;  %v1985_v34 = vpop.f32.mrf.mxu2  ;;  %v2016_v4 = vand.u32 2147483648, %v2004_v9  ;;  %v2014_v38 = vand.u32 2147483647, %v2004_v9  ;;  %vm2010_vm10 = vweird.f32 %v2004_v9 }
 0x86f   :  { %v1998_v37 = vpop.f32.mrf.mxu3 }
 0x870   :  { %v2017_v24 = vor.u32 1.1754944e-38, %v2016_v4  ;;  %vm2015_vm12 = vcmp.eq.f32.partialorder %v2014_v38, 8.507059e+37 }
 0x871   :  { %v3135_v50 = vpop.eup %3134 }
 0x872   :  { %v2024_v17 = vadd.f32 1.0, %v3135_v50 }
 0x874   :  { %v3137_v26 = vpop.eup %3136  ;;  %3138 = vrcp.f32 %v2024_v17  ;;  %v2036_v33 = vand.u32 2147483648, %v2024_v17  ;;  %v2034_v5 = vand.u32 2147483647, %v2024_v17  ;;  %vm2030_vm14 = vweird.f32 %v2024_v17 }
 0x875   :  { %v2006_v31 = vmul.f32 %v3137_v26, %v2004_v9  ;;  %vm2011_vm9 = vweird.f32 %v3137_v26 }
 0x876   :  { %vm2012_vm11 = vmor %vm2010_vm10, %vm2011_vm9  ;;  %v2037_v9 = vor.u32 1.1754944e-38, %v2036_v33  ;;  %vm2035_vm0 = vcmp.eq.f32.partialorder %v2034_v5, 8.507059e+37 }
 0x877   :  { %v2007_v30 = vsub.f32 1.0, %v2006_v31 }
 0x879   :  { %v2008_v39 = vmul.f32 %v3137_v26, %v2007_v30 }
 0x87a   :  { %v3139_v7 = vpop.eup %3138 }
 0x87b   :  { %v2026_v60 = vmul.f32 %v3139_v7, %v2024_v17  ;;  %v2009_v27 = vadd.f32 %v3137_v26, %v2008_v39  ;;  %vm2031_vm13 = vweird.f32 %v3139_v7 }
 0x87c   :  { %vm2032_vm15 = vmor %vm2030_vm14, %vm2031_vm13 }
 0x87d   :  { %v2027_v45 = vsub.f32 1.0, %v2026_v60  ;;  %v2013_v36 = vsel %vm2012_vm11, %v3137_v26, %v2009_v27 }
 0x87e   :  { %v2018_v2 = vsel %vm2015_vm12, %v2017_v24, %v2013_v36 }
 0x87f   :  { %v2028_v63 = vmul.f32 %v3139_v7, %v2027_v45  ;;  %v2041_v42 = vmul.f32 %v2040_v1, %v2018_v2 }
 0x881   :  { %v2029_v59 = vadd.f32 %v3139_v7, %v2028_v63  ;;  %v2042_v0 = vadd.f32 %v2041_v42, %v1483_v29  ;;  %v1486_v63 = vadd.f32 %v4145_v28, %v4105_v13 }
 0x883   :  { %v2033_v34 = vsel %vm2032_vm15, %v3139_v7, %v2029_v59  ;;  %3140 = vtanh.f32 %v2042_v0 }
 0x884   :  { %v2038_v37 = vsel %vm2035_vm0, %v2037_v9, %v2033_v34 }
 0x885   :  { %v2044_v50 = vsub.f32 1.0, %v2038_v37  ;;  %v2046_v41 = vmul.f32 %v2038_v37, %v4203_v20 }
 0x889   :  { %v3141_v62 = vpop.eup %3140 }
 0x88a   :  { %v2045_v26 = vmul.f32 %v3141_v62, %v2044_v50 }
 0x88c   :  { %v4239_v31 = vadd.f32 %v2046_v41, %v2045_v26 }
 0x88e   :  { %v2051_v30 = vpack.c.bf16 %v4239_v31, %v4239_v31 }
 0x890   :  { %2060 = vmatmul.bf16.vlgmr.msra.gmra.mxu0 %v2051_v30  ;;  %2073 = vmatmul.bf16.vlgmr.msra.gmra.mxu1 %v2051_v30 }
 0x891   :  { %2086 = vmatmul.bf16.vlgmr.msra.gmra.mxu2 %v2051_v30  ;;  %2260 = vmatpush.bf16.msra.mxu0 %v3990_v54 }
 0x892   :  { %2325 = vmatpush.bf16.msra.mxu1 %v3883_v11  ;;  %2338 = vmatpush.bf16.msra.mxu2 %v3930_v58  ;;  %v1428_v11 = vadd.f32 %v4095_v46, %v4085_v16 }
 0x895   :  { %2261 = vmatpush.bf16.msra.mxu0 %v3995_v14 }
 0x896   :  { %2326 = vmatpush.bf16.msra.mxu1 %v3886_v15  ;;  %2339 = vmatpush.bf16.msra.mxu2 %v3934_v18  ;;  %v1457_v15 = vadd.f32 %v4147_v61, %v4089_v6 }
 0x899   :  { %2262 = vmatpush.bf16.msra.mxu0 %v4000_v32 }
 0x89a   :  { %2327 = vmatpush.bf16.msra.mxu1 %v3889_v53  ;;  %2340 = vmatpush.bf16.msra.mxu2 %v3939_v35 }
 0x89d   :  { %2263 = vmatpush.bf16.msra.mxu0 %v4007_v47 }
 0x89e   :  { %2328 = vmatpush.bf16.msra.mxu1 %v3894_v44  ;;  %2341 = vmatpush.bf16.msra.mxu2 %v3944_v51 }
 0x8a1   :  { %2264 = vmatpush.bf16.msra.mxu0 %v4019_v55 }
 0x8a2   :  { %2329 = vmatpush.bf16.msra.mxu1 %v3898_v49  ;;  %2342 = vmatpush.bf16.msra.mxu2 %v3949_v10 }
 0x8a5   :  { %2265 = vmatpush.bf16.msra.mxu0 %v4026_v56 }
 0x8a6   :  { %2330 = vmatpush.bf16.msra.mxu1 %v3903_v52  ;;  %2343 = vmatpush.bf16.msra.mxu2 %v3957_v8 }
 0x8a9   :  { %2266 = vmatpush.bf16.msra.mxu0 %v4029_v21 }
 0x8aa   :  { %2331 = vmatpush.bf16.msra.mxu1 %v3906_v22  ;;  %2344 = vmatpush.bf16.msra.mxu2 %v3962_v3 }
 0x8ad   :  { %2267 = vmatpush.bf16.msra.mxu0 %v4037_v43 }
 0x8ae   :  { %2332 = vmatpush.bf16.msra.mxu1 %v3912_v19  ;;  %2345 = vmatpush.bf16.msra.mxu2 %v3967_v12 }
 0x90d   :  { %v2061_v53 = vpop.f32.mrf.mxu0  ;;  %v2074_v44 = vpop.f32.mrf.mxu1 }
 0x90e   :  { %v2091_v49 = vadd.f32 %v2061_v53, %v1428_v11  ;;  %v2111_v52 = vadd.f32 %v2074_v44, %v1457_v15 }
 0x910   :  { %v2881_v58 = vmul.f32 -1.442695, %v2091_v49  ;;  %v2882_v22 = vmul.f32 -1.442695, %v2111_v52 }
 0x912   :  { %3142 = vpow2.f32 %v2881_v58 }
 0x913   :  { %3144 = vpow2.f32 %v2882_v22 }
 0x914   :  { %v2087_v18 = vpop.f32.mrf.mxu2 }
 0x915   :  { %v2063_v35 = vpop.f32.mrf.mxu0  ;;  %v2076_v51 = vpop.f32.mrf.mxu1  ;;  %v2131_v1 = vadd.f32 %v4103_v40, %v2087_v18 }
 0x918   :  { %v3143_v19 = vpop.eup %3142 }
 0x919   :  { %v3145_v10 = vpop.eup %3144  ;;  %v2095_v8 = vadd.f32 1.0, %v3143_v19 }
 0x91a   :  { %v2115_v3 = vadd.f32 1.0, %v3145_v10 }
 0x91b   :  { %3146 = vrcp.f32 %v2095_v8  ;;  %v2107_v38 = vand.u32 2147483648, %v2095_v8  ;;  %v2105_v60 = vand.u32 2147483647, %v2095_v8  ;;  %vm2101_vm2 = vweird.f32 %v2095_v8 }
 0x91c   :  { %3148 = vrcp.f32 %v2115_v3  ;;  %v2089_v12 = vpop.f32.mrf.mxu2  ;;  %v2127_v33 = vand.u32 2147483648, %v2115_v3  ;;  %vm2121_vm6 = vweird.f32 %v2115_v3  ;;  %v2125_v5 = vand.u32 2147483647, %v2115_v3 }
 0x91d   :  { %v2108_v45 = vor.u32 1.1754944e-38, %v2107_v38  ;;  %vm2106_vm4 = vcmp.eq.f32.partialorder %v2105_v60, 8.507059e+37 }
 0x91e   :  { %v2128_v9 = vor.u32 1.1754944e-38, %v2127_v33  ;;  %vm2126_vm8 = vcmp.eq.f32.partialorder %v2125_v5, 8.507059e+37  ;;  %v4375_v5 = vld [vmem:[#allocation24_spill] sm:$0xff] }
 0x921   :  { %v3147_v46 = vpop.eup %3146 }
 0x922   :  { %v3149_v61 = vpop.eup %3148  ;;  %v2097_v20 = vmul.f32 %v3147_v46, %v2095_v8  ;;  %vm2102_vm1 = vweird.f32 %v3147_v46 }
 0x923   :  { %v2117_v17 = vmul.f32 %v3149_v61, %v2115_v3  ;;  %vm2103_vm3 = vmor %vm2101_vm2, %vm2102_vm1  ;;  %vm2122_vm5 = vweird.f32 %v3149_v61 }
 0x924   :  { %v2098_v4 = vsub.f32 1.0, %v2097_v20  ;;  %vm2123_vm7 = vmor %vm2121_vm6, %vm2122_vm5 }
 0x925   :  { %v2118_v39 = vsub.f32 1.0, %v2117_v17 }
 0x926   :  { %v2099_v7 = vmul.f32 %v3147_v46, %v2098_v4  ;;  %v1488_v4 = vadd.f32 %v4149_v23, %v4105_v13 }
 0x927   :  { %v2119_v27 = vmul.f32 %v3149_v61, %v2118_v39 }
 0x928   :  { %v2100_v24 = vadd.f32 %v3147_v46, %v2099_v7 }
 0x929   :  { %v2120_v29 = vadd.f32 %v3149_v61, %v2119_v27 }
 0x92a   :  { %v2104_v36 = vsel %vm2103_vm3, %v3147_v46, %v2100_v24 }
 0x92b   :  { %v2109_v2 = vsel %vm2106_vm4, %v2108_v45, %v2104_v36  ;;  %v2124_v0 = vsel %vm2123_vm7, %v3149_v61, %v2120_v29 }
 0x92c   :  { %v2132_v42 = vmul.f32 %v2131_v1, %v2109_v2  ;;  %v2129_v34 = vsel %vm2126_vm8, %v2128_v9, %v2124_v0 }
 0x92d   :  { %v2135_v37 = vsub.f32 1.0, %v2129_v34  ;;  %v2137_v26 = vmul.f32 %v2129_v34, %v4239_v31  ;;  %v1459_v31 = vadd.f32 %v4151_v48, %v4089_v6 }
 0x92e   :  { %v2133_v59 = vadd.f32 %v2132_v42, %v1486_v63  ;;  %v1433_v42 = vadd.f32 %v4099_v25, %v4085_v16 }
 0x930   :  { %3150 = vtanh.f32 %v2133_v59  ;;  %v1462_v59 = vadd.f32 %v4375_v5, %v4089_v6 }
 0x936   :  { %v3151_v50 = vpop.eup %3150 }
 0x937   :  { %v2136_v62 = vmul.f32 %v3151_v50, %v2135_v37 }
 0x939   :  { %v4275_v41 = vadd.f32 %v2137_v26, %v2136_v62 }
 0x93b   :  { %v2142_v28 = vpack.c.bf16 %v4275_v41, %v4275_v41 }
 0x93d   :  { %2151 = vmatmul.bf16.vlgmr.msrb.gmra.mxu3 %v2142_v28  ;;  %2164 = vmatmul.bf16.vlgmr.msrb.gmra.mxu0 %v2142_v28 }
 0x93e   :  { %2177 = vmatmul.bf16.vlgmr.msrb.gmra.mxu1 %v2142_v28  ;;  %2351 = vmatpush.bf16.msrb.mxu3 %v3990_v54 }
 0x942   :  { %2352 = vmatpush.bf16.msrb.mxu3 %v3995_v14  ;;  %v1430_v14 = vadd.f32 %v4097_v57, %v4085_v16 }
 0x946   :  { %2353 = vmatpush.bf16.msrb.mxu3 %v4000_v32 }
 0x94a   :  { %2354 = vmatpush.bf16.msrb.mxu3 %v4007_v47 }
 0x94e   :  { %2355 = vmatpush.bf16.msrb.mxu3 %v4019_v55 }
 0x952   :  { %2356 = vmatpush.bf16.msrb.mxu3 %v4026_v56 }
 0x956   :  { %2357 = vmatpush.bf16.msrb.mxu3 %v4029_v21 }
 0x95a   :  { %2358 = vmatpush.bf16.msrb.mxu3 %v4037_v43 }
 0x9ba   :  { %v2165_v30 = vpop.f32.mrf.mxu0 }
 0x9bb   :  { %v2202_v11 = vadd.f32 %v2165_v30, %v1459_v31  ;;  %v2178_v54 = vpop.f32.mrf.mxu1 }
 0x9bc   :  { %v2222_v46 = vadd.f32 %v4103_v40, %v2178_v54 }
 0x9bd   :  { %v2884_v15 = vmul.f32 -1.442695, %v2202_v11 }
 0x9bf   :  { %3152 = vpow2.f32 %v2884_v15 }
 0x9c0   :  { %v2152_v32 = vpop.f32.mrf.mxu3 }
 0x9c1   :  { %v2182_v47 = vadd.f32 %v2152_v32, %v1430_v14 }
 0x9c2   :  { %v2167_v55 = vpop.f32.mrf.mxu0 }
 0x9c3   :  { %v2883_v53 = vmul.f32 -1.442695, %v2182_v47  ;;  %v2180_v56 = vpop.f32.mrf.mxu1 }
 0x9c5   :  { %v3153_v44 = vpop.eup %3152  ;;  %3154 = vpow2.f32 %v2883_v53 }
 0x9c6   :  { %v2206_v21 = vadd.f32 1.0, %v3153_v44 }
 0x9c8   :  { %v2154_v43 = vpop.f32.mrf.mxu3  ;;  %3156 = vrcp.f32 %v2206_v21  ;;  %v2218_v39 = vand.u32 2147483648, %v2206_v21  ;;  %vm2212_vm14 = vweird.f32 %v2206_v21  ;;  %v2216_v7 = vand.u32 2147483647, %v2206_v21 }
 0x9ca   :  { %v2219_v24 = vor.u32 1.1754944e-38, %v2218_v39  ;;  %vm2217_vm0 = vcmp.eq.f32.partialorder %v2216_v7, 8.507059e+37  ;;  %v3007_v39 = vld [vmem:[%s4352_s9 + $0x38] sm:$0xff]  ;;  %v3005_v7 = vld [vmem:[%s4352_s9 + $0x28] sm:$0xff] }
 0x9cb   :  { %v3155_v49 = vpop.eup %3154  ;;  %2485 = vmatpush.bf16.msrb.mxu0 %v3007_v39 }
 0x9cc   :  { %v2186_v48 = vadd.f32 1.0, %v3155_v49 }
 0x9ce   :  { %3158 = vrcp.f32 %v2186_v48  ;;  %v3157_v52 = vpop.eup %3156  ;;  %v2198_v51 = vand.u32 2147483648, %v2186_v48  ;;  %v2196_v10 = vand.u32 2147483647, %v2186_v48  ;;  %vm2192_vm10 = vweird.f32 %v2186_v48 }
 0x9cf   :  { %v2208_v58 = vmul.f32 %v3157_v52, %v2206_v21  ;;  %vm2213_vm13 = vweird.f32 %v3157_v52 }
 0x9d0   :  { %v2199_v12 = vor.u32 1.1754944e-38, %v2198_v51  ;;  %vm2197_vm12 = vcmp.eq.f32.partialorder %v2196_v10, 8.507059e+37  ;;  %vm2214_vm15 = vmor %vm2212_vm14, %vm2213_vm13 }
 0x9d1   :  { %v2209_v35 = vsub.f32 1.0, %v2208_v58 }
 0x9d3   :  { %v2210_v8 = vmul.f32 %v3157_v52, %v2209_v35 }
 0x9d4   :  { %v3159_v22 = vpop.eup %3158 }
 0x9d5   :  { %v2188_v18 = vmul.f32 %v3159_v22, %v2186_v48  ;;  %vm2193_vm9 = vweird.f32 %v3159_v22  ;;  %v2211_v20 = vadd.f32 %v3157_v52, %v2210_v8 }
 0x9d6   :  { %vm2194_vm11 = vmor %vm2192_vm10, %vm2193_vm9 }
 0x9d7   :  { %v2189_v57 = vsub.f32 1.0, %v2188_v18  ;;  %v2215_v27 = vsel %vm2214_vm15, %v3157_v52, %v2211_v20  ;;  %v4376_v18 = vld [vmem:[#allocation21_spill] sm:$0xff] }
 0x9d8   :  { %v2220_v45 = vsel %vm2217_vm0, %v2219_v24, %v2215_v27  ;;  %v1491_v35 = vadd.f32 %v4376_v18, %v4105_v13  ;;  %v4377_v27 = vld [vmem:[#allocation23_spill] sm:$0xff] }
 0x9d9   :  { %v2190_v19 = vmul.f32 %v3159_v22, %v2189_v57  ;;  %v2226_v36 = vsub.f32 1.0, %v2220_v45  ;;  %v2228_v2 = vmul.f32 %v2220_v45, %v4275_v41  ;;  %v1435_v24 = vadd.f32 %v4377_v27, %v4085_v16 }
 0x9db   :  { %v2191_v3 = vadd.f32 %v3159_v22, %v2190_v19 }
 0x9dd   :  { %v2195_v61 = vsel %vm2194_vm11, %v3159_v22, %v2191_v3 }
 0x9de   :  { %v2200_v17 = vsel %vm2197_vm12, %v2199_v12, %v2195_v61 }
 0x9df   :  { %v2223_v38 = vmul.f32 %v2222_v46, %v2200_v17 }
 0x9e1   :  { %v2224_v60 = vadd.f32 %v2223_v38, %v1488_v4  ;;  %v3006_v38 = vld [vmem:[%s4352_s9 + $0x30] sm:$0xff] }
 0x9e2   :  { %2486 = vmatpush.bf16.msrb.mxu0 %v3006_v38 }
 0x9e3   :  { %3160 = vtanh.f32 %v2224_v60  ;;  %v3004_v60 = vld [vmem:[%s4352_s9 + $0x20] sm:$0xff] }
 0x9e6   :  { %2487 = vmatpush.bf16.msrb.mxu0 %v3005_v7 }
 0x9e9   :  { %v3161_v1 = vpop.eup %3160 }
 0x9ea   :  { %v2227_v29 = vmul.f32 %v3161_v1, %v2226_v36  ;;  %2488 = vmatpush.bf16.msrb.mxu0 %v3004_v60  ;;  %v3003_v1 = vld [vmem:[%s4352_s9 + $0x18] sm:$0xff] }
 0x9ec   :  { %v2229_v63 = vadd.f32 %v2228_v2, %v2227_v29  ;;  %v4378_v2 = vld [vmem:[#allocation22_spill] sm:$0xff] }
 0x9ee   :  { %v2233_v33 = vpack.c.bf16 %v2229_v63, %v2229_v63  ;;  %2489 = vmatpush.bf16.msrb.mxu0 %v3003_v1 }
 0x9f0   :  { %2242 = vmatmul.bf16.vlgmr.msrb.gmra.mxu2 %v2233_v33  ;;  %2255 = vmatmul.bf16.vlgmr.msra.gmra.mxu3 %v2233_v33 }
 0x9f1   :  { %2268 = vmatmul.bf16.vlgmr.msra.gmra.mxu0 %v2233_v33 }
 0xa6e   :  { %v2269_v23 = vpop.f32.mrf.mxu0 }
 0xa6f   :  { %v2313_v48 = vadd.f32 %v4103_v40, %v2269_v23  ;;  %v3002_v23 = vld [vmem:[%s4352_s9 + $0x10] sm:$0xff] }
 0xa70   :  { %2490 = vmatpush.bf16.msrb.mxu0 %v3002_v23 }
 0xa73   :  { %v2243_v0 = vpop.f32.mrf.mxu2  ;;  %v2256_v9 = vpop.f32.mrf.mxu3 }
 0xa74   :  { %v2273_v34 = vadd.f32 %v2243_v0, %v1433_v42  ;;  %v2293_v37 = vadd.f32 %v2256_v9, %v1462_v59  ;;  %v3001_v0 = vld [vmem:[%s4352_s9 + $0x8] sm:$0xff] }
 0xa75   :  { %2491 = vmatpush.bf16.msrb.mxu0 %v3001_v0 }
 0xa76   :  { %v2885_v50 = vmul.f32 -1.442695, %v2273_v34  ;;  %v2886_v62 = vmul.f32 -1.442695, %v2293_v37  ;;  %v2271_v26 = vpop.f32.mrf.mxu0 }
 0xa78   :  { %3162 = vpow2.f32 %v2885_v50 }
 0xa79   :  { %3164 = vpow2.f32 %v2886_v62 }
 0xa7b   :  { %v2245_v41 = vpop.f32.mrf.mxu2  ;;  %v2258_v28 = vpop.f32.mrf.mxu3 }
 0xa7e   :  { %v3163_v31 = vpop.eup %3162 }
 0xa7f   :  { %v3165_v30 = vpop.eup %3164  ;;  %v2277_v11 = vadd.f32 1.0, %v3163_v31 }
 0xa80   :  { %v2297_v54 = vadd.f32 1.0, %v3165_v30 }
 0xa81   :  { %3166 = vrcp.f32 %v2277_v11  ;;  %v2289_v55 = vand.u32 2147483648, %v2277_v11  ;;  %v2287_v44 = vand.u32 2147483647, %v2277_v11  ;;  %vm2283_vm2 = vweird.f32 %v2277_v11 }
 0xa82   :  { %3168 = vrcp.f32 %v2297_v54  ;;  %v2309_v51 = vand.u32 2147483648, %v2297_v54  ;;  %vm2303_vm6 = vweird.f32 %v2297_v54  ;;  %v2307_v19 = vand.u32 2147483647, %v2297_v54 }
 0xa83   :  { %v2290_v49 = vor.u32 1.1754944e-38, %v2289_v55  ;;  %vm2288_vm4 = vcmp.eq.f32.partialorder %v2287_v44, 8.507059e+37  ;;  %v4379_v44 = vld [vmem:[#allocation25_spill] sm:$0xff] }
 0xa84   :  { %v2310_v3 = vor.u32 1.1754944e-38, %v2309_v51  ;;  %vm2308_vm8 = vcmp.eq.f32.partialorder %v2307_v19, 8.507059e+37 }
 0xa87   :  { %v3167_v25 = vpop.eup %3166 }
 0xa88   :  { %v3169_v15 = vpop.eup %3168  ;;  %v2279_v14 = vmul.f32 %v3167_v25, %v2277_v11  ;;  %vm2284_vm1 = vweird.f32 %v3167_v25 }
 0xa89   :  { %v2299_v32 = vmul.f32 %v3169_v15, %v2297_v54  ;;  %vm2285_vm3 = vmor %vm2283_vm2, %vm2284_vm1  ;;  %vm2304_vm5 = vweird.f32 %v3169_v15 }
 0xa8a   :  { %v2280_v47 = vsub.f32 1.0, %v2279_v14  ;;  %vm2305_vm7 = vmor %vm2303_vm6, %vm2304_vm5 }
 0xa8b   :  { %v2300_v53 = vsub.f32 1.0, %v2299_v32 }
 0xa8c   :  { %v2281_v56 = vmul.f32 %v3167_v25, %v2280_v47 }
 0xa8d   :  { %v2301_v21 = vmul.f32 %v3169_v15, %v2300_v53  ;;  %v3187_v53 = vld [vmem:[#allocation16] ss:$0 sm:$0xff] }
 0xa8e   :  { %v2282_v43 = vadd.f32 %v3167_v25, %v2281_v56 }
 0xa8f   :  { %v2302_v22 = vadd.f32 %v3169_v15, %v2301_v21  ;;  %v1493_v21 = vadd.f32 %v4379_v44, %v4105_v13 }
 0xa90   :  { %v2286_v52 = vsel %vm2285_vm3, %v3167_v25, %v2282_v43 }
 0xa91   :  { %v2291_v58 = vsel %vm2288_vm4, %v2290_v49, %v2286_v52  ;;  %v2306_v8 = vsel %vm2305_vm7, %v3169_v15, %v2302_v22 }
 0xa92   :  { %v2314_v57 = vmul.f32 %v2313_v48, %v2291_v58  ;;  %v2311_v12 = vsel %vm2308_vm8, %v2310_v3, %v2306_v8 }
 0xa93   :  { %v2317_v40 = vsub.f32 1.0, %v2311_v12  ;;  %v2319_v20 = vmul.f32 %v2311_v12, %v2229_v63  ;;  %v1464_v63 = vadd.f32 %v4378_v2, %v4089_v6  ;;  %v3000_v6 = vld [vmem:[%s4352_s9] sm:$0xff] }
 0xa94   :  { %v2315_v10 = vadd.f32 %v2314_v57, %v1491_v35  ;;  %2492 = vmatpush.bf16.msrb.mxu0 %v3000_v6 }
 0xa96   :  { %3170 = vtanh.f32 %v2315_v10 }
 0xa9c   :  { %v3171_v46 = vpop.eup %3170 }
 0xa9d   :  { %v2318_v61 = vmul.f32 %v3171_v46, %v2317_v40  ;;  %v3021_v40 = vld [vmem:[%s4353_s10] ss:$0 sm:$0xff] }
 0xa9f   :  { %v4302_v17 = vadd.f32 %v2319_v20, %v2318_v61 }
 0xaa1   :  { %v2324_v4 = vpack.c.bf16 %v4302_v17, %v4302_v17 }
 0xaa3   :  { %2333 = vmatmul.bf16.vlgmr.msra.gmra.mxu1 %v2324_v4  ;;  %2346 = vmatmul.bf16.vlgmr.msra.gmra.mxu2 %v2324_v4 }
 0xaa4   :  { %2359 = vmatmul.bf16.vlgmr.msrb.gmra.mxu3 %v2324_v4 }
 0xb20   :  { %v2334_v45 = vpop.f32.mrf.mxu1 }
 0xb21   :  { %v2364_v36 = vadd.f32 %v2334_v45, %v1435_v24 }
 0xb23   :  { %v2887_v29 = vmul.f32 -1.442695, %v2364_v36 }
 0xb25   :  { %3172 = vpow2.f32 %v2887_v29 }
 0xb26   :  { %v2347_v33 = vpop.f32.mrf.mxu2 }
 0xb27   :  { %v2384_v42 = vadd.f32 %v2347_v33, %v1464_v63  ;;  %v2360_v16 = vpop.f32.mrf.mxu3 }
 0xb28   :  { %v2336_v5 = vpop.f32.mrf.mxu1  ;;  %v2404_v56 = vadd.f32 %v3187_v53, %v2360_v16 }
 0xb29   :  { %v2888_v59 = vmul.f32 -1.442695, %v2384_v42 }
 0xb2b   :  { %v3173_v9 = vpop.eup %3172  ;;  %3174 = vpow2.f32 %v2888_v59 }
 0xb2c   :  { %v2368_v34 = vadd.f32 1.0, %v3173_v9 }
 0xb2e   :  { %3176 = vrcp.f32 %v2368_v34  ;;  %v2349_v37 = vpop.f32.mrf.mxu2  ;;  %v2380_v30 = vand.u32 2147483648, %v2368_v34  ;;  %v2378_v54 = vand.u32 2147483647, %v2368_v34  ;;  %vm2374_vm10 = vweird.f32 %v2368_v34 }
 0xb2f   :  { %v2362_v50 = vpop.f32.mrf.mxu3 }
 0xb30   :  { %v2381_v32 = vor.u32 1.1754944e-38, %v2380_v30  ;;  %vm2379_vm12 = vcmp.eq.f32.partialorder %v2378_v54, 8.507059e+37 }
 0xb31   :  { %v3175_v62 = vpop.eup %3174 }
 0xb32   :  { %v2388_v26 = vadd.f32 1.0, %v3175_v62 }
 0xb34   :  { %v3177_v41 = vpop.eup %3176  ;;  %3178 = vrcp.f32 %v2388_v26  ;;  %v2400_v48 = vand.u32 2147483648, %v2388_v26  ;;  %v2398_v58 = vand.u32 2147483647, %v2388_v26  ;;  %vm2394_vm14 = vweird.f32 %v2388_v26 }
 0xb35   :  { %v2370_v28 = vmul.f32 %v3177_v41, %v2368_v34  ;;  %vm2375_vm9 = vweird.f32 %v3177_v41 }
 0xb36   :  { %vm2376_vm11 = vmor %vm2374_vm10, %vm2375_vm9  ;;  %v2401_v35 = vor.u32 1.1754944e-38, %v2400_v48  ;;  %vm2399_vm0 = vcmp.eq.f32.partialorder %v2398_v58, 8.507059e+37 }
 0xb37   :  { %v2371_v31 = vsub.f32 1.0, %v2370_v28 }
 0xb39   :  { %v2372_v11 = vmul.f32 %v3177_v41, %v2371_v31 }
 0xb3a   :  { %v3179_v25 = vpop.eup %3178 }
 0xb3b   :  { %v2390_v15 = vmul.f32 %v3179_v25, %v2388_v26  ;;  %v2373_v14 = vadd.f32 %v3177_v41, %v2372_v11  ;;  %vm2395_vm13 = vweird.f32 %v3179_v25 }
 0xb3c   :  { %vm2396_vm15 = vmor %vm2394_vm14, %vm2395_vm13 }
 0xb3d   :  { %v2391_v47 = vsub.f32 1.0, %v2390_v15  ;;  %v2377_v55 = vsel %vm2376_vm11, %v3177_v41, %v2373_v14 }
 0xb3e   :  { %v2382_v43 = vsel %vm2379_vm12, %v2381_v32, %v2377_v55 }
 0xb3f   :  { %v2392_v49 = vmul.f32 %v3179_v25, %v2391_v47  ;;  %v2405_v52 = vmul.f32 %v2404_v56, %v2382_v43 }
 0xb41   :  { %v2393_v22 = vadd.f32 %v3179_v25, %v2392_v49  ;;  %v2406_v18 = vadd.f32 %v2405_v52, %v1493_v21 }
 0xb43   :  { %v2397_v57 = vsel %vm2396_vm15, %v3179_v25, %v2393_v22  ;;  %3180 = vtanh.f32 %v2406_v18 }
 0xb44   :  { %v2402_v51 = vsel %vm2399_vm0, %v2401_v35, %v2397_v57 }
 0xb45   :  { %v2408_v19 = vsub.f32 1.0, %v2402_v51  ;;  %v2410_v13 = vmul.f32 %v2402_v51, %v4302_v17 }
 0xb49   :  { %v3181_v10 = vpop.eup %3180 }
 0xb4a   :  { %v2409_v8 = vmul.f32 %v3181_v10, %v2408_v19 }
 0xb4c   :  { %v2411_v3 = vadd.f32 %v2410_v13, %v2409_v8 }
 0xb4e   :  { %v2416_v12 = vpack.c.bf16 %v2411_v3, %v2411_v3 }
 0xb50   :  { %2493 = vmatmul.bf16.vlgmr.msrb.gmra.mxu0 %v2416_v12 }
 0xbcd   :  { %v2494_v46 = vpop.f32.mrf.mxu0 }
 0xbce   :  { %v2495_v61 = vadd.f32 %v3021_v40, %v2494_v46 }
 0xbd0   :  { %2498 = vmax.xlane.f32.xlu0 %v2495_v61 }
 0xbd5   :  { %v2496_v20 = vpop.f32.mrf.mxu0 }
 0xc43   :  { %v2499_v4 = vpop.xlane.xlu0 %2498 }
 0xc44   :  { %v2500_v39 = vsub.f32 %v2495_v61, %v2499_v4 }
 0xc46   :  { %v2501_v38 = vmul.f32 1.442695, %v2500_v39 }
 0xc48   :  { %3182 = vpow2.f32 %v2501_v38 }
 0xc4e   :  { %v3183_v7 = vpop.eup %3182 }
 0xc4f   :  { %2503 = vadd.xlane.f32.xlu0 %v3183_v7 }
 0xcc2   :  { %v2504_v60 = vpop.xlane.xlu0 %2503 }
 0xcc3   :  { %3184 = vrcp.f32 %v2504_v60  ;;  %v2516_v45 = vand.u32 2147483648, %v2504_v60  ;;  %v2514_v1 = vand.u32 2147483647, %v2504_v60  ;;  %vm2510_vm2 = vweird.f32 %v2504_v60 }
 0xcc5   :  { %v2517_v2 = vor.u32 1.1754944e-38, %v2516_v45  ;;  %vm2515_vm4 = vcmp.eq.f32.partialorder %v2514_v1, 8.507059e+37 }
 0xcc9   :  { %v3185_v17 = vpop.eup %3184 }
 0xcca   :  { %v2506_v27 = vmul.f32 %v3185_v17, %v2504_v60  ;;  %vm2511_vm1 = vweird.f32 %v3185_v17 }
 0xccb   :  { %vm2512_vm3 = vmor %vm2510_vm2, %vm2511_vm1 }
 0xccc   :  { %v2507_v24 = vsub.f32 1.0, %v2506_v27 }
 0xcce   :  { %v2508_v36 = vmul.f32 %v3185_v17, %v2507_v24 }
 0xcd0   :  { %v2509_v29 = vadd.f32 %v3185_v17, %v2508_v36 }
 0xcd2   :  { %v2513_v63 = vsel %vm2512_vm3, %v3185_v17, %v2509_v29 }
 0xcd3   :  { %v2518_v33 = vsel %vm2515_vm4, %v2517_v2, %v2513_v63 }
 0xcd4   :  { %v2519_v23 = vmul.f32 %v3183_v7, %v2518_v33 }
 0xcd6   :  { %2520 = vst [vmem:[%s4354_s11] sm:$0xff] %v2519_v23 }
 0xcd7   :  { %2525 = vsyncpa [#allocation7], 1 }
 0xcd8   :  { %2526 = vsyncpa [#allocation9], 1 }
 0xcd9   :  { %2527 = vsyncpa [#allocation12], 1 }
 0xcda   :  { %2528 = vsyncpa [#allocation15], 1 }

</bundles_post_ra>
